<compile_context>
chip_gen: v6e
topology: v6e:2x2x1
jax: 0.10.0
libtpu: 0.0.40
codegen_flags: <defaults>
</compile_context>

<pallas_src>
import jax
import jax.numpy as jnp
from jax import lax
from jax.experimental import pallas as pl
from jax.experimental.pallas import tpu as pltpu

EPS = 1e-5          # torch.nn.InstanceNorm2d default eps
N_INPUTS = 3        # x, y, z


def _round_up(n, m):
    return (n + m - 1) // m * m


def _make_kernel(B, Cout, HW, HWp):
    inv_n = 1.0 / float(HW)          # normalize by the TRUE spatial size
    NR = N_INPUTS * B                # rows of the packed LHS (x rows, y rows, z rows)

    def kernel(m_ref, x_ref, o_ref):
        x = x_ref[...]               # (NR, CHW)        bf16
        m = m_ref[...]               # (CHW, Cout*HWp)  bf16
        # One whole-batch MXU matmul covers all 3*B deconvolutions.
        acc = jnp.dot(x, m, preferred_element_type=jnp.float32)   # (NR, Cout*HWp) f32

        # Lane mask selecting the HW true spatial columns of each 128-lane segment.
        col = lax.broadcasted_iota(jnp.int32, (NR, HWp), 1)
        valid = col < HW

        segs = []
        for oc in range(Cout):
            a = acc[:, oc * HWp:(oc + 1) * HWp]        # lane-aligned static slice
            # Padded columns of `a` are exactly zero (zero-padded deconv matrix,
            # no bias), so a plain sum over HWp lanes equals the sum over HW lanes.
            mean = jnp.sum(a, axis=1, keepdims=True) * inv_n
            d = jnp.where(valid, a - mean, 0.0)        # centered + masked (safe variance)
            var = jnp.sum(d * d, axis=1, keepdims=True) * inv_n
            segs.append(d * lax.rsqrt(var + EPS))
        normed = jnp.concatenate(segs, axis=1)         # (NR, Cout*HWp)

        # 3-way sum over the x / y / z row groups.
        total = normed[0:B] + normed[B:2 * B] + normed[2 * B:3 * B]   # (B, Cout*HWp)
        o_ref[...] = total                             # single lane-dense store

    return kernel


def build_deconv_matrix(weight, H, W):
    """Fold ConvTranspose2d(stride=1, pad=0) + im2col into one dense matrix.

    Returns M of shape (Cin*H*W, Cout*HWp) in bf16 such that for a flattened
    input row x (Cin*H*W,), (x @ M) reshaped to (Cout, HWp) is the bias-free
    deconvolution, with each output channel in a 128-lane-aligned segment whose
    trailing HWp-Ho*Wo columns are exactly zero.
    """
    Cin, Cout, K, _ = weight.shape
    Ho, Wo = H + K - 1, W + K - 1
    HW, HWp = Ho * Wo, _round_up(Ho * Wo, 128)
    CHW = Cin * H * W
    # ConvTranspose2d(stride=1, pad=0) == full correlation with the flipped kernel.
    w_conv = jnp.transpose(jnp.flip(weight, axis=(2, 3)), (1, 0, 2, 3))   # (Cout,Cin,K,K)
    eye = jnp.eye(CHW, dtype=jnp.float32).reshape(CHW, Cin, H, W)
    eye = jnp.pad(eye, ((0, 0), (0, 0), (K - 1, K - 1), (K - 1, K - 1)))
    cols = lax.conv_general_dilated(
        eye, w_conv, (1, 1), 'VALID',
        dimension_numbers=('NCHW', 'OIHW', 'NCHW'),
        precision=lax.Precision.HIGHEST)               # (CHW, Cout, Ho, Wo)
    cols = cols.reshape(CHW, Cout, HW)
    cols = jnp.pad(cols, ((0, 0), (0, 0), (0, HWp - HW)))
    # Each entry of M is a single weight value (one-hot inputs), so the bf16
    # cast is exactly the usual bf16 rounding of the weights.
    return cols.reshape(CHW, Cout * HWp).astype(jnp.bfloat16)


def make_test_multiple_inputs_forward(weight, bias, H, W):
    """Builds a jitted forward(x, y, z) for fixed module parameters.

    forward = in2d(deconv2d(x)) + in2d(deconv2d(y)) + in2d(deconv2d(z))
    weight: (Cin, Cout, K, K) (torch ConvTranspose2d layout), bias: (Cout,).
    `bias` is unused: InstanceNorm2d(affine=False) cancels a per-channel
    constant exactly, so it is dropped before the kernel.
    """
    del bias
    Cin, Cout, K, _ = weight.shape
    Ho, Wo = H + K - 1, W + K - 1
    HW, HWp = Ho * Wo, _round_up(Ho * Wo, 128)
    CHW = Cin * H * W

    # Weight-side prep hoisted out of the per-call path (computed exactly once).
    deconv_mat = jax.block_until_ready(build_deconv_matrix(weight, H, W))

    @jax.jit
    def _forward(dmat, x, y, z):
        B = x.shape[0]
        # The only per-call prep: stack + flatten + bf16 cast.
        xin = jnp.concatenate([x, y, z], axis=0).reshape(N_INPUTS * B, CHW)
        xin = xin.astype(jnp.bfloat16)

        out = pl.pallas_call(
            _make_kernel(B, Cout, HW, HWp),
            out_shape=jax.ShapeDtypeStruct((B, Cout * HWp), jnp.float32),
            grid_spec=pltpu.PrefetchScalarGridSpec(
                num_scalar_prefetch=0,
                grid=(1,),                                # whole batch in one step
                in_specs=[
                    pl.BlockSpec((CHW, Cout * HWp), lambda i: (0, 0)),
                    pl.BlockSpec((N_INPUTS * B, CHW), lambda i: (0, 0)),
                ],
                out_specs=pl.BlockSpec((B, Cout * HWp), lambda i: (0, 0)),
            ),
            compiler_params=pltpu.CompilerParams(
                dimension_semantics=("arbitrary",)),
        )(dmat, xin)

        return out.reshape(B, Cout, HWp)[:, :, :HW].reshape(B, Cout, Ho, Wo)

    def forward(x, y, z):
        return _forward(deconv_mat, x, y, z)

    return forward


def _ref_forward(x, y, z, weight, bias, K):
    # Pure-JAX high-precision reference (ConvTranspose2d == full conv with
    # flipped kernel), WITH the bias applied, to verify the cancellation claim.
    Cout = weight.shape[1]
    w_conv = jnp.transpose(jnp.flip(weight, axis=(2, 3)), (1, 0, 2, 3))  # (Cout,Cin,K,K)

    def deconv(a):
        ap = jnp.pad(a, ((0, 0), (0, 0), (K - 1, K - 1), (K - 1, K - 1)))
        o = lax.conv_general_dilated(
            ap, w_conv, (1, 1), 'VALID',
            dimension_numbers=('NCHW', 'OIHW', 'NCHW'),
            precision=jax.lax.Precision.HIGHEST)
        return o + bias.reshape(1, Cout, 1, 1)

    def instnorm(a):
        mean = jnp.mean(a, axis=(2, 3), keepdims=True)
        var = jnp.mean(jnp.square(a - mean), axis=(2, 3), keepdims=True)
        return (a - mean) * lax.rsqrt(var + EPS)

    return instnorm(deconv(x)) + instnorm(deconv(y)) + instnorm(deconv(z))


if __name__ == "__main__":
    inp, out_ch, K = 10, 16, 3
    B, H, W = 2, 8, 8

    key = jax.random.PRNGKey(0)
    kx, ky, kz, kw, kb = jax.random.split(key, 5)
    x = jax.random.normal(kx, (B, inp, H, W), jnp.float32)
    y = jax.random.normal(ky, (B, inp, H, W), jnp.float32)
    z = jax.random.normal(kz, (B, inp, H, W), jnp.float32)
    # Deterministic synthetic parameters (torch ConvTranspose2d shapes):
    weight = 0.1 * jax.random.normal(kw, (inp, out_ch, K, K), jnp.float32)
    bias = 0.1 * jax.random.normal(kb, (out_ch,), jnp.float32)

    forward = make_test_multiple_inputs_forward(weight, bias, H, W)
    res = forward(x, y, z)
    jax.block_until_ready(res)

    assert res.shape == (B, out_ch, H + K - 1, W + K - 1)
    ref = _ref_forward(x, y, z, weight, bias, K)
    # Tolerance covers bf16 weight/input rounding vs the HIGHEST-precision reference.
    max_err = float(jnp.max(jnp.abs(res - ref)))
    assert jnp.allclose(res, ref, atol=2e-2, rtol=2e-2), max_err
    print("KERNEL_OK")
</pallas_src>

<mosaic_0001>
module attributes {stable_mosaic.version = 11 : i64} {
  func.func @kernel(%arg0: i32, %arg1: memref<640x2048xbf16, #tpu.memory_space<vmem>>, %arg2: memref<6x640xbf16, #tpu.memory_space<vmem>>, %arg3: memref<2x2048xf32, #tpu.memory_space<vmem>>) attributes {dimension_semantics = [#tpu.dimension_semantics<arbitrary>], iteration_bounds = array<i64: 1>, scalar_prefetch = 0 : i64, scratch_operands = 0 : i64, tpu.core_type = #tpu.core_type<tc>, window_params = [{pipeline_mode = #tpu.pipeline_mode<synchronous>, transform_indices = @transform_0, window_bounds = array<i64: 640, 2048>}, {pipeline_mode = #tpu.pipeline_mode<synchronous>, transform_indices = @transform_1, window_bounds = array<i64: 6, 640>}, {pipeline_mode = #tpu.pipeline_mode<synchronous>, transform_indices = @transform_2, window_bounds = array<i64: 2, 2048>}]} {
    %c0 = arith.constant 0 : index
    %c0_0 = arith.constant 0 : index
    %0 = vector.load %arg2[%c0, %c0_0] : memref<6x640xbf16, #tpu.memory_space<vmem>>, vector<6x640xbf16>
    %c0_1 = arith.constant 0 : index
    %c0_2 = arith.constant 0 : index
    %1 = vector.load %arg1[%c0_1, %c0_2] : memref<640x2048xbf16, #tpu.memory_space<vmem>>, vector<640x2048xbf16>
    %cst = arith.constant dense<0.000000e+00> : vector<6x2048xf32>
    %2 = tpu.matmul %0, %1, %cst {dimension_numbers = #tpu.dot_dimension_numbers<[1], [0], [0], [1], [0, 0, 1, 1], [], []>} : vector<6x640xbf16>, vector<640x2048xbf16>, vector<6x2048xf32> -> vector<6x2048xf32>
    %3 = tpu.iota {dimensions = array<i32: 1>} : vector<6x128xi32>
    %c100_i32 = arith.constant 100 : i32
    %4 = vector.broadcast %c100_i32 : i32 to vector<6x128xi32>
    %5 = arith.cmpi slt, %3, %4 : vector<6x128xi32>
    %6 = vector.extract_strided_slice %2 {offsets = [0, 0], sizes = [6, 128], strides = [1, 1]} : vector<6x2048xf32> to vector<6x128xf32>
    %cst_3 = arith.constant dense<0.000000e+00> : vector<6xf32>
    %7 = vector.multi_reduction <add>, %6, %cst_3 [1] : vector<6x128xf32> to vector<6xf32>
    %8 = vector.shape_cast %7 : vector<6xf32> to vector<6x1xf32>
    %cst_4 = arith.constant 0.00999999977 : f32
    %9 = vector.broadcast %cst_4 : f32 to vector<6x1xf32>
    %10 = arith.mulf %8, %9 : vector<6x1xf32>
    %11 = vector.broadcast %10 : vector<6x1xf32> to vector<6x128xf32>
    %12 = arith.subf %6, %11 : vector<6x128xf32>
    %cst_5 = arith.constant 0.000000e+00 : f32
    %13 = vector.broadcast %cst_5 : f32 to vector<6x128xf32>
    %14 = arith.select %5, %12, %13 : vector<6x128xi1>, vector<6x128xf32>
    %15 = arith.mulf %14, %14 : vector<6x128xf32>
    %cst_6 = arith.constant dense<0.000000e+00> : vector<6xf32>
    %16 = vector.multi_reduction <add>, %15, %cst_6 [1] : vector<6x128xf32> to vector<6xf32>
    %17 = vector.shape_cast %16 : vector<6xf32> to vector<6x1xf32>
    %cst_7 = arith.constant 0.00999999977 : f32
    %18 = vector.broadcast %cst_7 : f32 to vector<6x1xf32>
    %19 = arith.mulf %17, %18 : vector<6x1xf32>
    %cst_8 = arith.constant 9.99999974E-6 : f32
    %20 = vector.broadcast %cst_8 : f32 to vector<6x1xf32>
    %21 = arith.addf %19, %20 : vector<6x1xf32>
    %22 = math.rsqrt %21 : vector<6x1xf32>
    %23 = vector.broadcast %22 : vector<6x1xf32> to vector<6x128xf32>
    %24 = arith.mulf %14, %23 : vector<6x128xf32>
    %25 = vector.extract_strided_slice %2 {offsets = [0, 128], sizes = [6, 128], strides = [1, 1]} : vector<6x2048xf32> to vector<6x128xf32>
    %cst_9 = arith.constant dense<0.000000e+00> : vector<6xf32>
    %26 = vector.multi_reduction <add>, %25, %cst_9 [1] : vector<6x128xf32> to vector<6xf32>
    %27 = vector.shape_cast %26 : vector<6xf32> to vector<6x1xf32>
    %cst_10 = arith.constant 0.00999999977 : f32
    %28 = vector.broadcast %cst_10 : f32 to vector<6x1xf32>
    %29 = arith.mulf %27, %28 : vector<6x1xf32>
    %30 = vector.broadcast %29 : vector<6x1xf32> to vector<6x128xf32>
    %31 = arith.subf %25, %30 : vector<6x128xf32>
    %cst_11 = arith.constant 0.000000e+00 : f32
    %32 = vector.broadcast %cst_11 : f32 to vector<6x128xf32>
    %33 = arith.select %5, %31, %32 : vector<6x128xi1>, vector<6x128xf32>
    %34 = arith.mulf %33, %33 : vector<6x128xf32>
    %cst_12 = arith.constant dense<0.000000e+00> : vector<6xf32>
    %35 = vector.multi_reduction <add>, %34, %cst_12 [1] : vector<6x128xf32> to vector<6xf32>
    %36 = vector.shape_cast %35 : vector<6xf32> to vector<6x1xf32>
    %cst_13 = arith.constant 0.00999999977 : f32
    %37 = vector.broadcast %cst_13 : f32 to vector<6x1xf32>
    %38 = arith.mulf %36, %37 : vector<6x1xf32>
    %cst_14 = arith.constant 9.99999974E-6 : f32
    %39 = vector.broadcast %cst_14 : f32 to vector<6x1xf32>
    %40 = arith.addf %38, %39 : vector<6x1xf32>
    %41 = math.rsqrt %40 : vector<6x1xf32>
    %42 = vector.broadcast %41 : vector<6x1xf32> to vector<6x128xf32>
    %43 = arith.mulf %33, %42 : vector<6x128xf32>
    %44 = vector.extract_strided_slice %2 {offsets = [0, 256], sizes = [6, 128], strides = [1, 1]} : vector<6x2048xf32> to vector<6x128xf32>
    %cst_15 = arith.constant dense<0.000000e+00> : vector<6xf32>
    %45 = vector.multi_reduction <add>, %44, %cst_15 [1] : vector<6x128xf32> to vector<6xf32>
    %46 = vector.shape_cast %45 : vector<6xf32> to vector<6x1xf32>
    %cst_16 = arith.constant 0.00999999977 : f32
    %47 = vector.broadcast %cst_16 : f32 to vector<6x1xf32>
    %48 = arith.mulf %46, %47 : vector<6x1xf32>
    %49 = vector.broadcast %48 : vector<6x1xf32> to vector<6x128xf32>
    %50 = arith.subf %44, %49 : vector<6x128xf32>
    %cst_17 = arith.constant 0.000000e+00 : f32
    %51 = vector.broadcast %cst_17 : f32 to vector<6x128xf32>
    %52 = arith.select %5, %50, %51 : vector<6x128xi1>, vector<6x128xf32>
    %53 = arith.mulf %52, %52 : vector<6x128xf32>
    %cst_18 = arith.constant dense<0.000000e+00> : vector<6xf32>
    %54 = vector.multi_reduction <add>, %53, %cst_18 [1] : vector<6x128xf32> to vector<6xf32>
    %55 = vector.shape_cast %54 : vector<6xf32> to vector<6x1xf32>
    %cst_19 = arith.constant 0.00999999977 : f32
    %56 = vector.broadcast %cst_19 : f32 to vector<6x1xf32>
    %57 = arith.mulf %55, %56 : vector<6x1xf32>
    %cst_20 = arith.constant 9.99999974E-6 : f32
    %58 = vector.broadcast %cst_20 : f32 to vector<6x1xf32>
    %59 = arith.addf %57, %58 : vector<6x1xf32>
    %60 = math.rsqrt %59 : vector<6x1xf32>
    %61 = vector.broadcast %60 : vector<6x1xf32> to vector<6x128xf32>
    %62 = arith.mulf %52, %61 : vector<6x128xf32>
    %63 = vector.extract_strided_slice %2 {offsets = [0, 384], sizes = [6, 128], strides = [1, 1]} : vector<6x2048xf32> to vector<6x128xf32>
    %cst_21 = arith.constant dense<0.000000e+00> : vector<6xf32>
    %64 = vector.multi_reduction <add>, %63, %cst_21 [1] : vector<6x128xf32> to vector<6xf32>
    %65 = vector.shape_cast %64 : vector<6xf32> to vector<6x1xf32>
    %cst_22 = arith.constant 0.00999999977 : f32
    %66 = vector.broadcast %cst_22 : f32 to vector<6x1xf32>
    %67 = arith.mulf %65, %66 : vector<6x1xf32>
    %68 = vector.broadcast %67 : vector<6x1xf32> to vector<6x128xf32>
    %69 = arith.subf %63, %68 : vector<6x128xf32>
    %cst_23 = arith.constant 0.000000e+00 : f32
    %70 = vector.broadcast %cst_23 : f32 to vector<6x128xf32>
    %71 = arith.select %5, %69, %70 : vector<6x128xi1>, vector<6x128xf32>
    %72 = arith.mulf %71, %71 : vector<6x128xf32>
    %cst_24 = arith.constant dense<0.000000e+00> : vector<6xf32>
    %73 = vector.multi_reduction <add>, %72, %cst_24 [1] : vector<6x128xf32> to vector<6xf32>
    %74 = vector.shape_cast %73 : vector<6xf32> to vector<6x1xf32>
    %cst_25 = arith.constant 0.00999999977 : f32
    %75 = vector.broadcast %cst_25 : f32 to vector<6x1xf32>
    %76 = arith.mulf %74, %75 : vector<6x1xf32>
    %cst_26 = arith.constant 9.99999974E-6 : f32
    %77 = vector.broadcast %cst_26 : f32 to vector<6x1xf32>
    %78 = arith.addf %76, %77 : vector<6x1xf32>
    %79 = math.rsqrt %78 : vector<6x1xf32>
    %80 = vector.broadcast %79 : vector<6x1xf32> to vector<6x128xf32>
    %81 = arith.mulf %71, %80 : vector<6x128xf32>
    %82 = vector.extract_strided_slice %2 {offsets = [0, 512], sizes = [6, 128], strides = [1, 1]} : vector<6x2048xf32> to vector<6x128xf32>
    %cst_27 = arith.constant dense<0.000000e+00> : vector<6xf32>
    %83 = vector.multi_reduction <add>, %82, %cst_27 [1] : vector<6x128xf32> to vector<6xf32>
    %84 = vector.shape_cast %83 : vector<6xf32> to vector<6x1xf32>
    %cst_28 = arith.constant 0.00999999977 : f32
    %85 = vector.broadcast %cst_28 : f32 to vector<6x1xf32>
    %86 = arith.mulf %84, %85 : vector<6x1xf32>
    %87 = vector.broadcast %86 : vector<6x1xf32> to vector<6x128xf32>
    %88 = arith.subf %82, %87 : vector<6x128xf32>
    %cst_29 = arith.constant 0.000000e+00 : f32
    %89 = vector.broadcast %cst_29 : f32 to vector<6x128xf32>
    %90 = arith.select %5, %88, %89 : vector<6x128xi1>, vector<6x128xf32>
    %91 = arith.mulf %90, %90 : vector<6x128xf32>
    %cst_30 = arith.constant dense<0.000000e+00> : vector<6xf32>
    %92 = vector.multi_reduction <add>, %91, %cst_30 [1] : vector<6x128xf32> to vector<6xf32>
    %93 = vector.shape_cast %92 : vector<6xf32> to vector<6x1xf32>
    %cst_31 = arith.constant 0.00999999977 : f32
    %94 = vector.broadcast %cst_31 : f32 to vector<6x1xf32>
    %95 = arith.mulf %93, %94 : vector<6x1xf32>
    %cst_32 = arith.constant 9.99999974E-6 : f32
    %96 = vector.broadcast %cst_32 : f32 to vector<6x1xf32>
    %97 = arith.addf %95, %96 : vector<6x1xf32>
    %98 = math.rsqrt %97 : vector<6x1xf32>
    %99 = vector.broadcast %98 : vector<6x1xf32> to vector<6x128xf32>
    %100 = arith.mulf %90, %99 : vector<6x128xf32>
    %101 = vector.extract_strided_slice %2 {offsets = [0, 640], sizes = [6, 128], strides = [1, 1]} : vector<6x2048xf32> to vector<6x128xf32>
    %cst_33 = arith.constant dense<0.000000e+00> : vector<6xf32>
    %102 = vector.multi_reduction <add>, %101, %cst_33 [1] : vector<6x128xf32> to vector<6xf32>
    %103 = vector.shape_cast %102 : vector<6xf32> to vector<6x1xf32>
    %cst_34 = arith.constant 0.00999999977 : f32
    %104 = vector.broadcast %cst_34 : f32 to vector<6x1xf32>
    %105 = arith.mulf %103, %104 : vector<6x1xf32>
    %106 = vector.broadcast %105 : vector<6x1xf32> to vector<6x128xf32>
    %107 = arith.subf %101, %106 : vector<6x128xf32>
    %cst_35 = arith.constant 0.000000e+00 : f32
    %108 = vector.broadcast %cst_35 : f32 to vector<6x128xf32>
    %109 = arith.select %5, %107, %108 : vector<6x128xi1>, vector<6x128xf32>
    %110 = arith.mulf %109, %109 : vector<6x128xf32>
    %cst_36 = arith.constant dense<0.000000e+00> : vector<6xf32>
    %111 = vector.multi_reduction <add>, %110, %cst_36 [1] : vector<6x128xf32> to vector<6xf32>
    %112 = vector.shape_cast %111 : vector<6xf32> to vector<6x1xf32>
    %cst_37 = arith.constant 0.00999999977 : f32
    %113 = vector.broadcast %cst_37 : f32 to vector<6x1xf32>
    %114 = arith.mulf %112, %113 : vector<6x1xf32>
    %cst_38 = arith.constant 9.99999974E-6 : f32
    %115 = vector.broadcast %cst_38 : f32 to vector<6x1xf32>
    %116 = arith.addf %114, %115 : vector<6x1xf32>
    %117 = math.rsqrt %116 : vector<6x1xf32>
    %118 = vector.broadcast %117 : vector<6x1xf32> to vector<6x128xf32>
    %119 = arith.mulf %109, %118 : vector<6x128xf32>
    %120 = vector.extract_strided_slice %2 {offsets = [0, 768], sizes = [6, 128], strides = [1, 1]} : vector<6x2048xf32> to vector<6x128xf32>
    %cst_39 = arith.constant dense<0.000000e+00> : vector<6xf32>
    %121 = vector.multi_reduction <add>, %120, %cst_39 [1] : vector<6x128xf32> to vector<6xf32>
    %122 = vector.shape_cast %121 : vector<6xf32> to vector<6x1xf32>
    %cst_40 = arith.constant 0.00999999977 : f32
    %123 = vector.broadcast %cst_40 : f32 to vector<6x1xf32>
    %124 = arith.mulf %122, %123 : vector<6x1xf32>
    %125 = vector.broadcast %124 : vector<6x1xf32> to vector<6x128xf32>
    %126 = arith.subf %120, %125 : vector<6x128xf32>
    %cst_41 = arith.constant 0.000000e+00 : f32
    %127 = vector.broadcast %cst_41 : f32 to vector<6x128xf32>
    %128 = arith.select %5, %126, %127 : vector<6x128xi1>, vector<6x128xf32>
    %129 = arith.mulf %128, %128 : vector<6x128xf32>
    %cst_42 = arith.constant dense<0.000000e+00> : vector<6xf32>
    %130 = vector.multi_reduction <add>, %129, %cst_42 [1] : vector<6x128xf32> to vector<6xf32>
    %131 = vector.shape_cast %130 : vector<6xf32> to vector<6x1xf32>
    %cst_43 = arith.constant 0.00999999977 : f32
    %132 = vector.broadcast %cst_43 : f32 to vector<6x1xf32>
    %133 = arith.mulf %131, %132 : vector<6x1xf32>
    %cst_44 = arith.constant 9.99999974E-6 : f32
    %134 = vector.broadcast %cst_44 : f32 to vector<6x1xf32>
    %135 = arith.addf %133, %134 : vector<6x1xf32>
    %136 = math.rsqrt %135 : vector<6x1xf32>
    %137 = vector.broadcast %136 : vector<6x1xf32> to vector<6x128xf32>
    %138 = arith.mulf %128, %137 : vector<6x128xf32>
    %139 = vector.extract_strided_slice %2 {offsets = [0, 896], sizes = [6, 128], strides = [1, 1]} : vector<6x2048xf32> to vector<6x128xf32>
    %cst_45 = arith.constant dense<0.000000e+00> : vector<6xf32>
    %140 = vector.multi_reduction <add>, %139, %cst_45 [1] : vector<6x128xf32> to vector<6xf32>
    %141 = vector.shape_cast %140 : vector<6xf32> to vector<6x1xf32>
    %cst_46 = arith.constant 0.00999999977 : f32
    %142 = vector.broadcast %cst_46 : f32 to vector<6x1xf32>
    %143 = arith.mulf %141, %142 : vector<6x1xf32>
    %144 = vector.broadcast %143 : vector<6x1xf32> to vector<6x128xf32>
    %145 = arith.subf %139, %144 : vector<6x128xf32>
    %cst_47 = arith.constant 0.000000e+00 : f32
    %146 = vector.broadcast %cst_47 : f32 to vector<6x128xf32>
    %147 = arith.select %5, %145, %146 : vector<6x128xi1>, vector<6x128xf32>
    %148 = arith.mulf %147, %147 : vector<6x128xf32>
    %cst_48 = arith.constant dense<0.000000e+00> : vector<6xf32>
    %149 = vector.multi_reduction <add>, %148, %cst_48 [1] : vector<6x128xf32> to vector<6xf32>
    %150 = vector.shape_cast %149 : vector<6xf32> to vector<6x1xf32>
    %cst_49 = arith.constant 0.00999999977 : f32
    %151 = vector.broadcast %cst_49 : f32 to vector<6x1xf32>
    %152 = arith.mulf %150, %151 : vector<6x1xf32>
    %cst_50 = arith.constant 9.99999974E-6 : f32
    %153 = vector.broadcast %cst_50 : f32 to vector<6x1xf32>
    %154 = arith.addf %152, %153 : vector<6x1xf32>
    %155 = math.rsqrt %154 : vector<6x1xf32>
    %156 = vector.broadcast %155 : vector<6x1xf32> to vector<6x128xf32>
    %157 = arith.mulf %147, %156 : vector<6x128xf32>
    %158 = vector.extract_strided_slice %2 {offsets = [0, 1024], sizes = [6, 128], strides = [1, 1]} : vector<6x2048xf32> to vector<6x128xf32>
    %cst_51 = arith.constant dense<0.000000e+00> : vector<6xf32>
    %159 = vector.multi_reduction <add>, %158, %cst_51 [1] : vector<6x128xf32> to vector<6xf32>
    %160 = vector.shape_cast %159 : vector<6xf32> to vector<6x1xf32>
    %cst_52 = arith.constant 0.00999999977 : f32
    %161 = vector.broadcast %cst_52 : f32 to vector<6x1xf32>
    %162 = arith.mulf %160, %161 : vector<6x1xf32>
    %163 = vector.broadcast %162 : vector<6x1xf32> to vector<6x128xf32>
    %164 = arith.subf %158, %163 : vector<6x128xf32>
    %cst_53 = arith.constant 0.000000e+00 : f32
    %165 = vector.broadcast %cst_53 : f32 to vector<6x128xf32>
    %166 = arith.select %5, %164, %165 : vector<6x128xi1>, vector<6x128xf32>
    %167 = arith.mulf %166, %166 : vector<6x128xf32>
    %cst_54 = arith.constant dense<0.000000e+00> : vector<6xf32>
    %168 = vector.multi_reduction <add>, %167, %cst_54 [1] : vector<6x128xf32> to vector<6xf32>
    %169 = vector.shape_cast %168 : vector<6xf32> to vector<6x1xf32>
    %cst_55 = arith.constant 0.00999999977 : f32
    %170 = vector.broadcast %cst_55 : f32 to vector<6x1xf32>
    %171 = arith.mulf %169, %170 : vector<6x1xf32>
    %cst_56 = arith.constant 9.99999974E-6 : f32
    %172 = vector.broadcast %cst_56 : f32 to vector<6x1xf32>
    %173 = arith.addf %171, %172 : vector<6x1xf32>
    %174 = math.rsqrt %173 : vector<6x1xf32>
    %175 = vector.broadcast %174 : vector<6x1xf32> to vector<6x128xf32>
    %176 = arith.mulf %166, %175 : vector<6x128xf32>
    %177 = vector.extract_strided_slice %2 {offsets = [0, 1152], sizes = [6, 128], strides = [1, 1]} : vector<6x2048xf32> to vector<6x128xf32>
    %cst_57 = arith.constant dense<0.000000e+00> : vector<6xf32>
    %178 = vector.multi_reduction <add>, %177, %cst_57 [1] : vector<6x128xf32> to vector<6xf32>
    %179 = vector.shape_cast %178 : vector<6xf32> to vector<6x1xf32>
    %cst_58 = arith.constant 0.00999999977 : f32
    %180 = vector.broadcast %cst_58 : f32 to vector<6x1xf32>
    %181 = arith.mulf %179, %180 : vector<6x1xf32>
    %182 = vector.broadcast %181 : vector<6x1xf32> to vector<6x128xf32>
    %183 = arith.subf %177, %182 : vector<6x128xf32>
    %cst_59 = arith.constant 0.000000e+00 : f32
    %184 = vector.broadcast %cst_59 : f32 to vector<6x128xf32>
    %185 = arith.select %5, %183, %184 : vector<6x128xi1>, vector<6x128xf32>
    %186 = arith.mulf %185, %185 : vector<6x128xf32>
    %cst_60 = arith.constant dense<0.000000e+00> : vector<6xf32>
    %187 = vector.multi_reduction <add>, %186, %cst_60 [1] : vector<6x128xf32> to vector<6xf32>
    %188 = vector.shape_cast %187 : vector<6xf32> to vector<6x1xf32>
    %cst_61 = arith.constant 0.00999999977 : f32
    %189 = vector.broadcast %cst_61 : f32 to vector<6x1xf32>
    %190 = arith.mulf %188, %189 : vector<6x1xf32>
    %cst_62 = arith.constant 9.99999974E-6 : f32
    %191 = vector.broadcast %cst_62 : f32 to vector<6x1xf32>
    %192 = arith.addf %190, %191 : vector<6x1xf32>
    %193 = math.rsqrt %192 : vector<6x1xf32>
    %194 = vector.broadcast %193 : vector<6x1xf32> to vector<6x128xf32>
    %195 = arith.mulf %185, %194 : vector<6x128xf32>
    %196 = vector.extract_strided_slice %2 {offsets = [0, 1280], sizes = [6, 128], strides = [1, 1]} : vector<6x2048xf32> to vector<6x128xf32>
    %cst_63 = arith.constant dense<0.000000e+00> : vector<6xf32>
    %197 = vector.multi_reduction <add>, %196, %cst_63 [1] : vector<6x128xf32> to vector<6xf32>
    %198 = vector.shape_cast %197 : vector<6xf32> to vector<6x1xf32>
    %cst_64 = arith.constant 0.00999999977 : f32
    %199 = vector.broadcast %cst_64 : f32 to vector<6x1xf32>
    %200 = arith.mulf %198, %199 : vector<6x1xf32>
    %201 = vector.broadcast %200 : vector<6x1xf32> to vector<6x128xf32>
    %202 = arith.subf %196, %201 : vector<6x128xf32>
    %cst_65 = arith.constant 0.000000e+00 : f32
    %203 = vector.broadcast %cst_65 : f32 to vector<6x128xf32>
    %204 = arith.select %5, %202, %203 : vector<6x128xi1>, vector<6x128xf32>
    %205 = arith.mulf %204, %204 : vector<6x128xf32>
    %cst_66 = arith.constant dense<0.000000e+00> : vector<6xf32>
    %206 = vector.multi_reduction <add>, %205, %cst_66 [1] : vector<6x128xf32> to vector<6xf32>
    %207 = vector.shape_cast %206 : vector<6xf32> to vector<6x1xf32>
    %cst_67 = arith.constant 0.00999999977 : f32
    %208 = vector.broadcast %cst_67 : f32 to vector<6x1xf32>
    %209 = arith.mulf %207, %208 : vector<6x1xf32>
    %cst_68 = arith.constant 9.99999974E-6 : f32
    %210 = vector.broadcast %cst_68 : f32 to vector<6x1xf32>
    %211 = arith.addf %209, %210 : vector<6x1xf32>
    %212 = math.rsqrt %211 : vector<6x1xf32>
    %213 = vector.broadcast %212 : vector<6x1xf32> to vector<6x128xf32>
    %214 = arith.mulf %204, %213 : vector<6x128xf32>
    %215 = vector.extract_strided_slice %2 {offsets = [0, 1408], sizes = [6, 128], strides = [1, 1]} : vector<6x2048xf32> to vector<6x128xf32>
    %cst_69 = arith.constant dense<0.000000e+00> : vector<6xf32>
    %216 = vector.multi_reduction <add>, %215, %cst_69 [1] : vector<6x128xf32> to vector<6xf32>
    %217 = vector.shape_cast %216 : vector<6xf32> to vector<6x1xf32>
    %cst_70 = arith.constant 0.00999999977 : f32
    %218 = vector.broadcast %cst_70 : f32 to vector<6x1xf32>
    %219 = arith.mulf %217, %218 : vector<6x1xf32>
    %220 = vector.broadcast %219 : vector<6x1xf32> to vector<6x128xf32>
    %221 = arith.subf %215, %220 : vector<6x128xf32>
    %cst_71 = arith.constant 0.000000e+00 : f32
    %222 = vector.broadcast %cst_71 : f32 to vector<6x128xf32>
    %223 = arith.select %5, %221, %222 : vector<6x128xi1>, vector<6x128xf32>
    %224 = arith.mulf %223, %223 : vector<6x128xf32>
    %cst_72 = arith.constant dense<0.000000e+00> : vector<6xf32>
    %225 = vector.multi_reduction <add>, %224, %cst_72 [1] : vector<6x128xf32> to vector<6xf32>
    %226 = vector.shape_cast %225 : vector<6xf32> to vector<6x1xf32>
    %cst_73 = arith.constant 0.00999999977 : f32
    %227 = vector.broadcast %cst_73 : f32 to vector<6x1xf32>
    %228 = arith.mulf %226, %227 : vector<6x1xf32>
    %cst_74 = arith.constant 9.99999974E-6 : f32
    %229 = vector.broadcast %cst_74 : f32 to vector<6x1xf32>
    %230 = arith.addf %228, %229 : vector<6x1xf32>
    %231 = math.rsqrt %230 : vector<6x1xf32>
    %232 = vector.broadcast %231 : vector<6x1xf32> to vector<6x128xf32>
    %233 = arith.mulf %223, %232 : vector<6x128xf32>
    %234 = vector.extract_strided_slice %2 {offsets = [0, 1536], sizes = [6, 128], strides = [1, 1]} : vector<6x2048xf32> to vector<6x128xf32>
    %cst_75 = arith.constant dense<0.000000e+00> : vector<6xf32>
    %235 = vector.multi_reduction <add>, %234, %cst_75 [1] : vector<6x128xf32> to vector<6xf32>
    %236 = vector.shape_cast %235 : vector<6xf32> to vector<6x1xf32>
    %cst_76 = arith.constant 0.00999999977 : f32
    %237 = vector.broadcast %cst_76 : f32 to vector<6x1xf32>
    %238 = arith.mulf %236, %237 : vector<6x1xf32>
    %239 = vector.broadcast %238 : vector<6x1xf32> to vector<6x128xf32>
    %240 = arith.subf %234, %239 : vector<6x128xf32>
    %cst_77 = arith.constant 0.000000e+00 : f32
    %241 = vector.broadcast %cst_77 : f32 to vector<6x128xf32>
    %242 = arith.select %5, %240, %241 : vector<6x128xi1>, vector<6x128xf32>
    %243 = arith.mulf %242, %242 : vector<6x128xf32>
    %cst_78 = arith.constant dense<0.000000e+00> : vector<6xf32>
    %244 = vector.multi_reduction <add>, %243, %cst_78 [1] : vector<6x128xf32> to vector<6xf32>
    %245 = vector.shape_cast %244 : vector<6xf32> to vector<6x1xf32>
    %cst_79 = arith.constant 0.00999999977 : f32
    %246 = vector.broadcast %cst_79 : f32 to vector<6x1xf32>
    %247 = arith.mulf %245, %246 : vector<6x1xf32>
    %cst_80 = arith.constant 9.99999974E-6 : f32
    %248 = vector.broadcast %cst_80 : f32 to vector<6x1xf32>
    %249 = arith.addf %247, %248 : vector<6x1xf32>
    %250 = math.rsqrt %249 : vector<6x1xf32>
    %251 = vector.broadcast %250 : vector<6x1xf32> to vector<6x128xf32>
    %252 = arith.mulf %242, %251 : vector<6x128xf32>
    %253 = vector.extract_strided_slice %2 {offsets = [0, 1664], sizes = [6, 128], strides = [1, 1]} : vector<6x2048xf32> to vector<6x128xf32>
    %cst_81 = arith.constant dense<0.000000e+00> : vector<6xf32>
    %254 = vector.multi_reduction <add>, %253, %cst_81 [1] : vector<6x128xf32> to vector<6xf32>
    %255 = vector.shape_cast %254 : vector<6xf32> to vector<6x1xf32>
    %cst_82 = arith.constant 0.00999999977 : f32
    %256 = vector.broadcast %cst_82 : f32 to vector<6x1xf32>
    %257 = arith.mulf %255, %256 : vector<6x1xf32>
    %258 = vector.broadcast %257 : vector<6x1xf32> to vector<6x128xf32>
    %259 = arith.subf %253, %258 : vector<6x128xf32>
    %cst_83 = arith.constant 0.000000e+00 : f32
    %260 = vector.broadcast %cst_83 : f32 to vector<6x128xf32>
    %261 = arith.select %5, %259, %260 : vector<6x128xi1>, vector<6x128xf32>
    %262 = arith.mulf %261, %261 : vector<6x128xf32>
    %cst_84 = arith.constant dense<0.000000e+00> : vector<6xf32>
    %263 = vector.multi_reduction <add>, %262, %cst_84 [1] : vector<6x128xf32> to vector<6xf32>
    %264 = vector.shape_cast %263 : vector<6xf32> to vector<6x1xf32>
    %cst_85 = arith.constant 0.00999999977 : f32
    %265 = vector.broadcast %cst_85 : f32 to vector<6x1xf32>
    %266 = arith.mulf %264, %265 : vector<6x1xf32>
    %cst_86 = arith.constant 9.99999974E-6 : f32
    %267 = vector.broadcast %cst_86 : f32 to vector<6x1xf32>
    %268 = arith.addf %266, %267 : vector<6x1xf32>
    %269 = math.rsqrt %268 : vector<6x1xf32>
    %270 = vector.broadcast %269 : vector<6x1xf32> to vector<6x128xf32>
    %271 = arith.mulf %261, %270 : vector<6x128xf32>
    %272 = vector.extract_strided_slice %2 {offsets = [0, 1792], sizes = [6, 128], strides = [1, 1]} : vector<6x2048xf32> to vector<6x128xf32>
    %cst_87 = arith.constant dense<0.000000e+00> : vector<6xf32>
    %273 = vector.multi_reduction <add>, %272, %cst_87 [1] : vector<6x128xf32> to vector<6xf32>
    %274 = vector.shape_cast %273 : vector<6xf32> to vector<6x1xf32>
    %cst_88 = arith.constant 0.00999999977 : f32
    %275 = vector.broadcast %cst_88 : f32 to vector<6x1xf32>
    %276 = arith.mulf %274, %275 : vector<6x1xf32>
    %277 = vector.broadcast %276 : vector<6x1xf32> to vector<6x128xf32>
    %278 = arith.subf %272, %277 : vector<6x128xf32>
    %cst_89 = arith.constant 0.000000e+00 : f32
    %279 = vector.broadcast %cst_89 : f32 to vector<6x128xf32>
    %280 = arith.select %5, %278, %279 : vector<6x128xi1>, vector<6x128xf32>
    %281 = arith.mulf %280, %280 : vector<6x128xf32>
    %cst_90 = arith.constant dense<0.000000e+00> : vector<6xf32>
    %282 = vector.multi_reduction <add>, %281, %cst_90 [1] : vector<6x128xf32> to vector<6xf32>
    %283 = vector.shape_cast %282 : vector<6xf32> to vector<6x1xf32>
    %cst_91 = arith.constant 0.00999999977 : f32
    %284 = vector.broadcast %cst_91 : f32 to vector<6x1xf32>
    %285 = arith.mulf %283, %284 : vector<6x1xf32>
    %cst_92 = arith.constant 9.99999974E-6 : f32
    %286 = vector.broadcast %cst_92 : f32 to vector<6x1xf32>
    %287 = arith.addf %285, %286 : vector<6x1xf32>
    %288 = math.rsqrt %287 : vector<6x1xf32>
    %289 = vector.broadcast %288 : vector<6x1xf32> to vector<6x128xf32>
    %290 = arith.mulf %280, %289 : vector<6x128xf32>
    %291 = vector.extract_strided_slice %2 {offsets = [0, 1920], sizes = [6, 128], strides = [1, 1]} : vector<6x2048xf32> to vector<6x128xf32>
    %cst_93 = arith.constant dense<0.000000e+00> : vector<6xf32>
    %292 = vector.multi_reduction <add>, %291, %cst_93 [1] : vector<6x128xf32> to vector<6xf32>
    %293 = vector.shape_cast %292 : vector<6xf32> to vector<6x1xf32>
    %cst_94 = arith.constant 0.00999999977 : f32
    %294 = vector.broadcast %cst_94 : f32 to vector<6x1xf32>
    %295 = arith.mulf %293, %294 : vector<6x1xf32>
    %296 = vector.broadcast %295 : vector<6x1xf32> to vector<6x128xf32>
    %297 = arith.subf %291, %296 : vector<6x128xf32>
    %cst_95 = arith.constant 0.000000e+00 : f32
    %298 = vector.broadcast %cst_95 : f32 to vector<6x128xf32>
    %299 = arith.select %5, %297, %298 : vector<6x128xi1>, vector<6x128xf32>
    %300 = arith.mulf %299, %299 : vector<6x128xf32>
    %cst_96 = arith.constant dense<0.000000e+00> : vector<6xf32>
    %301 = vector.multi_reduction <add>, %300, %cst_96 [1] : vector<6x128xf32> to vector<6xf32>
    %302 = vector.shape_cast %301 : vector<6xf32> to vector<6x1xf32>
    %cst_97 = arith.constant 0.00999999977 : f32
    %303 = vector.broadcast %cst_97 : f32 to vector<6x1xf32>
    %304 = arith.mulf %302, %303 : vector<6x1xf32>
    %cst_98 = arith.constant 9.99999974E-6 : f32
    %305 = vector.broadcast %cst_98 : f32 to vector<6x1xf32>
    %306 = arith.addf %304, %305 : vector<6x1xf32>
    %307 = math.rsqrt %306 : vector<6x1xf32>
    %308 = vector.broadcast %307 : vector<6x1xf32> to vector<6x128xf32>
    %309 = arith.mulf %299, %308 : vector<6x128xf32>
    %310 = tpu.concatenate %24, %43, %62, %81, %100, %119, %138, %157, %176, %195, %214, %233, %252, %271, %290, %309 in 1 : vector<6x128xf32>, vector<6x128xf32>, vector<6x128xf32>, vector<6x128xf32>, vector<6x128xf32>, vector<6x128xf32>, vector<6x128xf32>, vector<6x128xf32>, vector<6x128xf32>, vector<6x128xf32>, vector<6x128xf32>, vector<6x128xf32>, vector<6x128xf32>, vector<6x128xf32>, vector<6x128xf32>, vector<6x128xf32> -> vector<6x2048xf32>
    %311 = vector.extract_strided_slice %310 {offsets = [0, 0], sizes = [2, 2048], strides = [1, 1]} : vector<6x2048xf32> to vector<2x2048xf32>
    %312 = vector.extract_strided_slice %310 {offsets = [2, 0], sizes = [2, 2048], strides = [1, 1]} : vector<6x2048xf32> to vector<2x2048xf32>
    %313 = arith.addf %311, %312 : vector<2x2048xf32>
    %314 = vector.extract_strided_slice %310 {offsets = [4, 0], sizes = [2, 2048], strides = [1, 1]} : vector<6x2048xf32> to vector<2x2048xf32>
    %315 = arith.addf %313, %314 : vector<2x2048xf32>
    %c0_99 = arith.constant 0 : index
    %c0_100 = arith.constant 0 : index
    %316 = vector.load %arg3[%c0_99, %c0_100] : memref<2x2048xf32, #tpu.memory_space<vmem>>, vector<2x2048xf32>
    tpu.vector_store %arg3[%c0_99, %c0_100], %315 {strides = array<i32>} : memref<2x2048xf32, #tpu.memory_space<vmem>>, vector<2x2048xf32>,
    return
  }
  func.func @transform_0(%arg0: i32) -> (i32, i32) {
    %c0_i32 = arith.constant 0 : i32
    %c0_i32_0 = arith.constant 0 : i32
    %c0_i32_1 = arith.constant 0 : i32
    return %c0_i32, %c0_i32_0 : i32, i32
  }
  func.func @transform_1(%arg0: i32) -> (i32, i32) {
    %c0_i32 = arith.constant 0 : i32
    %c0_i32_0 = arith.constant 0 : i32
    %c0_i32_1 = arith.constant 0 : i32
    return %c0_i32, %c0_i32_0 : i32, i32
  }
  func.func @transform_2(%arg0: i32) -> (i32, i32) {
    %c0_i32 = arith.constant 0 : i32
    %c0_i32_0 = arith.constant 0 : i32
    %c0_i32_1 = arith.constant 0 : i32
    return %c0_i32, %c0_i32_0 : i32, i32
  }
}

</mosaic_0001>

<bundles_post_ra>
// kernel: _forward.1
= control target key start
LH: loop header
LB: loop body
LE: loop exit
PB: predicated region body
PF: predicated region fallthrough
CT: control target
= control target key end

     0   :  { %7 = vsyncpa [#allocation3], 0  ;;  %s6020_s9 = smov [#allocation2]   ;;  %s6417_s0 = inlined_call_operand.hbm [shape: bf16[640,2048], index: 0, kind: input, shape index: {}]   ;;  %s6418_s1 = inlined_call_operand.vmem [shape: bf16[6,640], index: 1, kind: input, shape index: {}]   ;;  %s6419_s2 = inlined_call_operand.vmem [shape: f32[2,2048], index: 2, kind: output, shape index: {}]  }
   0x1   :  { %s13_s10 = sshll.u32 %s6020_s9, 4  ;;  %s14_s10 = int_to_ptr.vmem [resolvable:$true] %s13_s10 }
   0x2   :  { %s6006_s11 = scalar_lea.vmem %s14_s10, 81920  ;;  %p6011_p1 = scmp.lt.s32.totalorder %s14_s10, %s14_s10 }
   0x3   :  { %p6007_p0 = scmp.ne.s32.totalorder %s14_s10, %s6006_s11  ;;  %p6012_p2 = scmp.lt.s32.totalorder %s6006_s11, %s6006_s11 }
   0x5   :  { %p6013_p3 = por %p6012_p2, %p6011_p1 }
   0x7   :  { %p6014_p4 = pnand %p6013_p3, %p6007_p0 }
   0x9   :  { %6017 = shalt.err (!%p6014_p4)
}
   0xa   :  { %s6021_s12 = smov 1024   ;;  %s6022_s13 = smov 64  }
   0xb   :  { %19 = dma.hbm_to_vmem [thread:$0]  %s6417_s0, 81920, %s14_s10, [#allocation3], %s6021_s12, %s6021_s12, %s6022_s13  }
   0xc   :  { %6018 = dma.done.wait [#allocation3], 81920  }
   0xd   :  { %6019 = vsyncadd [#allocation3], 4294885376  ;;  %v141_v0 = vld [vmem:[#allocation2 + $0x380] sm:$0xff]  ;;  %v6051_v54 = vld [vmem:[%s6418_s1 + $0x8] sm:$0x77]  ;;  %vm4874_vm0 = vcmask 1045504  }
   0xe   :  { %v149_v1 = vld [vmem:[#allocation2 + $0x3c0] sm:$0xff]  ;;  %v6059_v59 = vcombine.high %v6051_v54, %v6051_v54 }
   0xf   :  { %v397_v2 = vld [vmem:[#allocation2 + $0xb80] sm:$0xff]  ;;  %v5426_v3 = vcombine.high %v141_v0, %v149_v1  ;;  %v5425_v5 = vcombine.low %v141_v0, %v149_v1 }
  0x10   :  { %v405_v4 = vld [vmem:[#allocation2 + $0xbc0] sm:$0xff]  ;;  %3960 = vmatprep.mubr.bf16.mxu1 %v6059_v59 }
  0x11   :  { %v125_v6 = vld [vmem:[#allocation2 + $0x300] sm:$0xff]  ;;  %v5682_v8 = vcombine.high %v397_v2, %v405_v4  ;;  %v5681_v9 = vcombine.low %v397_v2, %v405_v4  ;;  %3887 = vmatprep.subr.bf16.mxu0 %v5426_v3 }
  0x12   :  { %v133_v7 = vld [vmem:[#allocation2 + $0x340] sm:$0xff]  ;;  %3888 = vmatpush1.bf16.msra.mxu0 %v5425_v5 }
  0x13   :  { %v5410_v10 = vcombine.high %v125_v6, %v133_v7  ;;  %v381_v11 = vld [vmem:[#allocation2 + $0xb00] sm:$0xff]  ;;  %3928 = vmatprep.subr.bf16.mxu1 %v5682_v8  ;;  %v5409_v18 = vcombine.low %v125_v6, %v133_v7 }
  0x14   :  { %v389_v12 = vld [vmem:[#allocation2 + $0xb40] sm:$0xff]  ;;  %3929 = vmatpush1.bf16.msra.mxu1 %v5681_v9 }
  0x15   :  { %v109_v13 = vld [vmem:[#allocation2 + $0x280] sm:$0xff]  ;;  %v5666_v14 = vcombine.high %v381_v11, %v389_v12  ;;  %3889 = vmatprep.subr.bf16.mxu0 %v5410_v10  ;;  %v5665_v19 = vcombine.low %v381_v11, %v389_v12 }
  0x16   :  { %v117_v15 = vld [vmem:[#allocation2 + $0x2c0] sm:$0xff]  ;;  %3890 = vmatpush1.bf16.msra.mxu0 %v5409_v18 }
  0x17   :  { %v365_v16 = vld [vmem:[#allocation2 + $0xa80] sm:$0xff]  ;;  %v5394_v20 = vcombine.high %v109_v13, %v117_v15  ;;  %3930 = vmatprep.subr.bf16.mxu1 %v5666_v14  ;;  %v5393_v26 = vcombine.low %v109_v13, %v117_v15 }
  0x18   :  { %v373_v17 = vld [vmem:[#allocation2 + $0xac0] sm:$0xff]  ;;  %3931 = vmatpush1.bf16.msra.mxu1 %v5665_v19 }
  0x19   :  { %v5650_v21 = vcombine.high %v365_v16, %v373_v17  ;;  %v93_v22 = vld [vmem:[#allocation2 + $0x200] sm:$0xff]  ;;  %3891 = vmatprep.subr.bf16.mxu0 %v5394_v20  ;;  %v5649_v27 = vcombine.low %v365_v16, %v373_v17 }
  0x1a   :  { %v101_v23 = vld [vmem:[#allocation2 + $0x240] sm:$0xff]  ;;  %3892 = vmatpush1.bf16.msra.mxu0 %v5393_v26 }
  0x1b   :  { %v349_v24 = vld [vmem:[#allocation2 + $0xa00] sm:$0xff]  ;;  %v5378_v28 = vcombine.high %v93_v22, %v101_v23  ;;  %3932 = vmatprep.subr.bf16.mxu1 %v5650_v21  ;;  %v5377_v34 = vcombine.low %v93_v22, %v101_v23 }
  0x1c   :  { %v357_v25 = vld [vmem:[#allocation2 + $0xa40] sm:$0xff]  ;;  %3933 = vmatpush1.bf16.msra.mxu1 %v5649_v27 }
  0x1d   :  { %v5634_v29 = vcombine.high %v349_v24, %v357_v25  ;;  %v77_v30 = vld [vmem:[#allocation2 + $0x180] sm:$0xff]  ;;  %3893 = vmatprep.subr.bf16.mxu0 %v5378_v28  ;;  %v5633_v35 = vcombine.low %v349_v24, %v357_v25 }
  0x1e   :  { %v85_v31 = vld [vmem:[#allocation2 + $0x1c0] sm:$0xff]  ;;  %3894 = vmatpush1.bf16.msra.mxu0 %v5377_v34 }
  0x1f   :  { %v333_v32 = vld [vmem:[#allocation2 + $0x980] sm:$0xff]  ;;  %v5362_v36 = vcombine.high %v77_v30, %v85_v31  ;;  %3934 = vmatprep.subr.bf16.mxu1 %v5634_v29  ;;  %v5361_v42 = vcombine.low %v77_v30, %v85_v31 }
  0x20   :  { %v341_v33 = vld [vmem:[#allocation2 + $0x9c0] sm:$0xff]  ;;  %3935 = vmatpush1.bf16.msra.mxu1 %v5633_v35 }
  0x21   :  { %v5618_v37 = vcombine.high %v333_v32, %v341_v33  ;;  %v61_v38 = vld [vmem:[#allocation2 + $0x100] sm:$0xff]  ;;  %3895 = vmatprep.subr.bf16.mxu0 %v5362_v36  ;;  %v5617_v43 = vcombine.low %v333_v32, %v341_v33 }
  0x22   :  { %v69_v39 = vld [vmem:[#allocation2 + $0x140] sm:$0xff]  ;;  %3896 = vmatpush1.bf16.msra.mxu0 %v5361_v42 }
  0x23   :  { %v317_v40 = vld [vmem:[#allocation2 + $0x900] sm:$0xff]  ;;  %v5346_v44 = vcombine.high %v61_v38, %v69_v39  ;;  %3936 = vmatprep.subr.bf16.mxu1 %v5618_v37  ;;  %v5345_v50 = vcombine.low %v61_v38, %v69_v39 }
  0x24   :  { %v325_v41 = vld [vmem:[#allocation2 + $0x940] sm:$0xff]  ;;  %3937 = vmatpush1.bf16.msra.mxu1 %v5617_v43 }
  0x25   :  { %v5602_v45 = vcombine.high %v317_v40, %v325_v41  ;;  %v45_v46 = vld [vmem:[#allocation2 + $0x80] sm:$0xff]  ;;  %3897 = vmatprep.subr.bf16.mxu0 %v5346_v44  ;;  %v5601_v51 = vcombine.low %v317_v40, %v325_v41 }
  0x26   :  { %v53_v47 = vld [vmem:[#allocation2 + $0xc0] sm:$0xff]  ;;  %3898 = vmatpush1.bf16.msra.mxu0 %v5345_v50 }
  0x27   :  { %v301_v48 = vld [vmem:[#allocation2 + $0x880] sm:$0xff]  ;;  %v5330_v52 = vcombine.high %v45_v46, %v53_v47  ;;  %3938 = vmatprep.subr.bf16.mxu1 %v5602_v45  ;;  %v5329_v62 = vcombine.low %v45_v46, %v53_v47 }
  0x28   :  { %v309_v49 = vld [vmem:[#allocation2 + $0x8c0] sm:$0xff]  ;;  %3939 = vmatpush1.bf16.msra.mxu1 %v5601_v51 }
  0x29   :  { %v6046_v53 = vld [vmem:[%s6418_s1] sm:$0x77]  ;;  %v5586_v55 = vcombine.high %v301_v48, %v309_v49  ;;  %3899 = vmatprep.subr.bf16.mxu0 %v5330_v52  ;;  %v5585_v63 = vcombine.low %v301_v48, %v309_v49 }
  0x2a   :  { %v29_v56 = vld [vmem:[#allocation2] sm:$0xff]  ;;  %v6055_v58 = vcombine.high %v6046_v53, %v6046_v53  ;;  %3900 = vmatpush1.bf16.msra.mxu0 %v5329_v62 }
  0x2b   :  { %v37_v57 = vld [vmem:[#allocation2 + $0x40] sm:$0xff]  ;;  %3940 = vmatprep.subr.bf16.mxu1 %v5586_v55 }
  0x2c   :  { %v285_v60 = vld [vmem:[#allocation2 + $0x800] sm:$0xff]  ;;  %3919 = vmatprep.mubr.bf16.mxu0 %v6055_v58  ;;  %v5314_v0 = vcombine.high %v29_v56, %v37_v57  ;;  %v5313_v6 = vcombine.low %v29_v56, %v37_v57  ;;  %3941 = vmatpush1.bf16.msra.mxu1 %v5585_v63 }
  0x2d   :  { %v293_v61 = vld [vmem:[#allocation2 + $0x840] sm:$0xff] }
  0x2e   :  { %v5570_v1 = vcombine.high %v285_v60, %v293_v61  ;;  %v269_v2 = vld [vmem:[#allocation2 + $0x780] sm:$0xff]  ;;  %3901 = vmatprep.subr.bf16.mxu0 %v5314_v0  ;;  %v5569_v7 = vcombine.low %v285_v60, %v293_v61 }
  0x2f   :  { %v277_v3 = vld [vmem:[#allocation2 + $0x7c0] sm:$0xff]  ;;  %3902 = vmatpush1.bf16.msra.mxu0 %v5313_v6 }
  0x30   :  { %v525_v4 = vld [vmem:[#allocation2 + $0xf80] sm:$0xff]  ;;  %v5554_v8 = vcombine.high %v269_v2, %v277_v3  ;;  %3942 = vmatprep.subr.bf16.mxu1 %v5570_v1  ;;  %v5553_v14 = vcombine.low %v269_v2, %v277_v3 }
  0x31   :  { %v533_v5 = vld [vmem:[#allocation2 + $0xfc0] sm:$0xff]  ;;  %3943 = vmatpush1.bf16.msra.mxu1 %v5569_v7 }
  0x32   :  { %v5810_v9 = vcombine.high %v525_v4, %v533_v5  ;;  %v253_v10 = vld [vmem:[#allocation2 + $0x700] sm:$0xff]  ;;  %3903 = vmatprep.subr.bf16.mxu0 %v5554_v8  ;;  %v5809_v15 = vcombine.low %v525_v4, %v533_v5  ;;  %v142_v8 = vld [vmem:[#allocation2 + $0x388] sm:$0xff] }
  0x33   :  { %v261_v11 = vld [vmem:[#allocation2 + $0x740] sm:$0xff]  ;;  %3904 = vmatpush2.bf16.msra.mxu0 %v5553_v14 }
  0x34   :  { %v509_v12 = vld [vmem:[#allocation2 + $0xf00] sm:$0xff]  ;;  %v5538_v16 = vcombine.high %v253_v10, %v261_v11  ;;  %3944 = vmatprep.subr.bf16.mxu1 %v5810_v9  ;;  %v5537_v22 = vcombine.low %v253_v10, %v261_v11  ;;  %v150_v9 = vld [vmem:[#allocation2 + $0x3c8] sm:$0xff] }
  0x35   :  { %v517_v13 = vld [vmem:[#allocation2 + $0xf40] sm:$0xff]  ;;  %3945 = vmatpush2.bf16.msra.mxu1 %v5809_v15 }
  0x36   :  { %v5794_v17 = vcombine.high %v509_v12, %v517_v13  ;;  %v237_v18 = vld [vmem:[#allocation2 + $0x680] sm:$0xff]  ;;  %3905 = vmatprep.subr.bf16.mxu0 %v5538_v16  ;;  %v5793_v23 = vcombine.low %v509_v12, %v517_v13  ;;  %v5428_v13 = vcombine.high %v142_v8, %v150_v9  ;;  %v6065_v16 = vcombine.low %v6046_v53, %v6046_v53  ;;  %v110_v53 = vld [vmem:[#allocation2 + $0x288] sm:$0xff] }
  0x37   :  { %v245_v19 = vld [vmem:[#allocation2 + $0x6c0] sm:$0xff]  ;;  %3906 = vmatpush2.bf16.msra.mxu0 %v5537_v22 }
  0x38   :  { %v493_v20 = vld [vmem:[#allocation2 + $0xe80] sm:$0xff]  ;;  %v5522_v24 = vcombine.high %v237_v18, %v245_v19  ;;  %3946 = vmatprep.subr.bf16.mxu1 %v5794_v17  ;;  %v5521_v30 = vcombine.low %v237_v18, %v245_v19  ;;  %v126_v17 = vld [vmem:[#allocation2 + $0x308] sm:$0xff]  ;;  %v6069_v19 = vcombine.low %v6051_v54, %v6051_v54 }
  0x39   :  { %v501_v21 = vld [vmem:[#allocation2 + $0xec0] sm:$0xff]  ;;  %3947 = vmatpush2.bf16.msra.mxu1 %v5793_v23  ;;  %v134_v18 = vld [vmem:[#allocation2 + $0x348] sm:$0xff] }
  0x3a   :  { %v5778_v25 = vcombine.high %v493_v20, %v501_v21  ;;  %v221_v26 = vld [vmem:[#allocation2 + $0x600] sm:$0xff]  ;;  %3907 = vmatprep.subr.bf16.mxu0 %v5522_v24  ;;  %v5777_v31 = vcombine.low %v493_v20, %v501_v21  ;;  %v5427_v21 = vcombine.low %v142_v8, %v150_v9  ;;  %v5412_v23 = vcombine.high %v126_v17, %v134_v18 }
  0x3b   :  { %v229_v27 = vld [vmem:[#allocation2 + $0x640] sm:$0xff]  ;;  %3908 = vmatpush2.bf16.msra.mxu0 %v5521_v30  ;;  %v5411_v54 = vcombine.low %v126_v17, %v134_v18 }
  0x3c   :  { %v477_v28 = vld [vmem:[#allocation2 + $0xe00] sm:$0xff]  ;;  %v5506_v32 = vcombine.high %v221_v26, %v229_v27  ;;  %3948 = vmatprep.subr.bf16.mxu1 %v5778_v25  ;;  %v5505_v38 = vcombine.low %v221_v26, %v229_v27  ;;  %v118_v26 = vld [vmem:[#allocation2 + $0x2c8] sm:$0xff] }
  0x3d   :  { %v485_v29 = vld [vmem:[#allocation2 + $0xe40] sm:$0xff]  ;;  %3949 = vmatpush2.bf16.msra.mxu1 %v5777_v31 }
  0x3e   :  { %v5762_v33 = vcombine.high %v477_v28, %v485_v29  ;;  %v205_v34 = vld [vmem:[#allocation2 + $0x580] sm:$0xff]  ;;  %3909 = vmatprep.subr.bf16.mxu0 %v5506_v32  ;;  %v5761_v39 = vcombine.low %v477_v28, %v485_v29  ;;  %v5396_v29 = vcombine.high %v110_v53, %v118_v26  ;;  %v6023_v32 = vmov 0  }
  0x3f   :  { %v213_v35 = vld [vmem:[#allocation2 + $0x5c0] sm:$0xff]  ;;  %3910 = vmatpush2.bf16.msra.mxu0 %v5505_v38 }
  0x40   :  { %v461_v36 = vld [vmem:[#allocation2 + $0xd80] sm:$0xff]  ;;  %v5490_v40 = vcombine.high %v205_v34, %v213_v35  ;;  %3950 = vmatprep.subr.bf16.mxu1 %v5762_v33  ;;  %v5489_v46 = vcombine.low %v205_v34, %v213_v35  ;;  %v94_v33 = vld [vmem:[#allocation2 + $0x208] sm:$0xff] }
  0x41   :  { %v469_v37 = vld [vmem:[#allocation2 + $0xdc0] sm:$0xff]  ;;  %3951 = vmatpush2.bf16.msra.mxu1 %v5761_v39  ;;  %v102_v34 = vld [vmem:[#allocation2 + $0x248] sm:$0xff] }
  0x42   :  { %v5746_v41 = vcombine.high %v461_v36, %v469_v37  ;;  %v189_v42 = vld [vmem:[#allocation2 + $0x500] sm:$0xff]  ;;  %3911 = vmatprep.subr.bf16.mxu0 %v5490_v40  ;;  %v5745_v47 = vcombine.low %v461_v36, %v469_v37  ;;  %v5395_v36 = vcombine.low %v110_v53, %v118_v26  ;;  %v5380_v38 = vcombine.high %v94_v33, %v102_v34 }
  0x43   :  { %v197_v43 = vld [vmem:[#allocation2 + $0x540] sm:$0xff]  ;;  %3912 = vmatpush2.bf16.msra.mxu0 %v5489_v46 }
  0x44   :  { %v445_v44 = vld [vmem:[#allocation2 + $0xd00] sm:$0xff]  ;;  %v5474_v48 = vcombine.high %v189_v42, %v197_v43  ;;  %3952 = vmatprep.subr.bf16.mxu1 %v5746_v41  ;;  %v5473_v56 = vcombine.low %v189_v42, %v197_v43  ;;  %v78_v41 = vld [vmem:[#allocation2 + $0x188] sm:$0xff] }
  0x45   :  { %v453_v45 = vld [vmem:[#allocation2 + $0xd40] sm:$0xff]  ;;  %3953 = vmatpush2.bf16.msra.mxu1 %v5745_v47  ;;  %v86_v42 = vld [vmem:[#allocation2 + $0x1c8] sm:$0xff] }
  0x46   :  { %v5730_v49 = vcombine.high %v445_v44, %v453_v45  ;;  %v173_v50 = vld [vmem:[#allocation2 + $0x480] sm:$0xff]  ;;  %3913 = vmatprep.subr.bf16.mxu0 %v5474_v48  ;;  %v5729_v57 = vcombine.low %v445_v44, %v453_v45  ;;  %v5379_v44 = vcombine.low %v94_v33, %v102_v34  ;;  %v5364_v46 = vcombine.high %v78_v41, %v86_v42 }
  0x47   :  { %v181_v51 = vld [vmem:[#allocation2 + $0x4c0] sm:$0xff]  ;;  %3914 = vmatpush2.bf16.msra.mxu0 %v5473_v56 }
  0x48   :  { %v429_v52 = vld [vmem:[#allocation2 + $0xc80] sm:$0xff]  ;;  %v5458_v60 = vcombine.high %v173_v50, %v181_v51  ;;  %3954 = vmatprep.subr.bf16.mxu1 %v5730_v49  ;;  %v5457_v2 = vcombine.low %v173_v50, %v181_v51  ;;  %v62_v49 = vld [vmem:[#allocation2 + $0x108] sm:$0xff] }
  0x49   :  { %v437_v55 = vld [vmem:[#allocation2 + $0xcc0] sm:$0xff]  ;;  %3955 = vmatpush2.bf16.msra.mxu1 %v5729_v57  ;;  %v70_v50 = vld [vmem:[#allocation2 + $0x148] sm:$0xff] }
  0x4a   :  { %v5714_v61 = vcombine.high %v429_v52, %v437_v55  ;;  %v157_v62 = vld [vmem:[#allocation2 + $0x400] sm:$0xff]  ;;  %3915 = vmatprep.subr.bf16.mxu0 %v5458_v60  ;;  %v5713_v3 = vcombine.low %v429_v52, %v437_v55  ;;  %v5363_v52 = vcombine.low %v78_v41, %v86_v42  ;;  %v5348_v56 = vcombine.high %v62_v49, %v70_v50 }
  0x4b   :  { %v165_v63 = vld [vmem:[#allocation2 + $0x440] sm:$0xff]  ;;  %3916 = vmatpush2.bf16.msra.mxu0 %v5457_v2 }
  0x4c   :  { %v413_v0 = vld [vmem:[#allocation2 + $0xc00] sm:$0xff]  ;;  %v5442_v4 = vcombine.high %v157_v62, %v165_v63  ;;  %3956 = vmatprep.subr.bf16.mxu1 %v5714_v61  ;;  %v5441_v10 = vcombine.low %v157_v62, %v165_v63  ;;  %v46_v61 = vld [vmem:[#allocation2 + $0x88] sm:$0xff] }
  0x4d   :  { %v421_v1 = vld [vmem:[#allocation2 + $0xc40] sm:$0xff]  ;;  %3957 = vmatpush2.bf16.msra.mxu1 %v5713_v3  ;;  %v54_v62 = vld [vmem:[#allocation2 + $0xc8] sm:$0xff] }
  0x4e   :  { %v5698_v5 = vcombine.high %v413_v0, %v421_v1  ;;  %v653_v6 = vld [vmem:[#allocation2 + $0x1380] sm:$0xff]  ;;  %3917 = vmatprep.subr.bf16.mxu0 %v5442_v4  ;;  %v5697_v11 = vcombine.low %v413_v0, %v421_v1  ;;  %v5347_v0 = vcombine.low %v62_v49, %v70_v50  ;;  %v5332_v2 = vcombine.high %v46_v61, %v54_v62 }
  0x4f   :  { %v661_v7 = vld [vmem:[#allocation2 + $0x13c0] sm:$0xff]  ;;  %3918 = vmatpush2.bf16.msra.mxu0 %v5441_v10  ;;  %v5331_v8 = vcombine.low %v46_v61, %v54_v62 }
  0x50   :  { %v5938_v12 = vcombine.high %v653_v6, %v661_v7  ;;  %3958 = vmatprep.subr.bf16.mxu1 %v5698_v5  ;;  %v637_v14 = vld [vmem:[#allocation2 + $0x1300] sm:$0xff]  ;;  %v5937_v20 = vcombine.low %v653_v6, %v661_v7  ;;  %v30_v5 = vld [vmem:[#allocation2 + $0x8] sm:$0xff] }
  0x51   :  { %v645_v15 = vld [vmem:[#allocation2 + $0x1340] sm:$0xff]  ;;  %3959 = vmatpush2.bf16.msra.mxu1 %v5697_v11  ;;  %v38_v6 = vld [vmem:[#allocation2 + $0x48] sm:$0xff] }
  0x52   :  { %3969 = vmatprep.subr.bf16.mxu0 %v5938_v12  ;;  %v5922_v22 = vcombine.high %v637_v14, %v645_v15  ;;  %4010 = vmatprep.subr.bf16.mxu1 %v5428_v13  ;;  %v621_v24 = vld [vmem:[#allocation2 + $0x1280] sm:$0xff]  ;;  %v5921_v27 = vcombine.low %v637_v14, %v645_v15  ;;  %v5316_v10 = vcombine.high %v30_v5, %v38_v6  ;;  %v398_v11 = vld [vmem:[#allocation2 + $0xb88] sm:$0xff] }
  0x53   :  { %v629_v25 = vld [vmem:[#allocation2 + $0x12c0] sm:$0xff]  ;;  %3920 = vmatmul.mubr.bf16.vlgmr.msra.gmra.mxu0 %v6065_v16  ;;  %v406_v12 = vld [vmem:[#allocation2 + $0xbc8] sm:$0xff]  ;;  %v5315_v17 = vcombine.low %v30_v5, %v38_v6 }
  0x54   :  { %3961 = vmatmul.mubr.bf16.vlgmr.msra.gmra.mxu1 %v6069_v19  ;;  %3970 = vmatpush1.bf16.msra.mxu0 %v5937_v20  ;;  %v5906_v28 = vcombine.high %v621_v24, %v629_v25  ;;  %v605_v30 = vld [vmem:[#allocation2 + $0x1200] sm:$0xff]  ;;  %v5905_v35 = vcombine.low %v621_v24, %v629_v25  ;;  %v270_v13 = vld [vmem:[#allocation2 + $0x788] sm:$0xff]  ;;  %v5684_v18 = vcombine.high %v398_v11, %v406_v12 }
  0x55   :  { %4011 = vmatpush1.bf16.msra.mxu1 %v5427_v21  ;;  %3971 = vmatprep.subr.bf16.mxu0 %v5922_v22  ;;  %v613_v31 = vld [vmem:[#allocation2 + $0x1240] sm:$0xff]  ;;  %v278_v14 = vld [vmem:[#allocation2 + $0x7c8] sm:$0xff]  ;;  %v5683_v53 = vcombine.low %v398_v11, %v406_v12 }
  0x56   :  { %4012 = vmatprep.subr.bf16.mxu1 %v5412_v23  ;;  %4001 = vmatprep.mubr.bf16.mxu0 %v6023_v32  ;;  %v5890_v37 = vcombine.high %v605_v30, %v613_v31  ;;  %v589_v39 = vld [vmem:[#allocation2 + $0x1180] sm:$0xff]  ;;  %v5889_v43 = vcombine.low %v605_v30, %v613_v31  ;;  %v5556_v20 = vcombine.high %v270_v13, %v278_v14  ;;  %v382_v21 = vld [vmem:[#allocation2 + $0xb08] sm:$0xff]  ;;  %v6078_v23 = vld [vmem:[%s6418_s1 + $0x10] ss:$0 sps:$4 sm:$0x77]  }
  0x57   :  { %4042 = vmatprep.mubr.bf16.mxu1 %v6055_v58  ;;  %v597_v40 = vld [vmem:[#allocation2 + $0x11c0] sm:$0xff]  ;;  %v390_v22 = vld [vmem:[#allocation2 + $0xb48] sm:$0xff]  ;;  %v5555_v26 = vcombine.low %v270_v13, %v278_v14 }
  0x58   :  { %3972 = vmatpush1.bf16.msra.mxu0 %v5921_v27  ;;  %v5874_v45 = vcombine.high %v589_v39, %v597_v40  ;;  %v573_v47 = vld [vmem:[#allocation2 + $0x1100] sm:$0xff]  ;;  %v5873_v51 = vcombine.low %v589_v39, %v597_v40  ;;  %v254_v24 = vld [vmem:[#allocation2 + $0x708] sm:$0xff]  ;;  %v5668_v27 = vcombine.high %v382_v21, %v390_v22  ;;  %v5667_v33 = vcombine.low %v382_v21, %v390_v22 }
  0x59   :  { %4013 = vmatpush1.bf16.msra.mxu1 %v5411_v54  ;;  %3973 = vmatprep.subr.bf16.mxu0 %v5906_v28  ;;  %v581_v48 = vld [vmem:[#allocation2 + $0x1140] sm:$0xff]  ;;  %v262_v25 = vld [vmem:[#allocation2 + $0x748] sm:$0xff] }
  0x5a   :  { %4014 = vmatprep.subr.bf16.mxu1 %v5396_v29  ;;  %v5858_v55 = vcombine.high %v573_v47, %v581_v48  ;;  %v557_v57 = vld [vmem:[#allocation2 + $0x1080] sm:$0xff]  ;;  %v5857_v63 = vcombine.low %v573_v47, %v581_v48  ;;  %v5540_v54 = vcombine.high %v254_v24, %v262_v25  ;;  %v366_v28 = vld [vmem:[#allocation2 + $0xa88] sm:$0xff]  ;;  %v5539_v34 = vcombine.low %v254_v24, %v262_v25 }
  0x5b   :  { %v565_v60 = vld [vmem:[#allocation2 + $0x10c0] sm:$0xff]  ;;  %v374_v29 = vld [vmem:[#allocation2 + $0xac8] sm:$0xff] }
  0x5c   :  { %3974 = vmatpush1.bf16.msra.mxu0 %v5905_v35  ;;  %v5842_v1 = vcombine.high %v557_v57, %v565_v60  ;;  %v541_v3 = vld [vmem:[#allocation2 + $0x1000] sm:$0xff]  ;;  %v5841_v7 = vcombine.low %v557_v57, %v565_v60  ;;  %v238_v30 = vld [vmem:[#allocation2 + $0x688] sm:$0xff]  ;;  %v5652_v35 = vcombine.high %v366_v28, %v374_v29  ;;  %v5651_v41 = vcombine.low %v366_v28, %v374_v29 }
  0x5d   :  { %4015 = vmatpush1.bf16.msra.mxu1 %v5395_v36  ;;  %3975 = vmatprep.subr.bf16.mxu0 %v5890_v37  ;;  %v549_v4 = vld [vmem:[#allocation2 + $0x1040] sm:$0xff]  ;;  %v246_v31 = vld [vmem:[#allocation2 + $0x6c8] sm:$0xff] }
  0x5e   :  { %4016 = vmatprep.subr.bf16.mxu1 %v5380_v38  ;;  %v5826_v9 = vcombine.high %v541_v3, %v549_v4  ;;  %v5825_v15 = vcombine.low %v541_v3, %v549_v4  ;;  %v5524_v36 = vcombine.high %v238_v30, %v246_v31  ;;  %v350_v37 = vld [vmem:[#allocation2 + $0xa08] sm:$0xff]  ;;  %v5523_v42 = vcombine.low %v238_v30, %v246_v31 }
  0x5f   :  { %v358_v38 = vld [vmem:[#allocation2 + $0xa48] sm:$0xff] }
  0x60   :  { %3976 = vmatpush1.bf16.msra.mxu0 %v5889_v43  ;;  %v222_v39 = vld [vmem:[#allocation2 + $0x608] sm:$0xff]  ;;  %v5636_v43 = vcombine.high %v350_v37, %v358_v38  ;;  %v5635_v49 = vcombine.low %v350_v37, %v358_v38 }
  0x61   :  { %4017 = vmatpush1.bf16.msra.mxu1 %v5379_v44  ;;  %3977 = vmatprep.subr.bf16.mxu0 %v5874_v45  ;;  %v230_v40 = vld [vmem:[#allocation2 + $0x648] sm:$0xff] }
  0x62   :  { %4018 = vmatprep.subr.bf16.mxu1 %v5364_v46  ;;  %v5508_v44 = vcombine.high %v222_v39, %v230_v40  ;;  %v334_v45 = vld [vmem:[#allocation2 + $0x988] sm:$0xff]  ;;  %v5507_v50 = vcombine.low %v222_v39, %v230_v40 }
  0x63   :  { %v342_v46 = vld [vmem:[#allocation2 + $0x9c8] sm:$0xff] }
  0x64   :  { %3978 = vmatpush1.bf16.msra.mxu0 %v5873_v51  ;;  %v206_v47 = vld [vmem:[#allocation2 + $0x588] sm:$0xff]  ;;  %v5620_v51 = vcombine.high %v334_v45, %v342_v46  ;;  %v5619_v61 = vcombine.low %v334_v45, %v342_v46 }
  0x65   :  { %4019 = vmatpush1.bf16.msra.mxu1 %v5363_v52  ;;  %3979 = vmatprep.subr.bf16.mxu0 %v5858_v55  ;;  %v214_v48 = vld [vmem:[#allocation2 + $0x5c8] sm:$0xff] }
  0x66   :  { %4020 = vmatprep.subr.bf16.mxu1 %v5348_v56  ;;  %v5492_v52 = vcombine.high %v206_v47, %v214_v48  ;;  %v318_v55 = vld [vmem:[#allocation2 + $0x908] sm:$0xff]  ;;  %v5491_v62 = vcombine.low %v206_v47, %v214_v48 }
  0x67   :  { %v326_v56 = vld [vmem:[#allocation2 + $0x948] sm:$0xff] }
  0x68   :  { %3980 = vmatpush1.bf16.msra.mxu0 %v5857_v63  ;;  %v190_v57 = vld [vmem:[#allocation2 + $0x508] sm:$0xff]  ;;  %v5604_v63 = vcombine.high %v318_v55, %v326_v56  ;;  %v5603_v5 = vcombine.low %v318_v55, %v326_v56 }
  0x69   :  { %4021 = vmatpush1.bf16.msra.mxu1 %v5347_v0  ;;  %3981 = vmatprep.subr.bf16.mxu0 %v5842_v1  ;;  %v198_v60 = vld [vmem:[#allocation2 + $0x548] sm:$0xff] }
  0x6a   :  { %4022 = vmatprep.subr.bf16.mxu1 %v5332_v2  ;;  %v5476_v0 = vcombine.high %v190_v57, %v198_v60  ;;  %v302_v1 = vld [vmem:[#allocation2 + $0x888] sm:$0xff]  ;;  %v5475_v6 = vcombine.low %v190_v57, %v198_v60 }
  0x6b   :  { %v310_v2 = vld [vmem:[#allocation2 + $0x8c8] sm:$0xff] }
  0x6c   :  { %3982 = vmatpush1.bf16.msra.mxu0 %v5841_v7  ;;  %v174_v3 = vld [vmem:[#allocation2 + $0x488] sm:$0xff]  ;;  %v5588_v7 = vcombine.high %v302_v1, %v310_v2  ;;  %v5587_v13 = vcombine.low %v302_v1, %v310_v2 }
  0x6d   :  { %4023 = vmatpush1.bf16.msra.mxu1 %v5331_v8  ;;  %3983 = vmatprep.subr.bf16.mxu0 %v5826_v9  ;;  %v182_v4 = vld [vmem:[#allocation2 + $0x4c8] sm:$0xff] }
  0x6e   :  { %4024 = vmatprep.subr.bf16.mxu1 %v5316_v10  ;;  %v5460_v8 = vcombine.high %v174_v3, %v182_v4  ;;  %v286_v9 = vld [vmem:[#allocation2 + $0x808] sm:$0xff]  ;;  %v5459_v14 = vcombine.low %v174_v3, %v182_v4 }
  0x6f   :  { %v294_v10 = vld [vmem:[#allocation2 + $0x848] sm:$0xff] }
  0x70   :  { %3984 = vmatpush1.bf16.msra.mxu0 %v5825_v15  ;;  %v158_v11 = vld [vmem:[#allocation2 + $0x408] sm:$0xff]  ;;  %v5572_v15 = vcombine.high %v286_v9, %v294_v10  ;;  %v5571_v24 = vcombine.low %v286_v9, %v294_v10 }
  0x71   :  { %4025 = vmatpush1.bf16.msra.mxu1 %v5315_v17  ;;  %4051 = vmatprep.subr.bf16.mxu0 %v5684_v18  ;;  %v166_v12 = vld [vmem:[#allocation2 + $0x448] sm:$0xff] }
  0x72   :  { %4026 = vmatprep.subr.bf16.mxu1 %v5556_v20  ;;  %v5444_v17 = vcombine.high %v158_v11, %v166_v12  ;;  %v526_v18 = vld [vmem:[#allocation2 + $0xf88] sm:$0xff]  ;;  %v5443_v25 = vcombine.low %v158_v11, %v166_v12 }
  0x73   :  { %4002 = vmatmul.mubr.bf16.vlgmr.msra.gmra.mxu0 %v6078_v23  ;;  %v534_v20 = vld [vmem:[#allocation2 + $0xfc8] sm:$0xff] }
  0x74   :  { %4052 = vmatpush1.bf16.msra.mxu0 %v5683_v53  ;;  %4083 = vmatprep.mubr.bf16.mxu0 %v6059_v59  ;;  %v654_v21 = vld [vmem:[#allocation2 + $0x1388] sm:$0xff]  ;;  %v5812_v53 = vcombine.high %v526_v18, %v534_v20  ;;  %v5811_v30 = vcombine.low %v526_v18, %v534_v20 }
  0x75   :  { %4027 = vmatpush2.bf16.msra.mxu1 %v5555_v26  ;;  %4053 = vmatprep.subr.bf16.mxu0 %v5668_v27  ;;  %v662_v22 = vld [vmem:[#allocation2 + $0x13c8] sm:$0xff] }
  0x76   :  { %4028 = vmatprep.subr.bf16.mxu1 %v5540_v54  ;;  %v5940_v26 = vcombine.high %v654_v21, %v662_v22  ;;  %v510_v27 = vld [vmem:[#allocation2 + $0xf08] sm:$0xff]  ;;  %v5939_v31 = vcombine.low %v654_v21, %v662_v22 }
  0x77   :  { %v518_v54 = vld [vmem:[#allocation2 + $0xf48] sm:$0xff] }
  0x78   :  { %4054 = vmatpush1.bf16.msra.mxu0 %v5667_v33  ;;  %v638_v28 = vld [vmem:[#allocation2 + $0x1308] sm:$0xff]  ;;  %v5796_v33 = vcombine.high %v510_v27, %v518_v54  ;;  %v5795_v39 = vcombine.low %v510_v27, %v518_v54  ;;  %v399_v27 = vld [vmem:[#allocation2 + $0xb90] sm:$0xff] }
  0x79   :  { %4029 = vmatpush2.bf16.msra.mxu1 %v5539_v34  ;;  %4055 = vmatprep.subr.bf16.mxu0 %v5652_v35  ;;  %v646_v29 = vld [vmem:[#allocation2 + $0x1348] sm:$0xff]  ;;  %v407_v54 = vld [vmem:[#allocation2 + $0xbd0] sm:$0xff] }
  0x7a   :  { %4030 = vmatprep.subr.bf16.mxu1 %v5524_v36  ;;  %v5924_v34 = vcombine.high %v638_v28, %v646_v29  ;;  %v494_v35 = vld [vmem:[#allocation2 + $0xe88] sm:$0xff]  ;;  %v5923_v40 = vcombine.low %v638_v28, %v646_v29 }
  0x7b   :  { %v502_v36 = vld [vmem:[#allocation2 + $0xec8] sm:$0xff] }
  0x7c   :  { %4056 = vmatpush1.bf16.msra.mxu0 %v5651_v41  ;;  %v622_v37 = vld [vmem:[#allocation2 + $0x1288] sm:$0xff]  ;;  %v5780_v41 = vcombine.high %v494_v35, %v502_v36  ;;  %v5779_v47 = vcombine.low %v494_v35, %v502_v36  ;;  %v383_v35 = vld [vmem:[#allocation2 + $0xb10] sm:$0xff] }
  0x7d   :  { %4031 = vmatpush2.bf16.msra.mxu1 %v5523_v42  ;;  %4057 = vmatprep.subr.bf16.mxu0 %v5636_v43  ;;  %v630_v38 = vld [vmem:[#allocation2 + $0x12c8] sm:$0xff]  ;;  %v391_v36 = vld [vmem:[#allocation2 + $0xb50] sm:$0xff] }
  0x7e   :  { %4032 = vmatprep.subr.bf16.mxu1 %v5508_v44  ;;  %v5908_v42 = vcombine.high %v622_v37, %v630_v38  ;;  %v478_v43 = vld [vmem:[#allocation2 + $0xe08] sm:$0xff]  ;;  %v5907_v48 = vcombine.low %v622_v37, %v630_v38  ;;  %v5685_v38 = vcombine.low %v399_v27, %v407_v54 }
  0x7f   :  { %v486_v44 = vld [vmem:[#allocation2 + $0xe48] sm:$0xff] }
  0x80   :  { %4058 = vmatpush1.bf16.msra.mxu0 %v5635_v49  ;;  %v606_v45 = vld [vmem:[#allocation2 + $0x1208] sm:$0xff]  ;;  %v5764_v49 = vcombine.high %v478_v43, %v486_v44  ;;  %v5763_v57 = vcombine.low %v478_v43, %v486_v44  ;;  %v367_v43 = vld [vmem:[#allocation2 + $0xa90] sm:$0xff] }
  0x81   :  { %4033 = vmatpush2.bf16.msra.mxu1 %v5507_v50  ;;  %4059 = vmatprep.subr.bf16.mxu0 %v5620_v51  ;;  %v614_v46 = vld [vmem:[#allocation2 + $0x1248] sm:$0xff]  ;;  %v375_v44 = vld [vmem:[#allocation2 + $0xad0] sm:$0xff] }
  0x82   :  { %4034 = vmatprep.subr.bf16.mxu1 %v5492_v52  ;;  %v5892_v50 = vcombine.high %v606_v45, %v614_v46  ;;  %v462_v51 = vld [vmem:[#allocation2 + $0xd88] sm:$0xff]  ;;  %v5891_v60 = vcombine.low %v606_v45, %v614_v46  ;;  %v5669_v46 = vcombine.low %v383_v35, %v391_v36 }
  0x83   :  { %v470_v52 = vld [vmem:[#allocation2 + $0xdc8] sm:$0xff] }
  0x84   :  { %4060 = vmatpush1.bf16.msra.mxu0 %v5619_v61  ;;  %v590_v55 = vld [vmem:[#allocation2 + $0x1188] sm:$0xff]  ;;  %v5748_v61 = vcombine.high %v462_v51, %v470_v52  ;;  %v5747_v3 = vcombine.low %v462_v51, %v470_v52  ;;  %v351_v51 = vld [vmem:[#allocation2 + $0xa10] sm:$0xff] }
  0x85   :  { %4035 = vmatpush2.bf16.msra.mxu1 %v5491_v62  ;;  %4061 = vmatprep.subr.bf16.mxu0 %v5604_v63  ;;  %v598_v56 = vld [vmem:[#allocation2 + $0x11c8] sm:$0xff]  ;;  %v359_v52 = vld [vmem:[#allocation2 + $0xa50] sm:$0xff] }
  0x86   :  { %4036 = vmatprep.subr.bf16.mxu1 %v5476_v0  ;;  %v5876_v62 = vcombine.high %v590_v55, %v598_v56  ;;  %v446_v63 = vld [vmem:[#allocation2 + $0xd08] sm:$0xff]  ;;  %v5875_v4 = vcombine.low %v590_v55, %v598_v56  ;;  %v5653_v56 = vcombine.low %v367_v43, %v375_v44 }
  0x87   :  { %v454_v0 = vld [vmem:[#allocation2 + $0xd48] sm:$0xff] }
  0x88   :  { %4062 = vmatpush1.bf16.msra.mxu0 %v5603_v5  ;;  %v574_v1 = vld [vmem:[#allocation2 + $0x1108] sm:$0xff]  ;;  %v5732_v5 = vcombine.high %v446_v63, %v454_v0  ;;  %v5731_v11 = vcombine.low %v446_v63, %v454_v0  ;;  %v335_v63 = vld [vmem:[#allocation2 + $0x990] sm:$0xff] }
  0x89   :  { %4037 = vmatpush2.bf16.msra.mxu1 %v5475_v6  ;;  %4063 = vmatprep.subr.bf16.mxu0 %v5588_v7  ;;  %v582_v2 = vld [vmem:[#allocation2 + $0x1148] sm:$0xff]  ;;  %v343_v0 = vld [vmem:[#allocation2 + $0x9d0] sm:$0xff] }
  0x8a   :  { %4038 = vmatprep.subr.bf16.mxu1 %v5460_v8  ;;  %v5860_v6 = vcombine.high %v574_v1, %v582_v2  ;;  %v430_v7 = vld [vmem:[#allocation2 + $0xc88] sm:$0xff]  ;;  %v5859_v12 = vcombine.low %v574_v1, %v582_v2  ;;  %v5637_v2 = vcombine.low %v351_v51, %v359_v52 }
  0x8b   :  { %v438_v8 = vld [vmem:[#allocation2 + $0xcc8] sm:$0xff] }
  0x8c   :  { %4064 = vmatpush1.bf16.msra.mxu0 %v5587_v13  ;;  %v558_v9 = vld [vmem:[#allocation2 + $0x1088] sm:$0xff]  ;;  %v5716_v13 = vcombine.high %v430_v7, %v438_v8  ;;  %v5715_v21 = vcombine.low %v430_v7, %v438_v8  ;;  %v319_v7 = vld [vmem:[#allocation2 + $0x910] sm:$0xff] }
  0x8d   :  { %4039 = vmatpush2.bf16.msra.mxu1 %v5459_v14  ;;  %4065 = vmatprep.subr.bf16.mxu0 %v5572_v15  ;;  %v566_v10 = vld [vmem:[#allocation2 + $0x10c8] sm:$0xff]  ;;  %v327_v8 = vld [vmem:[#allocation2 + $0x950] sm:$0xff] }
  0x8e   :  { %4040 = vmatprep.subr.bf16.mxu1 %v5444_v17  ;;  %v5844_v14 = vcombine.high %v558_v9, %v566_v10  ;;  %v414_v15 = vld [vmem:[#allocation2 + $0xc08] sm:$0xff]  ;;  %v5843_v22 = vcombine.low %v558_v9, %v566_v10  ;;  %v5621_v10 = vcombine.low %v335_v63, %v343_v0 }
  0x8f   :  { %v422_v17 = vld [vmem:[#allocation2 + $0xc48] sm:$0xff] }
  0x90   :  { %4066 = vmatpush1.bf16.msra.mxu0 %v5571_v24  ;;  %v542_v18 = vld [vmem:[#allocation2 + $0x1008] sm:$0xff]  ;;  %v5700_v24 = vcombine.high %v414_v15, %v422_v17  ;;  %v5699_v28 = vcombine.low %v414_v15, %v422_v17  ;;  %v303_v15 = vld [vmem:[#allocation2 + $0x890] sm:$0xff] }
  0x91   :  { %4041 = vmatpush2.bf16.msra.mxu1 %v5443_v25  ;;  %4067 = vmatprep.subr.bf16.mxu0 %v5812_v53  ;;  %v550_v20 = vld [vmem:[#allocation2 + $0x1048] sm:$0xff]  ;;  %v143_v53 = vld [vmem:[#allocation2 + $0x390] sm:$0xff] }
  0x92   :  { %4092 = vmatprep.subr.bf16.mxu1 %v5940_v26  ;;  %v5828_v25 = vcombine.high %v542_v18, %v550_v20  ;;  %v151_v26 = vld [vmem:[#allocation2 + $0x3d0] sm:$0xff]  ;;  %v5827_v29 = vcombine.low %v542_v18, %v550_v20  ;;  %v5605_v20 = vcombine.low %v319_v7, %v327_v8 }
  0x93   :  { %v5429_v37 = vcombine.low %v143_v53, %v151_v26  ;;  %v311_v17 = vld [vmem:[#allocation2 + $0x8d0] sm:$0xff] }
  0x94   :  { %4043 = vmatmul.mubr.bf16.vlgmr.msra.gmra.mxu1 %v6065_v16  ;;  %4068 = vmatpush2.bf16.msra.mxu0 %v5811_v30  ;;  %v5430_v30 = vcombine.high %v143_v53, %v151_v26  ;;  %v287_v53 = vld [vmem:[#allocation2 + $0x810] sm:$0xff] }
  0x95   :  { %4093 = vmatpush1.bf16.msra.mxu1 %v5939_v31  ;;  %4069 = vmatprep.subr.bf16.mxu0 %v5796_v33  ;;  %v5686_v31 = vcombine.high %v399_v27, %v407_v54  ;;  %v127_v33 = vld [vmem:[#allocation2 + $0x310] sm:$0xff]  ;;  %v5589_v54 = vcombine.low %v303_v15, %v311_v17 }
  0x96   :  { %4094 = vmatprep.subr.bf16.mxu1 %v5924_v34  ;;  %4124 = vmatprep.mubr.bf16.mxu1 %v6023_v32  ;;  %v135_v34 = vld [vmem:[#allocation2 + $0x350] sm:$0xff] }
  0x97   :  { %v5413_v45 = vcombine.low %v127_v33, %v135_v34  ;;  %v295_v26 = vld [vmem:[#allocation2 + $0x850] sm:$0xff] }
  0x98   :  { %4070 = vmatpush2.bf16.msra.mxu0 %v5795_v39  ;;  %v5414_v39 = vcombine.high %v127_v33, %v135_v34  ;;  %v527_v33 = vld [vmem:[#allocation2 + $0xf90] sm:$0xff] }
  0x99   :  { %4095 = vmatpush1.bf16.msra.mxu1 %v5923_v40  ;;  %4071 = vmatprep.subr.bf16.mxu0 %v5780_v41  ;;  %v5670_v40 = vcombine.high %v383_v35, %v391_v36  ;;  %v111_v41 = vld [vmem:[#allocation2 + $0x290] sm:$0xff]  ;;  %v5573_v36 = vcombine.low %v287_v53, %v295_v26 }
  0x9a   :  { %4096 = vmatprep.subr.bf16.mxu1 %v5908_v42  ;;  %v119_v42 = vld [vmem:[#allocation2 + $0x2d0] sm:$0xff] }
  0x9b   :  { %v5397_v55 = vcombine.low %v111_v41, %v119_v42  ;;  %v535_v34 = vld [vmem:[#allocation2 + $0xfd0] sm:$0xff] }
  0x9c   :  { %4072 = vmatpush2.bf16.msra.mxu0 %v5779_v47  ;;  %v5398_v47 = vcombine.high %v111_v41, %v119_v42  ;;  %v511_v41 = vld [vmem:[#allocation2 + $0xf10] sm:$0xff] }
  0x9d   :  { %4097 = vmatpush1.bf16.msra.mxu1 %v5907_v48  ;;  %4073 = vmatprep.subr.bf16.mxu0 %v5764_v49  ;;  %v5654_v48 = vcombine.high %v367_v43, %v375_v44  ;;  %v95_v49 = vld [vmem:[#allocation2 + $0x210] sm:$0xff]  ;;  %v5813_v44 = vcombine.low %v527_v33, %v535_v34 }
  0x9e   :  { %4098 = vmatprep.subr.bf16.mxu1 %v5892_v50  ;;  %v103_v50 = vld [vmem:[#allocation2 + $0x250] sm:$0xff] }
  0x9f   :  { %v5381_v1 = vcombine.low %v95_v49, %v103_v50  ;;  %v519_v42 = vld [vmem:[#allocation2 + $0xf50] sm:$0xff] }
  0xa0   :  { %4074 = vmatpush2.bf16.msra.mxu0 %v5763_v57  ;;  %v5382_v57 = vcombine.high %v95_v49, %v103_v50  ;;  %v495_v49 = vld [vmem:[#allocation2 + $0xe90] sm:$0xff] }
  0xa1   :  { %4099 = vmatpush1.bf16.msra.mxu1 %v5891_v60  ;;  %4075 = vmatprep.subr.bf16.mxu0 %v5748_v61  ;;  %v5638_v60 = vcombine.high %v351_v51, %v359_v52  ;;  %v79_v61 = vld [vmem:[#allocation2 + $0x190] sm:$0xff]  ;;  %v5797_v52 = vcombine.low %v511_v41, %v519_v42 }
  0xa2   :  { %4100 = vmatprep.subr.bf16.mxu1 %v5876_v62  ;;  %v87_v62 = vld [vmem:[#allocation2 + $0x1d0] sm:$0xff] }
  0xa3   :  { %v5365_v9 = vcombine.low %v79_v61, %v87_v62  ;;  %v503_v50 = vld [vmem:[#allocation2 + $0xed0] sm:$0xff] }
  0xa4   :  { %4076 = vmatpush2.bf16.msra.mxu0 %v5747_v3  ;;  %v5366_v3 = vcombine.high %v79_v61, %v87_v62  ;;  %v479_v61 = vld [vmem:[#allocation2 + $0xe10] sm:$0xff] }
  0xa5   :  { %4101 = vmatpush1.bf16.msra.mxu1 %v5875_v4  ;;  %4077 = vmatprep.subr.bf16.mxu0 %v5732_v5  ;;  %v5622_v4 = vcombine.high %v335_v63, %v343_v0  ;;  %v63_v5 = vld [vmem:[#allocation2 + $0x110] sm:$0xff]  ;;  %v5781_v0 = vcombine.low %v495_v49, %v503_v50 }
  0xa6   :  { %4102 = vmatprep.subr.bf16.mxu1 %v5860_v6  ;;  %v71_v6 = vld [vmem:[#allocation2 + $0x150] sm:$0xff] }
  0xa7   :  { %v5349_v18 = vcombine.low %v63_v5, %v71_v6  ;;  %v487_v62 = vld [vmem:[#allocation2 + $0xe50] sm:$0xff] }
  0xa8   :  { %4078 = vmatpush2.bf16.msra.mxu0 %v5731_v11  ;;  %v5350_v11 = vcombine.high %v63_v5, %v71_v6  ;;  %v463_v5 = vld [vmem:[#allocation2 + $0xd90] sm:$0xff] }
  0xa9   :  { %4103 = vmatpush1.bf16.msra.mxu1 %v5859_v12  ;;  %4079 = vmatprep.subr.bf16.mxu0 %v5716_v13  ;;  %v5606_v12 = vcombine.high %v319_v7, %v327_v8  ;;  %v47_v13 = vld [vmem:[#allocation2 + $0x90] sm:$0xff]  ;;  %v5765_v8 = vcombine.low %v479_v61, %v487_v62 }
  0xaa   :  { %4104 = vmatprep.subr.bf16.mxu1 %v5844_v14  ;;  %v55_v14 = vld [vmem:[#allocation2 + $0xd0] sm:$0xff] }
  0xab   :  { %v5333_v27 = vcombine.low %v47_v13, %v55_v14  ;;  %v471_v6 = vld [vmem:[#allocation2 + $0xdd0] sm:$0xff] }
  0xac   :  { %4080 = vmatpush2.bf16.msra.mxu0 %v5715_v21  ;;  %v5334_v21 = vcombine.high %v47_v13, %v55_v14  ;;  %v447_v13 = vld [vmem:[#allocation2 + $0xd10] sm:$0xff] }
  0xad   :  { %4105 = vmatpush1.bf16.msra.mxu1 %v5843_v22  ;;  %4081 = vmatprep.subr.bf16.mxu0 %v5700_v24  ;;  %v5590_v22 = vcombine.high %v303_v15, %v311_v17  ;;  %v31_v24 = vld [vmem:[#allocation2 + $0x10] sm:$0xff]  ;;  %v5749_v17 = vcombine.low %v463_v5, %v471_v6 }
  0xae   :  { %4106 = vmatprep.subr.bf16.mxu1 %v5828_v25  ;;  %v39_v25 = vld [vmem:[#allocation2 + $0x50] sm:$0xff] }
  0xaf   :  { %v5317_v35 = vcombine.low %v31_v24, %v39_v25  ;;  %v455_v14 = vld [vmem:[#allocation2 + $0xd50] sm:$0xff] }
  0xb0   :  { %4082 = vmatpush2.bf16.msra.mxu0 %v5699_v28  ;;  %v5318_v28 = vcombine.high %v31_v24, %v39_v25  ;;  %v431_v24 = vld [vmem:[#allocation2 + $0xc90] sm:$0xff] }
  0xb1   :  { %4107 = vmatpush1.bf16.msra.mxu1 %v5827_v29  ;;  %4133 = vmatprep.subr.bf16.mxu0 %v5430_v30  ;;  %v5574_v29 = vcombine.high %v287_v53, %v295_v26  ;;  %v271_v30 = vld [vmem:[#allocation2 + $0x790] sm:$0xff]  ;;  %v5733_v26 = vcombine.low %v447_v13, %v455_v14 }
  0xb2   :  { %4174 = vmatprep.subr.bf16.mxu1 %v5686_v31  ;;  %v279_v31 = vld [vmem:[#allocation2 + $0x7d0] sm:$0xff] }
  0xb3   :  { %4084 = vmatmul.mubr.bf16.vlgmr.msra.gmra.mxu0 %v6069_v19  ;;  %v5557_v43 = vcombine.low %v271_v30, %v279_v31  ;;  %v439_v25 = vld [vmem:[#allocation2 + $0xcd0] sm:$0xff] }
  0xb4   :  { %4125 = vmatmul.mubr.bf16.vlgmr.msra.gmra.mxu1 %v6078_v23  ;;  %4134 = vmatpush1.bf16.msra.mxu0 %v5429_v37  ;;  %v5558_v37 = vcombine.high %v271_v30, %v279_v31  ;;  %v415_v30 = vld [vmem:[#allocation2 + $0xc10] sm:$0xff] }
  0xb5   :  { %4175 = vmatpush1.bf16.msra.mxu1 %v5685_v38  ;;  %4135 = vmatprep.subr.bf16.mxu0 %v5414_v39  ;;  %v5814_v38 = vcombine.high %v527_v33, %v535_v34  ;;  %v255_v39 = vld [vmem:[#allocation2 + $0x710] sm:$0xff]  ;;  %v5717_v34 = vcombine.low %v431_v24, %v439_v25 }
  0xb6   :  { %4176 = vmatprep.subr.bf16.mxu1 %v5670_v40  ;;  %4165 = vmatprep.mubr.bf16.mxu0 %v6055_v58  ;;  %v263_v40 = vld [vmem:[#allocation2 + $0x750] sm:$0xff] }
  0xb7   :  { %4206 = vmatprep.mubr.bf16.mxu1 %v6059_v59  ;;  %v5541_v51 = vcombine.low %v255_v39, %v263_v40  ;;  %v423_v31 = vld [vmem:[#allocation2 + $0xc50] sm:$0xff] }
  0xb8   :  { %4136 = vmatpush1.bf16.msra.mxu0 %v5413_v45  ;;  %v5542_v45 = vcombine.high %v255_v39, %v263_v40  ;;  %v144_v39 = vld [vmem:[#allocation2 + $0x398] sm:$0xff] }
  0xb9   :  { %4177 = vmatpush1.bf16.msra.mxu1 %v5669_v46  ;;  %4137 = vmatprep.subr.bf16.mxu0 %v5398_v47  ;;  %v5798_v46 = vcombine.high %v511_v41, %v519_v42  ;;  %v239_v47 = vld [vmem:[#allocation2 + $0x690] sm:$0xff]  ;;  %v152_v40 = vld [vmem:[#allocation2 + $0x3d8] sm:$0xff]  ;;  %v5701_v42 = vcombine.low %v415_v30, %v423_v31 }
  0xba   :  { %4178 = vmatprep.subr.bf16.mxu1 %v5654_v48  ;;  %v247_v48 = vld [vmem:[#allocation2 + $0x6d0] sm:$0xff] }
  0xbb   :  { %v5525_v63 = vcombine.low %v239_v47, %v247_v48 }
  0xbc   :  { %4138 = vmatpush1.bf16.msra.mxu0 %v5397_v55  ;;  %v5526_v55 = vcombine.high %v239_v47, %v247_v48  ;;  %v128_v47 = vld [vmem:[#allocation2 + $0x318] sm:$0xff] }
  0xbd   :  { %4179 = vmatpush1.bf16.msra.mxu1 %v5653_v56  ;;  %4139 = vmatprep.subr.bf16.mxu0 %v5382_v57  ;;  %v5782_v56 = vcombine.high %v495_v49, %v503_v50  ;;  %v223_v57 = vld [vmem:[#allocation2 + $0x610] sm:$0xff]  ;;  %v136_v48 = vld [vmem:[#allocation2 + $0x358] sm:$0xff]  ;;  %v5431_v50 = vcombine.low %v144_v39, %v152_v40 }
  0xbe   :  { %4180 = vmatprep.subr.bf16.mxu1 %v5638_v60  ;;  %v231_v60 = vld [vmem:[#allocation2 + $0x650] sm:$0xff] }
  0xbf   :  { %v5509_v7 = vcombine.low %v223_v57, %v231_v60 }
  0xc0   :  { %4140 = vmatpush1.bf16.msra.mxu0 %v5381_v1  ;;  %v5510_v1 = vcombine.high %v223_v57, %v231_v60  ;;  %v112_v57 = vld [vmem:[#allocation2 + $0x298] sm:$0xff] }
  0xc1   :  { %4181 = vmatpush1.bf16.msra.mxu1 %v5637_v2  ;;  %4141 = vmatprep.subr.bf16.mxu0 %v5366_v3  ;;  %v5766_v2 = vcombine.high %v479_v61, %v487_v62  ;;  %v207_v3 = vld [vmem:[#allocation2 + $0x590] sm:$0xff]  ;;  %v120_v60 = vld [vmem:[#allocation2 + $0x2d8] sm:$0xff]  ;;  %v5415_v62 = vcombine.low %v128_v47, %v136_v48 }
  0xc2   :  { %4182 = vmatprep.subr.bf16.mxu1 %v5622_v4  ;;  %v215_v4 = vld [vmem:[#allocation2 + $0x5d0] sm:$0xff] }
  0xc3   :  { %v5493_v15 = vcombine.low %v207_v3, %v215_v4 }
  0xc4   :  { %4142 = vmatpush1.bf16.msra.mxu0 %v5365_v9  ;;  %v5494_v9 = vcombine.high %v207_v3, %v215_v4  ;;  %v96_v3 = vld [vmem:[#allocation2 + $0x218] sm:$0xff] }
  0xc5   :  { %4183 = vmatpush1.bf16.msra.mxu1 %v5621_v10  ;;  %4143 = vmatprep.subr.bf16.mxu0 %v5350_v11  ;;  %v5750_v10 = vcombine.high %v463_v5, %v471_v6  ;;  %v191_v11 = vld [vmem:[#allocation2 + $0x510] sm:$0xff]  ;;  %v104_v4 = vld [vmem:[#allocation2 + $0x258] sm:$0xff]  ;;  %v5399_v6 = vcombine.low %v112_v57, %v120_v60 }
  0xc6   :  { %4184 = vmatprep.subr.bf16.mxu1 %v5606_v12  ;;  %v199_v12 = vld [vmem:[#allocation2 + $0x550] sm:$0xff] }
  0xc7   :  { %v5477_v53 = vcombine.low %v191_v11, %v199_v12 }
  0xc8   :  { %4144 = vmatpush1.bf16.msra.mxu0 %v5349_v18  ;;  %v5478_v18 = vcombine.high %v191_v11, %v199_v12  ;;  %v80_v11 = vld [vmem:[#allocation2 + $0x198] sm:$0xff] }
  0xc9   :  { %4185 = vmatpush1.bf16.msra.mxu1 %v5605_v20  ;;  %4145 = vmatprep.subr.bf16.mxu0 %v5334_v21  ;;  %v5734_v20 = vcombine.high %v447_v13, %v455_v14  ;;  %v175_v21 = vld [vmem:[#allocation2 + $0x490] sm:$0xff]  ;;  %v88_v12 = vld [vmem:[#allocation2 + $0x1d8] sm:$0xff]  ;;  %v5383_v14 = vcombine.low %v96_v3, %v104_v4 }
  0xca   :  { %4186 = vmatprep.subr.bf16.mxu1 %v5590_v22  ;;  %v183_v22 = vld [vmem:[#allocation2 + $0x4d0] sm:$0xff] }
  0xcb   :  { %v5461_v33 = vcombine.low %v175_v21, %v183_v22 }
  0xcc   :  { %4146 = vmatpush1.bf16.msra.mxu0 %v5333_v27  ;;  %v5462_v27 = vcombine.high %v175_v21, %v183_v22  ;;  %v64_v21 = vld [vmem:[#allocation2 + $0x118] sm:$0xff] }
  0xcd   :  { %4187 = vmatpush1.bf16.msra.mxu1 %v5589_v54  ;;  %4147 = vmatprep.subr.bf16.mxu0 %v5318_v28  ;;  %v5718_v54 = vcombine.high %v431_v24, %v439_v25  ;;  %v159_v28 = vld [vmem:[#allocation2 + $0x410] sm:$0xff]  ;;  %v72_v22 = vld [vmem:[#allocation2 + $0x158] sm:$0xff]  ;;  %v5367_v25 = vcombine.low %v80_v11, %v88_v12 }
  0xce   :  { %4188 = vmatprep.subr.bf16.mxu1 %v5574_v29  ;;  %v167_v29 = vld [vmem:[#allocation2 + $0x450] sm:$0xff] }
  0xcf   :  { %v5445_v41 = vcombine.low %v159_v28, %v167_v29 }
  0xd0   :  { %4148 = vmatpush1.bf16.msra.mxu0 %v5317_v35  ;;  %v5446_v35 = vcombine.high %v159_v28, %v167_v29  ;;  %v48_v28 = vld [vmem:[#allocation2 + $0x98] sm:$0xff] }
  0xd1   :  { %4189 = vmatpush1.bf16.msra.mxu1 %v5573_v36  ;;  %4149 = vmatprep.subr.bf16.mxu0 %v5558_v37  ;;  %v5702_v36 = vcombine.high %v415_v30, %v423_v31  ;;  %v655_v37 = vld [vmem:[#allocation2 + $0x1390] sm:$0xff]  ;;  %v56_v29 = vld [vmem:[#allocation2 + $0xd8] sm:$0xff]  ;;  %v5351_v31 = vcombine.low %v64_v21, %v72_v22 }
  0xd2   :  { %4190 = vmatprep.subr.bf16.mxu1 %v5814_v38  ;;  %v663_v38 = vld [vmem:[#allocation2 + $0x13d0] sm:$0xff] }
  0xd3   :  { %v5941_v49 = vcombine.low %v655_v37, %v663_v38 }
  0xd4   :  { %4150 = vmatpush2.bf16.msra.mxu0 %v5557_v43  ;;  %v5942_v43 = vcombine.high %v655_v37, %v663_v38  ;;  %v32_v37 = vld [vmem:[#allocation2 + $0x18] sm:$0xff] }
  0xd5   :  { %4191 = vmatpush2.bf16.msra.mxu1 %v5813_v44  ;;  %4151 = vmatprep.subr.bf16.mxu0 %v5542_v45  ;;  %v5432_v44 = vcombine.high %v144_v39, %v152_v40  ;;  %v639_v45 = vld [vmem:[#allocation2 + $0x1310] sm:$0xff]  ;;  %v40_v38 = vld [vmem:[#allocation2 + $0x58] sm:$0xff]  ;;  %v5335_v40 = vcombine.low %v48_v28, %v56_v29 }
  0xd6   :  { %4192 = vmatprep.subr.bf16.mxu1 %v5798_v46  ;;  %v647_v46 = vld [vmem:[#allocation2 + $0x1350] sm:$0xff] }
  0xd7   :  { %v5925_v61 = vcombine.low %v639_v45, %v647_v46 }
  0xd8   :  { %4152 = vmatpush2.bf16.msra.mxu0 %v5541_v51  ;;  %v5926_v51 = vcombine.high %v639_v45, %v647_v46  ;;  %v272_v45 = vld [vmem:[#allocation2 + $0x798] sm:$0xff] }
  0xd9   :  { %4193 = vmatpush2.bf16.msra.mxu1 %v5797_v52  ;;  %4153 = vmatprep.subr.bf16.mxu0 %v5526_v55  ;;  %v5416_v52 = vcombine.high %v128_v47, %v136_v48  ;;  %v623_v55 = vld [vmem:[#allocation2 + $0x1290] sm:$0xff]  ;;  %v280_v46 = vld [vmem:[#allocation2 + $0x7d8] sm:$0xff]  ;;  %v5319_v48 = vcombine.low %v32_v37, %v40_v38 }
  0xda   :  { %4194 = vmatprep.subr.bf16.mxu1 %v5782_v56  ;;  %v631_v56 = vld [vmem:[#allocation2 + $0x12d0] sm:$0xff] }
  0xdb   :  { %v5909_v5 = vcombine.low %v623_v55, %v631_v56 }
  0xdc   :  { %4154 = vmatpush2.bf16.msra.mxu0 %v5525_v63  ;;  %v5910_v63 = vcombine.high %v623_v55, %v631_v56  ;;  %v256_v55 = vld [vmem:[#allocation2 + $0x718] sm:$0xff] }
  0xdd   :  { %4195 = vmatpush2.bf16.msra.mxu1 %v5781_v0  ;;  %4155 = vmatprep.subr.bf16.mxu0 %v5510_v1  ;;  %v5400_v0 = vcombine.high %v112_v57, %v120_v60  ;;  %v607_v1 = vld [vmem:[#allocation2 + $0x1210] sm:$0xff]  ;;  %v264_v56 = vld [vmem:[#allocation2 + $0x758] sm:$0xff]  ;;  %v5559_v60 = vcombine.low %v272_v45, %v280_v46 }
  0xde   :  { %4196 = vmatprep.subr.bf16.mxu1 %v5766_v2  ;;  %v615_v2 = vld [vmem:[#allocation2 + $0x1250] sm:$0xff] }
  0xdf   :  { %v5893_v13 = vcombine.low %v607_v1, %v615_v2 }
  0xe0   :  { %4156 = vmatpush2.bf16.msra.mxu0 %v5509_v7  ;;  %v5894_v7 = vcombine.high %v607_v1, %v615_v2  ;;  %v240_v2 = vld [vmem:[#allocation2 + $0x698] sm:$0xff] }
  0xe1   :  { %4197 = vmatpush2.bf16.msra.mxu1 %v5765_v8  ;;  %4157 = vmatprep.subr.bf16.mxu0 %v5494_v9  ;;  %v5384_v8 = vcombine.high %v96_v3, %v104_v4  ;;  %v591_v9 = vld [vmem:[#allocation2 + $0x1190] sm:$0xff]  ;;  %v248_v3 = vld [vmem:[#allocation2 + $0x6d8] sm:$0xff] }
  0xe2   :  { %4198 = vmatprep.subr.bf16.mxu1 %v5750_v10  ;;  %v599_v10 = vld [vmem:[#allocation2 + $0x11d0] sm:$0xff] }
  0xe3   :  { %v5877_v24 = vcombine.low %v591_v9, %v599_v10 }
  0xe4   :  { %4158 = vmatpush2.bf16.msra.mxu0 %v5493_v15  ;;  %v5878_v15 = vcombine.high %v591_v9, %v599_v10  ;;  %v5528_v10 = vcombine.high %v240_v2, %v248_v3 }
  0xe5   :  { %4199 = vmatpush2.bf16.msra.mxu1 %v5749_v17  ;;  %4159 = vmatprep.subr.bf16.mxu0 %v5478_v18  ;;  %v5368_v17 = vcombine.high %v80_v11, %v88_v12  ;;  %v575_v18 = vld [vmem:[#allocation2 + $0x1110] sm:$0xff]  ;;  %v352_v11 = vld [vmem:[#allocation2 + $0xa18] sm:$0xff] }
  0xe6   :  { %4200 = vmatprep.subr.bf16.mxu1 %v5734_v20  ;;  %v583_v20 = vld [vmem:[#allocation2 + $0x1150] sm:$0xff] }
  0xe7   :  { %v5861_v30 = vcombine.low %v575_v18, %v583_v20 }
  0xe8   :  { %4160 = vmatpush2.bf16.msra.mxu0 %v5477_v53  ;;  %v5862_v53 = vcombine.high %v575_v18, %v583_v20  ;;  %v5527_v20 = vcombine.low %v240_v2, %v248_v3 }
  0xe9   :  { %4201 = vmatpush2.bf16.msra.mxu1 %v5733_v26  ;;  %4161 = vmatprep.subr.bf16.mxu0 %v5462_v27  ;;  %v5352_v26 = vcombine.high %v64_v21, %v72_v22  ;;  %v559_v27 = vld [vmem:[#allocation2 + $0x1090] sm:$0xff] }
  0xea   :  { %4202 = vmatprep.subr.bf16.mxu1 %v5718_v54  ;;  %v567_v54 = vld [vmem:[#allocation2 + $0x10d0] sm:$0xff] }
  0xeb   :  { %v5845_v39 = vcombine.low %v559_v27, %v567_v54 }
  0xec   :  { %4162 = vmatpush2.bf16.msra.mxu0 %v5461_v33  ;;  %v5846_v33 = vcombine.high %v559_v27, %v567_v54  ;;  %v216_v27 = vld [vmem:[#allocation2 + $0x5d8] sm:$0xff] }
  0xed   :  { %4203 = vmatpush2.bf16.msra.mxu1 %v5717_v34  ;;  %4163 = vmatprep.subr.bf16.mxu0 %v5446_v35  ;;  %v5336_v34 = vcombine.high %v48_v28, %v56_v29  ;;  %v543_v35 = vld [vmem:[#allocation2 + $0x1010] sm:$0xff] }
  0xee   :  { %4204 = vmatprep.subr.bf16.mxu1 %v5702_v36  ;;  %v551_v36 = vld [vmem:[#allocation2 + $0x1050] sm:$0xff] }
  0xef   :  { %v5829_v47 = vcombine.low %v543_v35, %v551_v36 }
  0xf0   :  { %4164 = vmatpush2.bf16.msra.mxu0 %v5445_v41  ;;  %v5830_v41 = vcombine.high %v543_v35, %v551_v36  ;;  %v200_v35 = vld [vmem:[#allocation2 + $0x558] sm:$0xff] }
  0xf1   :  { %4205 = vmatpush2.bf16.msra.mxu1 %v5701_v42  ;;  %4215 = vmatprep.subr.bf16.mxu0 %v5942_v43  ;;  %v5320_v42 = vcombine.high %v32_v37, %v40_v38  ;;  %v400_v43 = vld [vmem:[#allocation2 + $0xb98] sm:$0xff] }
  0xf2   :  { %4256 = vmatprep.subr.bf16.mxu1 %v5432_v44  ;;  %v408_v44 = vld [vmem:[#allocation2 + $0xbd8] sm:$0xff] }
  0xf3   :  { %4166 = vmatmul.mubr.bf16.vlgmr.msra.gmra.mxu0 %v6065_v16  ;;  %v5687_v57 = vcombine.low %v400_v43, %v408_v44 }
  0xf4   :  { %4207 = vmatmul.mubr.bf16.vlgmr.msra.gmra.mxu1 %v6069_v19  ;;  %4216 = vmatpush1.bf16.msra.mxu0 %v5941_v49  ;;  %v5688_v49 = vcombine.high %v400_v43, %v408_v44  ;;  %v184_v43 = vld [vmem:[#allocation2 + $0x4d8] sm:$0xff] }
  0xf5   :  { %4257 = vmatpush1.bf16.msra.mxu1 %v5431_v50  ;;  %4217 = vmatprep.subr.bf16.mxu0 %v5926_v51  ;;  %v5560_v50 = vcombine.high %v272_v45, %v280_v46  ;;  %v384_v51 = vld [vmem:[#allocation2 + $0xb18] sm:$0xff] }
  0xf6   :  { %4258 = vmatprep.subr.bf16.mxu1 %v5416_v52  ;;  %4247 = vmatprep.mubr.bf16.mxu0 %v6023_v32  ;;  %v392_v52 = vld [vmem:[#allocation2 + $0xb58] sm:$0xff] }
  0xf7   :  { %4288 = vmatprep.mubr.bf16.mxu1 %v6055_v58 }
  0xf8   :  { %4218 = vmatpush1.bf16.msra.mxu0 %v5925_v61  ;;  %v5672_v61 = vcombine.high %v384_v51, %v392_v52 }
  0xf9   :  { %4259 = vmatpush1.bf16.msra.mxu1 %v5415_v62  ;;  %4219 = vmatprep.subr.bf16.mxu0 %v5910_v63  ;;  %v5544_v62 = vcombine.high %v256_v55, %v264_v56  ;;  %v368_v63 = vld [vmem:[#allocation2 + $0xa98] sm:$0xff] }
  0xfa   :  { %4260 = vmatprep.subr.bf16.mxu1 %v5400_v0  ;;  %v376_v0 = vld [vmem:[#allocation2 + $0xad8] sm:$0xff] }
  0xfc   :  { %4220 = vmatpush1.bf16.msra.mxu0 %v5909_v5  ;;  %v5671_v5 = vcombine.low %v384_v51, %v392_v52  ;;  %v168_v51 = vld [vmem:[#allocation2 + $0x458] sm:$0xff] }
  0xfd   :  { %4261 = vmatpush1.bf16.msra.mxu1 %v5399_v6  ;;  %4221 = vmatprep.subr.bf16.mxu0 %v5894_v7  ;;  %v5543_v7 = vcombine.low %v256_v55, %v264_v56 }
  0xfe   :  { %4262 = vmatprep.subr.bf16.mxu1 %v5384_v8  ;;  %v5656_v8 = vcombine.high %v368_v63, %v376_v0 }
 0x100   :  { %4222 = vmatpush1.bf16.msra.mxu0 %v5893_v13  ;;  %v224_v13 = vld [vmem:[#allocation2 + $0x618] sm:$0xff] }
 0x101   :  { %4263 = vmatpush1.bf16.msra.mxu1 %v5383_v14  ;;  %4223 = vmatprep.subr.bf16.mxu0 %v5878_v15  ;;  %v232_v14 = vld [vmem:[#allocation2 + $0x658] sm:$0xff] }
 0x102   :  { %4264 = vmatprep.subr.bf16.mxu1 %v5368_v17  ;;  %v5655_v17 = vcombine.low %v368_v63, %v376_v0  ;;  %v5511_v28 = vcombine.low %v224_v13, %v232_v14  ;;  %v664_v63 = vld [vmem:[#allocation2 + $0x13d8] sm:$0xff] }
 0x104   :  { %4224 = vmatpush1.bf16.msra.mxu0 %v5877_v24  ;;  %v5512_v24 = vcombine.high %v224_v13, %v232_v14 }
 0x105   :  { %4265 = vmatpush1.bf16.msra.mxu1 %v5367_v25  ;;  %4225 = vmatprep.subr.bf16.mxu0 %v5862_v53  ;;  %v336_v25 = vld [vmem:[#allocation2 + $0x998] sm:$0xff] }
 0x106   :  { %4266 = vmatprep.subr.bf16.mxu1 %v5352_v26  ;;  %v344_v53 = vld [vmem:[#allocation2 + $0x9d8] sm:$0xff] }
 0x107   :  { %v208_v26 = vld [vmem:[#allocation2 + $0x598] sm:$0xff]  ;;  %v5624_v29 = vcombine.high %v336_v25, %v344_v53  ;;  %v5623_v36 = vcombine.low %v336_v25, %v344_v53 }
 0x108   :  { %4226 = vmatpush1.bf16.msra.mxu0 %v5861_v30  ;;  %v5496_v30 = vcombine.high %v208_v26, %v216_v27  ;;  %v5495_v37 = vcombine.low %v208_v26, %v216_v27 }
 0x109   :  { %4267 = vmatpush1.bf16.msra.mxu1 %v5351_v31  ;;  %4227 = vmatprep.subr.bf16.mxu0 %v5846_v33  ;;  %v320_v31 = vld [vmem:[#allocation2 + $0x918] sm:$0xff] }
 0x10a   :  { %4268 = vmatprep.subr.bf16.mxu1 %v5336_v34  ;;  %v328_v33 = vld [vmem:[#allocation2 + $0x958] sm:$0xff] }
 0x10b   :  { %v192_v34 = vld [vmem:[#allocation2 + $0x518] sm:$0xff]  ;;  %v5608_v38 = vcombine.high %v320_v31, %v328_v33  ;;  %v5607_v44 = vcombine.low %v320_v31, %v328_v33 }
 0x10c   :  { %4228 = vmatpush1.bf16.msra.mxu0 %v5845_v39  ;;  %v5480_v39 = vcombine.high %v192_v34, %v200_v35  ;;  %v5479_v45 = vcombine.low %v192_v34, %v200_v35  ;;  %v616_v31 = vld [vmem:[#allocation2 + $0x1258] sm:$0xff] }
 0x10d   :  { %4269 = vmatpush1.bf16.msra.mxu1 %v5335_v40  ;;  %4229 = vmatprep.subr.bf16.mxu0 %v5830_v41  ;;  %v304_v40 = vld [vmem:[#allocation2 + $0x898] sm:$0xff] }
 0x10e   :  { %4270 = vmatprep.subr.bf16.mxu1 %v5320_v42  ;;  %v312_v41 = vld [vmem:[#allocation2 + $0x8d8] sm:$0xff] }
 0x10f   :  { %v176_v42 = vld [vmem:[#allocation2 + $0x498] sm:$0xff]  ;;  %v5592_v46 = vcombine.high %v304_v40, %v312_v41  ;;  %v5591_v52 = vcombine.low %v304_v40, %v312_v41 }
 0x110   :  { %4230 = vmatpush1.bf16.msra.mxu0 %v5829_v47  ;;  %v5464_v47 = vcombine.high %v176_v42, %v184_v43  ;;  %v5463_v55 = vcombine.low %v176_v42, %v184_v43  ;;  %v472_v40 = vld [vmem:[#allocation2 + $0xdd8] sm:$0xff] }
 0x111   :  { %4271 = vmatpush1.bf16.msra.mxu1 %v5319_v48  ;;  %4297 = vmatprep.subr.bf16.mxu0 %v5688_v49  ;;  %v288_v48 = vld [vmem:[#allocation2 + $0x818] sm:$0xff] }
 0x112   :  { %4272 = vmatprep.subr.bf16.mxu1 %v5560_v50  ;;  %v296_v49 = vld [vmem:[#allocation2 + $0x858] sm:$0xff] }
 0x113   :  { %v6092_v1 = vpop.f32.mrf.mxu0  ;;  %4248 = vmatmul.mubr.bf16.vlgmr.msra.gmra.mxu0 %v6078_v23  ;;  %v360_v23 = vld [vmem:[#allocation2 + $0xa58] sm:$0xff]  ;;  %v5576_v56 = vcombine.high %v288_v48, %v296_v49  ;;  %v5575_v0 = vcombine.low %v288_v48, %v296_v49 }
 0x114   :  { %v6095_v4 = vpop.f32.mrf.mxu1  ;;  %4298 = vmatpush1.bf16.msra.mxu0 %v5687_v57  ;;  %4329 = vmatprep.mubr.bf16.mxu0 %v6059_v59  ;;  %v5640_v21 = vcombine.high %v352_v11, %v360_v23  ;;  %v5639_v54 = vcombine.low %v352_v11, %v360_v23  ;;  %v160_v50 = vld [vmem:[#allocation2 + $0x418] sm:$0xff] }
 0x115   :  { %4273 = vmatpush2.bf16.msra.mxu1 %v5559_v60  ;;  %v6098_v6 = vpop.f32.mrf.mxu0  ;;  %4299 = vmatprep.subr.bf16.mxu0 %v5672_v61  ;;  %v5448_v57 = vcombine.high %v160_v50, %v168_v51  ;;  %v528_v60 = vld [vmem:[#allocation2 + $0xf98] sm:$0xff]  ;;  %v5447_v2 = vcombine.low %v160_v50, %v168_v51  ;;  %v3963_v14 = vadd.f32 %v6095_v4, %v6092_v1 }
 0x116   :  { %v6100_v9 = vpop.f32.mrf.mxu1  ;;  %4274 = vmatprep.subr.bf16.mxu1 %v5544_v62  ;;  %v536_v61 = vld [vmem:[#allocation2 + $0xfd8] sm:$0xff] }
 0x117   :  { %v3925_v12 = vpop.f32.mrf.mxu0  ;;  %v656_v62 = vld [vmem:[#allocation2 + $0x1398] sm:$0xff]  ;;  %v5816_v3 = vcombine.high %v528_v60, %v536_v61  ;;  %v5815_v23 = vcombine.low %v528_v60, %v536_v61 }
 0x118   :  { %v3966_v15 = vpop.f32.mrf.mxu1  ;;  %4300 = vmatpush1.bf16.msra.mxu0 %v5671_v5  ;;  %v5944_v5 = vcombine.high %v656_v62, %v664_v63  ;;  %v648_v11 = vld [vmem:[#allocation2 + $0x1358] sm:$0xff]  ;;  %v5943_v12 = vcombine.low %v656_v62, %v664_v63 }
 0x119   :  { %4275 = vmatpush2.bf16.msra.mxu1 %v5543_v7  ;;  %v3926_v18 = vpop.f32.mrf.mxu0  ;;  %4301 = vmatprep.subr.bf16.mxu0 %v5656_v8  ;;  %v512_v7 = vld [vmem:[#allocation2 + $0xf18] sm:$0xff] }
 0x11a   :  { %v3967_v22 = vpop.f32.mrf.mxu1  ;;  %4276 = vmatprep.subr.bf16.mxu1 %v5528_v10  ;;  %v520_v8 = vld [vmem:[#allocation2 + $0xf58] sm:$0xff] }
 0x11b   :  { %v640_v10 = vld [vmem:[#allocation2 + $0x1318] sm:$0xff]  ;;  %v5800_v13 = vcombine.high %v512_v7, %v520_v8  ;;  %v5799_v53 = vcombine.low %v512_v7, %v520_v8 }
 0x11c   :  { %4302 = vmatpush1.bf16.msra.mxu0 %v5655_v17  ;;  %v5928_v15 = vcombine.high %v640_v10, %v648_v11  ;;  %v496_v17 = vld [vmem:[#allocation2 + $0xe98] sm:$0xff]  ;;  %v5927_v1 = vcombine.low %v640_v10, %v648_v11 }
 0x11d   :  { %4277 = vmatpush2.bf16.msra.mxu1 %v5527_v20  ;;  %4303 = vmatprep.subr.bf16.mxu0 %v5640_v21  ;;  %v504_v18 = vld [vmem:[#allocation2 + $0xed8] sm:$0xff] }
 0x11e   :  { %4278 = vmatprep.subr.bf16.mxu1 %v5512_v24  ;;  %v624_v21 = vld [vmem:[#allocation2 + $0x1298] sm:$0xff]  ;;  %v3965_v24 = vadd.f32 %v6100_v9, %v6098_v6  ;;  %v5784_v4 = vcombine.high %v496_v17, %v504_v18  ;;  %v5783_v33 = vcombine.low %v496_v17, %v504_v18  ;;  %v401_v17 = vld [vmem:[#allocation2 + $0xba0] sm:$0xff] }
 0x11f   :  { %v632_v22 = vld [vmem:[#allocation2 + $0x12d8] sm:$0xff]  ;;  %v409_v18 = vld [vmem:[#allocation2 + $0xbe0] sm:$0xff] }
 0x120   :  { %4304 = vmatpush1.bf16.msra.mxu0 %v5639_v54  ;;  %v488_v6 = vld [vmem:[#allocation2 + $0xe58] sm:$0xff]  ;;  %v5911_v35 = vcombine.low %v624_v21, %v632_v22 }
 0x121   :  { %4279 = vmatpush2.bf16.msra.mxu1 %v5511_v28  ;;  %4305 = vmatprep.subr.bf16.mxu0 %v5624_v29  ;;  %v5912_v28 = vcombine.high %v624_v21, %v632_v22  ;;  %v480_v29 = vld [vmem:[#allocation2 + $0xe18] sm:$0xff] }
 0x122   :  { %4280 = vmatprep.subr.bf16.mxu1 %v5496_v30  ;;  %v608_v30 = vld [vmem:[#allocation2 + $0x1218] sm:$0xff]  ;;  %v5767_v43 = vcombine.low %v480_v29, %v488_v6 }
 0x123   :  { %v592_v41 = vld [vmem:[#allocation2 + $0x1198] sm:$0xff] }
 0x124   :  { %4306 = vmatpush1.bf16.msra.mxu0 %v5623_v36  ;;  %v5768_v36 = vcombine.high %v480_v29, %v488_v6  ;;  %v600_v42 = vld [vmem:[#allocation2 + $0x11d8] sm:$0xff] }
 0x125   :  { %4281 = vmatpush2.bf16.msra.mxu1 %v5495_v37  ;;  %4307 = vmatprep.subr.bf16.mxu0 %v5608_v38  ;;  %v5896_v38 = vcombine.high %v608_v30, %v616_v31  ;;  %v456_v48 = vld [vmem:[#allocation2 + $0xd58] sm:$0xff] }
 0x126   :  { %4282 = vmatprep.subr.bf16.mxu1 %v5480_v39  ;;  %v464_v39 = vld [vmem:[#allocation2 + $0xd98] sm:$0xff] }
 0x127   :  { %v576_v49 = vld [vmem:[#allocation2 + $0x1118] sm:$0xff]  ;;  %v5751_v51 = vcombine.low %v464_v39, %v472_v40 }
 0x128   :  { %4308 = vmatpush1.bf16.msra.mxu0 %v5607_v44  ;;  %v5895_v44 = vcombine.low %v608_v30, %v616_v31  ;;  %v584_v50 = vld [vmem:[#allocation2 + $0x1158] sm:$0xff]  ;;  %v121_v30 = vld [vmem:[#allocation2 + $0x2e0] sm:$0xff] }
 0x129   :  { %4283 = vmatpush2.bf16.msra.mxu1 %v5479_v45  ;;  %4309 = vmatprep.subr.bf16.mxu0 %v5592_v46  ;;  %v5752_v45 = vcombine.high %v464_v39, %v472_v40  ;;  %v5880_v46 = vcombine.high %v592_v41, %v600_v42  ;;  %v440_v60 = vld [vmem:[#allocation2 + $0xcd8] sm:$0xff]  ;;  %v369_v31 = vld [vmem:[#allocation2 + $0xaa0] sm:$0xff] }
 0x12a   :  { %4284 = vmatprep.subr.bf16.mxu1 %v5464_v47  ;;  %v448_v47 = vld [vmem:[#allocation2 + $0xd18] sm:$0xff] }
 0x12b   :  { %v560_v61 = vld [vmem:[#allocation2 + $0x1098] sm:$0xff]  ;;  %v5735_v63 = vcombine.low %v448_v47, %v456_v48 }
 0x12c   :  { %4310 = vmatpush1.bf16.msra.mxu0 %v5591_v52  ;;  %v5879_v52 = vcombine.low %v592_v41, %v600_v42  ;;  %v568_v62 = vld [vmem:[#allocation2 + $0x10d8] sm:$0xff]  ;;  %v97_v41 = vld [vmem:[#allocation2 + $0x220] sm:$0xff] }
 0x12d   :  { %4285 = vmatpush2.bf16.msra.mxu1 %v5463_v55  ;;  %4311 = vmatprep.subr.bf16.mxu0 %v5576_v56  ;;  %v5736_v55 = vcombine.high %v448_v47, %v456_v48  ;;  %v5864_v56 = vcombine.high %v576_v49, %v584_v50  ;;  %v424_v7 = vld [vmem:[#allocation2 + $0xc58] sm:$0xff]  ;;  %v105_v42 = vld [vmem:[#allocation2 + $0x260] sm:$0xff] }
 0x12e   :  { %4286 = vmatprep.subr.bf16.mxu1 %v5448_v57  ;;  %v432_v57 = vld [vmem:[#allocation2 + $0xc98] sm:$0xff]  ;;  %v5386_v48 = vcombine.high %v97_v41, %v105_v42 }
 0x12f   :  { %v544_v8 = vld [vmem:[#allocation2 + $0x1018] sm:$0xff]  ;;  %v5719_v11 = vcombine.low %v432_v57, %v440_v60 }
 0x130   :  { %4312 = vmatpush1.bf16.msra.mxu0 %v5575_v0  ;;  %v5863_v0 = vcombine.low %v576_v49, %v584_v50  ;;  %v552_v10 = vld [vmem:[#allocation2 + $0x1058] sm:$0xff] }
 0x131   :  { %4287 = vmatpush2.bf16.msra.mxu1 %v5447_v2  ;;  %4313 = vmatprep.subr.bf16.mxu0 %v5816_v3  ;;  %v5720_v2 = vcombine.high %v432_v57, %v440_v60  ;;  %v5848_v3 = vcombine.high %v560_v61, %v568_v62  ;;  %v5831_v21 = vcombine.low %v544_v8, %v552_v10 }
 0x132   :  { %4338 = vmatprep.subr.bf16.mxu1 %v5944_v5  ;;  %v416_v5 = vld [vmem:[#allocation2 + $0xc18] sm:$0xff]  ;;  %v5385_v57 = vcombine.low %v97_v41, %v105_v42 }
 0x133   :  { %v4003_v20 = vpop.f32.mrf.mxu0 }
 0x134   :  { %v6106_v25 = vadd.f32 %v4003_v20, %v3963_v14  ;;  %4289 = vmatmul.mubr.bf16.vlgmr.msra.gmra.mxu1 %v6065_v16  ;;  %4314 = vmatpush2.bf16.msra.mxu0 %v5815_v23  ;;  %v5847_v23 = vcombine.low %v560_v61, %v568_v62  ;;  %v145_v14 = vld [vmem:[#allocation2 + $0x3a0] sm:$0xff]  ;;  %v5703_v20 = vcombine.low %v416_v5, %v424_v7 }
 0x135   :  { %4339 = vmatpush1.bf16.msra.mxu1 %v5943_v12  ;;  %v4005_v26 = vpop.f32.mrf.mxu0  ;;  %4315 = vmatprep.subr.bf16.mxu0 %v5800_v13  ;;  %v5704_v12 = vcombine.high %v416_v5, %v424_v7  ;;  %v5832_v13 = vcombine.high %v544_v8, %v552_v10 }
 0x136   :  { %v6109_v27 = vadd.f32 %v4005_v26, %v3965_v24  ;;  %4340 = vmatprep.subr.bf16.mxu1 %v5928_v15  ;;  %v4875_v54 = vsel %vm4874_vm0, %v6106_v25, 0.0  ;;  %4370 = vmatprep.mubr.bf16.mxu1 %v6023_v32  ;;  %v153_v15 = vld [vmem:[#allocation2 + $0x3e0] sm:$0xff]  ;;  %v5690_v24 = vcombine.high %v401_v17, %v409_v18 }
 0x137   :  { %v4007_v9 = vpop.f32.mrf.mxu0  ;;  %4876 = vadd.xlane.f32.xlu0 %v4875_v54  ;;  %v5434_v22 = vcombine.high %v145_v14, %v153_v15  ;;  %v137_v26 = vld [vmem:[#allocation2 + $0x360] sm:$0xff]  ;;  %v5433_v54 = vcombine.low %v145_v14, %v153_v15 }
 0x138   :  { %4316 = vmatpush2.bf16.msra.mxu0 %v5799_v53  ;;  %v4889_v37 = vsel %vm4874_vm0, %v6109_v27, 0.0  ;;  %v129_v53 = vld [vmem:[#allocation2 + $0x320] sm:$0xff] }
 0x139   :  { %4341 = vmatpush1.bf16.msra.mxu1 %v5927_v1  ;;  %v4008_v34 = vpop.f32.mrf.mxu0  ;;  %4317 = vmatprep.subr.bf16.mxu0 %v5784_v4  ;;  %v385_v1 = vld [vmem:[#allocation2 + $0xb20] sm:$0xff]  ;;  %v5418_v29 = vcombine.high %v129_v53, %v137_v26 }
 0x13a   :  { %4342 = vmatprep.subr.bf16.mxu1 %v5912_v28  ;;  %v393_v4 = vld [vmem:[#allocation2 + $0xb60] sm:$0xff]  ;;  %v5689_v28 = vcombine.low %v401_v17, %v409_v18 }
 0x13b   :  { %4890 = vadd.xlane.f32.xlu0 %v4889_v37  ;;  %v5674_v6 = vcombine.high %v385_v1, %v393_v4  ;;  %v113_v9 = vld [vmem:[#allocation2 + $0x2a0] sm:$0xff]  ;;  %v5673_v37 = vcombine.low %v385_v1, %v393_v4 }
 0x13c   :  { %4318 = vmatpush2.bf16.msra.mxu0 %v5783_v33  ;;  %v377_v33 = vld [vmem:[#allocation2 + $0xae0] sm:$0xff] }
 0x13d   :  { %4343 = vmatpush1.bf16.msra.mxu1 %v5911_v35  ;;  %4319 = vmatprep.subr.bf16.mxu0 %v5768_v36  ;;  %v6122_v35 = vld [vmem:[%s6418_s1 + $0x10] ss:$0 sps:$4 sm:$0x77]   ;;  %v5417_v36 = vcombine.low %v129_v53, %v137_v26  ;;  %v5658_v40 = vcombine.high %v369_v31, %v377_v33  ;;  %v5657_v47 = vcombine.low %v369_v31, %v377_v33 }
 0x13e   :  { %4344 = vmatprep.subr.bf16.mxu1 %v5896_v38  ;;  %v5402_v38 = vcombine.high %v113_v9, %v121_v30 }
 0x140   :  { %4320 = vmatpush2.bf16.msra.mxu0 %v5767_v43  ;;  %v353_v43 = vld [vmem:[#allocation2 + $0xa20] sm:$0xff] }
 0x141   :  { %4345 = vmatpush1.bf16.msra.mxu1 %v5895_v44  ;;  %4321 = vmatprep.subr.bf16.mxu0 %v5752_v45  ;;  %v361_v44 = vld [vmem:[#allocation2 + $0xa60] sm:$0xff] }
 0x142   :  { %4346 = vmatprep.subr.bf16.mxu1 %v5880_v46  ;;  %v5401_v46 = vcombine.low %v113_v9, %v121_v30  ;;  %v5642_v50 = vcombine.high %v353_v43, %v361_v44  ;;  %v5641_v60 = vcombine.low %v353_v43, %v361_v44 }
 0x144   :  { %4322 = vmatpush2.bf16.msra.mxu0 %v5751_v51  ;;  %v81_v51 = vld [vmem:[#allocation2 + $0x1a0] sm:$0xff] }
 0x145   :  { %4347 = vmatpush1.bf16.msra.mxu1 %v5879_v52  ;;  %4323 = vmatprep.subr.bf16.mxu0 %v5736_v55  ;;  %v89_v52 = vld [vmem:[#allocation2 + $0x1e0] sm:$0xff] }
 0x146   :  { %4348 = vmatprep.subr.bf16.mxu1 %v5864_v56  ;;  %v337_v55 = vld [vmem:[#allocation2 + $0x9a0] sm:$0xff]  ;;  %v5370_v61 = vcombine.high %v81_v51, %v89_v52  ;;  %v5369_v5 = vcombine.low %v81_v51, %v89_v52 }
 0x147   :  { %v345_v56 = vld [vmem:[#allocation2 + $0x9e0] sm:$0xff] }
 0x148   :  { %4324 = vmatpush2.bf16.msra.mxu0 %v5735_v63  ;;  %v5626_v62 = vcombine.high %v337_v55, %v345_v56  ;;  %v65_v63 = vld [vmem:[#allocation2 + $0x120] sm:$0xff]  ;;  %v5625_v7 = vcombine.low %v337_v55, %v345_v56 }
 0x149   :  { %4349 = vmatpush1.bf16.msra.mxu1 %v5863_v0  ;;  %4325 = vmatprep.subr.bf16.mxu0 %v5720_v2  ;;  %v73_v0 = vld [vmem:[#allocation2 + $0x160] sm:$0xff] }
 0x14a   :  { %4350 = vmatprep.subr.bf16.mxu1 %v5848_v3  ;;  %v321_v2 = vld [vmem:[#allocation2 + $0x920] sm:$0xff]  ;;  %v5354_v8 = vcombine.high %v65_v63, %v73_v0  ;;  %v5353_v14 = vcombine.low %v65_v63, %v73_v0 }
 0x14b   :  { %v329_v3 = vld [vmem:[#allocation2 + $0x960] sm:$0xff] }
 0x14c   :  { %4326 = vmatpush2.bf16.msra.mxu0 %v5719_v11  ;;  %v5610_v10 = vcombine.high %v321_v2, %v329_v3  ;;  %v49_v11 = vld [vmem:[#allocation2 + $0xa0] sm:$0xff]  ;;  %v5609_v15 = vcombine.low %v321_v2, %v329_v3 }
 0x14d   :  { %4351 = vmatpush1.bf16.msra.mxu1 %v5847_v23  ;;  %4327 = vmatprep.subr.bf16.mxu0 %v5704_v12  ;;  %v57_v23 = vld [vmem:[#allocation2 + $0xe0] sm:$0xff] }
 0x14e   :  { %4352 = vmatprep.subr.bf16.mxu1 %v5832_v13  ;;  %v305_v12 = vld [vmem:[#allocation2 + $0x8a0] sm:$0xff]  ;;  %v5338_v17 = vcombine.high %v49_v11, %v57_v23  ;;  %v5337_v53 = vcombine.low %v49_v11, %v57_v23 }
 0x14f   :  { %v313_v13 = vld [vmem:[#allocation2 + $0x8e0] sm:$0xff] }
 0x150   :  { %4328 = vmatpush2.bf16.msra.mxu0 %v5703_v20  ;;  %v5594_v18 = vcombine.high %v305_v12, %v313_v13  ;;  %v33_v20 = vld [vmem:[#allocation2 + $0x20] sm:$0xff]  ;;  %v5593_v26 = vcombine.low %v305_v12, %v313_v13 }
 0x151   :  { %4353 = vmatpush1.bf16.msra.mxu1 %v5831_v21  ;;  %4379 = vmatprep.subr.bf16.mxu0 %v5434_v22  ;;  %v41_v21 = vld [vmem:[#allocation2 + $0x60] sm:$0xff] }
 0x152   :  { %4420 = vmatprep.subr.bf16.mxu1 %v5690_v24  ;;  %v289_v22 = vld [vmem:[#allocation2 + $0x820] sm:$0xff]  ;;  %v5322_v1 = vcombine.high %v33_v20, %v41_v21  ;;  %v5321_v9 = vcombine.low %v33_v20, %v41_v21 }
 0x153   :  { %4330 = vmatmul.mubr.bf16.vlgmr.msra.gmra.mxu0 %v6069_v19  ;;  %v297_v24 = vld [vmem:[#allocation2 + $0x860] sm:$0xff] }
 0x154   :  { %v6117_v34 = vpop.f32.mrf.mxu1  ;;  %4371 = vmatmul.mubr.bf16.vlgmr.msra.gmra.mxu1 %v6122_v35  ;;  %4380 = vmatpush1.bf16.msra.mxu0 %v5433_v54  ;;  %v5578_v4 = vcombine.high %v289_v22, %v297_v24  ;;  %v273_v54 = vld [vmem:[#allocation2 + $0x7a0] sm:$0xff]  ;;  %v5577_v30 = vcombine.low %v289_v22, %v297_v24 }
 0x155   :  { %4421 = vmatpush1.bf16.msra.mxu1 %v5689_v28  ;;  %4381 = vmatprep.subr.bf16.mxu0 %v5418_v29  ;;  %v281_v28 = vld [vmem:[#allocation2 + $0x7e0] sm:$0xff] }
 0x156   :  { %v6125_v39 = vpop.f32.mrf.mxu1  ;;  %4422 = vmatprep.subr.bf16.mxu1 %v5674_v6  ;;  %4411 = vmatprep.mubr.bf16.mxu0 %v6055_v58  ;;  %v529_v29 = vld [vmem:[#allocation2 + $0xfa0] sm:$0xff]  ;;  %v5562_v31 = vcombine.high %v273_v54, %v281_v28  ;;  %v5561_v41 = vcombine.low %v273_v54, %v281_v28 }
 0x157   :  { %4452 = vmatprep.mubr.bf16.mxu1 %v6059_v59  ;;  %v537_v6 = vld [vmem:[#allocation2 + $0xfe0] sm:$0xff] }
 0x158   :  { %v4048_v45 = vpop.f32.mrf.mxu1  ;;  %4382 = vmatpush1.bf16.msra.mxu0 %v5417_v36  ;;  %v5818_v33 = vcombine.high %v529_v29, %v537_v6  ;;  %v257_v36 = vld [vmem:[#allocation2 + $0x720] sm:$0xff]  ;;  %v5817_v42 = vcombine.low %v529_v29, %v537_v6 }
 0x159   :  { %4423 = vmatpush1.bf16.msra.mxu1 %v5673_v37  ;;  %4383 = vmatprep.subr.bf16.mxu0 %v5402_v38  ;;  %v265_v37 = vld [vmem:[#allocation2 + $0x760] sm:$0xff] }
 0x15a   :  { %v4049_v49 = vpop.f32.mrf.mxu1  ;;  %4424 = vmatprep.subr.bf16.mxu1 %v5658_v40  ;;  %v513_v38 = vld [vmem:[#allocation2 + $0xf20] sm:$0xff]  ;;  %v5546_v43 = vcombine.high %v257_v36, %v265_v37  ;;  %v5545_v52 = vcombine.low %v257_v36, %v265_v37 }
 0x15b   :  { %v521_v40 = vld [vmem:[#allocation2 + $0xf60] sm:$0xff] }
 0x15c   :  { %4384 = vmatpush1.bf16.msra.mxu0 %v5401_v46  ;;  %v5802_v44 = vcombine.high %v513_v38, %v521_v40  ;;  %v241_v45 = vld [vmem:[#allocation2 + $0x6a0] sm:$0xff]  ;;  %v5801_v56 = vcombine.low %v513_v38, %v521_v40 }
 0x15d   :  { %4425 = vmatpush1.bf16.msra.mxu1 %v5657_v47  ;;  %4385 = vmatprep.subr.bf16.mxu0 %v5386_v48  ;;  %v249_v47 = vld [vmem:[#allocation2 + $0x6e0] sm:$0xff] }
 0x15e   :  { %4426 = vmatprep.subr.bf16.mxu1 %v5642_v50  ;;  %v497_v48 = vld [vmem:[#allocation2 + $0xea0] sm:$0xff]  ;;  %v5529_v11 = vcombine.low %v241_v45, %v249_v47 }
 0x15f   :  { %v505_v49 = vld [vmem:[#allocation2 + $0xee0] sm:$0xff] }
 0x160   :  { %4386 = vmatpush1.bf16.msra.mxu0 %v5385_v57  ;;  %v5786_v63 = vcombine.high %v497_v48, %v505_v49  ;;  %v225_v0 = vld [vmem:[#allocation2 + $0x620] sm:$0xff] }
 0x161   :  { %4427 = vmatpush1.bf16.msra.mxu1 %v5641_v60  ;;  %4387 = vmatprep.subr.bf16.mxu0 %v5370_v61  ;;  %v233_v3 = vld [vmem:[#allocation2 + $0x660] sm:$0xff] }
 0x162   :  { %4428 = vmatprep.subr.bf16.mxu1 %v5626_v62  ;;  %v5530_v62 = vcombine.high %v241_v45, %v249_v47  ;;  %v5514_v13 = vcombine.high %v225_v0, %v233_v3  ;;  %v473_v20 = vld [vmem:[#allocation2 + $0xde0] sm:$0xff]  ;;  %v5513_v22 = vcombine.low %v225_v0, %v233_v3  ;;  %v130_v3 = vld [vmem:[#allocation2 + $0x328] sm:$0xff] }
 0x163   :  { %v449_v54 = vld [vmem:[#allocation2 + $0xd20] sm:$0xff] }
 0x164   :  { %4388 = vmatpush1.bf16.msra.mxu0 %v5369_v5  ;;  %v481_v5 = vld [vmem:[#allocation2 + $0xe20] sm:$0xff] }
 0x165   :  { %4429 = vmatpush1.bf16.msra.mxu1 %v5625_v7  ;;  %4389 = vmatprep.subr.bf16.mxu0 %v5354_v8  ;;  %v457_v28 = vld [vmem:[#allocation2 + $0xd60] sm:$0xff] }
 0x166   :  { %4430 = vmatprep.subr.bf16.mxu1 %v5610_v10  ;;  %v433_v36 = vld [vmem:[#allocation2 + $0xca0] sm:$0xff]  ;;  %v5737_v40 = vcombine.low %v449_v54, %v457_v28 }
 0x167   :  { %v441_v37 = vld [vmem:[#allocation2 + $0xce0] sm:$0xff] }
 0x168   :  { %4390 = vmatpush1.bf16.msra.mxu0 %v5353_v14  ;;  %v417_v45 = vld [vmem:[#allocation2 + $0xc20] sm:$0xff] }
 0x169   :  { %4431 = vmatpush1.bf16.msra.mxu1 %v5609_v15  ;;  %4391 = vmatprep.subr.bf16.mxu0 %v5338_v17  ;;  %v209_v15 = vld [vmem:[#allocation2 + $0x5a0] sm:$0xff] }
 0x16a   :  { %4432 = vmatprep.subr.bf16.mxu1 %v5594_v18  ;;  %v217_v17 = vld [vmem:[#allocation2 + $0x5e0] sm:$0xff] }
 0x16b   :  { %v465_v18 = vld [vmem:[#allocation2 + $0xda0] sm:$0xff]  ;;  %v5497_v29 = vcombine.low %v209_v15, %v217_v17 }
 0x16c   :  { %4392 = vmatpush1.bf16.msra.mxu0 %v5337_v53  ;;  %v5498_v53 = vcombine.high %v209_v15, %v217_v17  ;;  %v5753_v6 = vcombine.low %v465_v18, %v473_v20  ;;  %v641_v0 = vld [vmem:[#allocation2 + $0x1320] sm:$0xff] }
 0x16d   :  { %4433 = vmatpush1.bf16.msra.mxu1 %v5593_v26  ;;  %4393 = vmatprep.subr.bf16.mxu0 %v5322_v1  ;;  %v5754_v26 = vcombine.high %v465_v18, %v473_v20  ;;  %v193_v1 = vld [vmem:[#allocation2 + $0x520] sm:$0xff] }
 0x16e   :  { %4434 = vmatprep.subr.bf16.mxu1 %v5578_v4  ;;  %v201_v4 = vld [vmem:[#allocation2 + $0x560] sm:$0xff] }
 0x16f   :  { %v5481_v38 = vcombine.low %v193_v1, %v201_v4  ;;  %v609_v20 = vld [vmem:[#allocation2 + $0x1220] sm:$0xff] }
 0x170   :  { %4394 = vmatpush1.bf16.msra.mxu0 %v5321_v9  ;;  %v5482_v9 = vcombine.high %v193_v1, %v201_v4 }
 0x171   :  { %4435 = vmatpush1.bf16.msra.mxu1 %v5577_v30  ;;  %4395 = vmatprep.subr.bf16.mxu0 %v5562_v31  ;;  %v5738_v30 = vcombine.high %v449_v54, %v457_v28  ;;  %v177_v31 = vld [vmem:[#allocation2 + $0x4a0] sm:$0xff] }
 0x172   :  { %4436 = vmatprep.subr.bf16.mxu1 %v5818_v33  ;;  %v185_v33 = vld [vmem:[#allocation2 + $0x4e0] sm:$0xff] }
 0x173   :  { %v4085_v46 = vpop.f32.mrf.mxu0  ;;  %v5465_v47 = vcombine.low %v177_v31, %v185_v33  ;;  %v593_v54 = vld [vmem:[#allocation2 + $0x11a0] sm:$0xff] }
 0x174   :  { %v4086_v50 = vadd.f32 %v4085_v46, %v6117_v34  ;;  %v4126_v51 = vpop.f32.mrf.mxu1  ;;  %4396 = vmatpush2.bf16.msra.mxu0 %v5561_v41  ;;  %v489_v34 = vld [vmem:[#allocation2 + $0xe60] sm:$0xff]  ;;  %v5466_v41 = vcombine.high %v177_v31, %v185_v33 }
 0x175   :  { %4437 = vmatpush2.bf16.msra.mxu1 %v5817_v42  ;;  %v4087_v55 = vpop.f32.mrf.mxu0  ;;  %4397 = vmatprep.subr.bf16.mxu0 %v5546_v43  ;;  %v5770_v14 = vcombine.high %v481_v5, %v489_v34  ;;  %v5769_v24 = vcombine.low %v481_v5, %v489_v34  ;;  %v5722_v42 = vcombine.high %v433_v36, %v441_v37  ;;  %v161_v43 = vld [vmem:[#allocation2 + $0x420] sm:$0xff]  ;;  %v138_v5 = vld [vmem:[#allocation2 + $0x368] sm:$0xff] }
 0x176   :  { %v6130_v57 = vadd.f32 %v4126_v51, %v4086_v50  ;;  %v4088_v60 = vadd.f32 %v4087_v55, %v6125_v39  ;;  %v4128_v61 = vpop.f32.mrf.mxu1  ;;  %4438 = vmatprep.subr.bf16.mxu1 %v5802_v44  ;;  %v5785_v39 = vcombine.low %v497_v48, %v505_v49  ;;  %v169_v44 = vld [vmem:[#allocation2 + $0x460] sm:$0xff]  ;;  %v5721_v48 = vcombine.low %v433_v36, %v441_v37  ;;  %v146_v55 = vld [vmem:[#allocation2 + $0x3a8] sm:$0xff] }
 0x177   :  { %v4089_v2 = vpop.f32.mrf.mxu0  ;;  %v425_v46 = vld [vmem:[#allocation2 + $0xc60] sm:$0xff]  ;;  %v5450_v49 = vcombine.high %v161_v43, %v169_v44  ;;  %v5419_v15 = vcombine.low %v130_v3, %v138_v5 }
 0x178   :  { %v6133_v7 = vadd.f32 %v4128_v61, %v4088_v60  ;;  %v4130_v8 = vpop.f32.mrf.mxu1  ;;  %4398 = vmatpush2.bf16.msra.mxu0 %v5545_v52  ;;  %v4903_v10 = vsel %vm4874_vm0, %v6130_v57, 0.0  ;;  %v5706_v50 = vcombine.high %v417_v45, %v425_v46  ;;  %v657_v51 = vld [vmem:[#allocation2 + $0x13a0] sm:$0xff]  ;;  %v5449_v60 = vcombine.low %v161_v43, %v169_v44 }
 0x179   :  { %4439 = vmatpush2.bf16.msra.mxu1 %v5801_v56  ;;  %v4090_v23 = vpop.f32.mrf.mxu0  ;;  %4904 = vadd.xlane.f32.xlu1 %v4903_v10  ;;  %v665_v52 = vld [vmem:[#allocation2 + $0x13e0] sm:$0xff]  ;;  %v154_v56 = vld [vmem:[#allocation2 + $0x3e8] sm:$0xff]  ;;  %v5705_v61 = vcombine.low %v417_v45, %v425_v46 }
 0x17a   :  { %v4131_v12 = vpop.f32.mrf.mxu1  ;;  %4399 = vmatprep.subr.bf16.mxu0 %v5530_v62  ;;  %4440 = vmatprep.subr.bf16.mxu1 %v5786_v63  ;;  %v4917_v21 = vsel %vm4874_vm0, %v6133_v7, 0.0  ;;  %v5946_v62 = vcombine.high %v657_v51, %v665_v52  ;;  %v5436_v63 = vcombine.high %v146_v55, %v154_v56  ;;  %v649_v2 = vld [vmem:[#allocation2 + $0x1360] sm:$0xff]  ;;  %v5945_v34 = vcombine.low %v657_v51, %v665_v52 }
 0x17b   :  { %v5435_v8 = vcombine.low %v146_v55, %v154_v56  ;;  %v5930_v10 = vcombine.high %v641_v0, %v649_v2  ;;  %v625_v23 = vld [vmem:[#allocation2 + $0x12a0] sm:$0xff]  ;;  %v114_v12 = vld [vmem:[#allocation2 + $0x2a8] sm:$0xff] }
 0x17c   :  { %4400 = vmatpush2.bf16.msra.mxu0 %v5529_v11  ;;  %v5420_v11 = vcombine.high %v130_v3, %v138_v5  ;;  %v601_v28 = vld [vmem:[#allocation2 + $0x11e0] sm:$0xff]  ;;  %v402_v3 = vld [vmem:[#allocation2 + $0xba8] sm:$0xff] }
 0x17d   :  { %4441 = vmatpush2.bf16.msra.mxu1 %v5785_v39  ;;  %4918 = vadd.xlane.f32.xlu1 %v4917_v21  ;;  %v633_v39 = vld [vmem:[#allocation2 + $0x12e0] sm:$0xff]  ;;  %v5882_v31 = vcombine.high %v593_v54, %v601_v28  ;;  %v410_v5 = vld [vmem:[#allocation2 + $0xbe8] sm:$0xff] }
 0x17e   :  { %4401 = vmatprep.subr.bf16.mxu0 %v5514_v13  ;;  %4442 = vmatprep.subr.bf16.mxu1 %v5770_v14  ;;  %v122_v13 = vld [vmem:[#allocation2 + $0x2e8] sm:$0xff]  ;;  %v5929_v14 = vcombine.low %v641_v0, %v649_v2  ;;  %v5914_v17 = vcombine.high %v625_v23, %v633_v39  ;;  %v617_v21 = vld [vmem:[#allocation2 + $0x1260] sm:$0xff] }
 0x17f   :  { %v5404_v18 = vcombine.high %v114_v12, %v122_v13  ;;  %v5898_v1 = vcombine.high %v609_v20, %v617_v21  ;;  %v577_v36 = vld [vmem:[#allocation2 + $0x1120] sm:$0xff] }
 0x180   :  { %4402 = vmatpush2.bf16.msra.mxu0 %v5513_v22  ;;  %v98_v22 = vld [vmem:[#allocation2 + $0x228] sm:$0xff]  ;;  %v585_v37 = vld [vmem:[#allocation2 + $0x1160] sm:$0xff] }
 0x181   :  { %4443 = vmatpush2.bf16.msra.mxu1 %v5769_v24  ;;  %4403 = vmatprep.subr.bf16.mxu0 %v5498_v53  ;;  %v106_v24 = vld [vmem:[#allocation2 + $0x268] sm:$0xff]  ;;  %v5913_v53 = vcombine.low %v625_v23, %v633_v39  ;;  %v5866_v43 = vcombine.high %v577_v36, %v585_v37  ;;  %v561_v45 = vld [vmem:[#allocation2 + $0x10a0] sm:$0xff]  ;;  %v5692_v23 = vcombine.high %v402_v3, %v410_v5 }
 0x182   :  { %4444 = vmatprep.subr.bf16.mxu1 %v5754_v26  ;;  %v5403_v26 = vcombine.low %v114_v12, %v122_v13  ;;  %v5388_v4 = vcombine.high %v98_v22, %v106_v24  ;;  %v569_v46 = vld [vmem:[#allocation2 + $0x10e0] sm:$0xff]  ;;  %v386_v12 = vld [vmem:[#allocation2 + $0xb28] sm:$0xff] }
 0x183   :  { %v5850_v51 = vcombine.high %v561_v45, %v569_v46  ;;  %v545_v55 = vld [vmem:[#allocation2 + $0x1020] sm:$0xff]  ;;  %v394_v13 = vld [vmem:[#allocation2 + $0xb68] sm:$0xff] }
 0x184   :  { %4404 = vmatpush2.bf16.msra.mxu0 %v5497_v29  ;;  %v82_v29 = vld [vmem:[#allocation2 + $0x1a8] sm:$0xff]  ;;  %v553_v56 = vld [vmem:[#allocation2 + $0x1060] sm:$0xff] }
 0x185   :  { %4445 = vmatpush2.bf16.msra.mxu1 %v5753_v6  ;;  %4405 = vmatprep.subr.bf16.mxu0 %v5482_v9  ;;  %v90_v6 = vld [vmem:[#allocation2 + $0x1e8] sm:$0xff]  ;;  %v5897_v9 = vcombine.low %v609_v20, %v617_v21  ;;  %v5834_v0 = vcombine.high %v545_v55, %v553_v56  ;;  %v5676_v20 = vcombine.high %v386_v12, %v394_v13 }
 0x186   :  { %4446 = vmatprep.subr.bf16.mxu1 %v5738_v30  ;;  %v5387_v30 = vcombine.low %v98_v22, %v106_v24  ;;  %v5372_v33 = vcombine.high %v82_v29, %v90_v6  ;;  %v370_v22 = vld [vmem:[#allocation2 + $0xaa8] sm:$0xff] }
 0x187   :  { %v378_v24 = vld [vmem:[#allocation2 + $0xae8] sm:$0xff] }
 0x188   :  { %4406 = vmatpush2.bf16.msra.mxu0 %v5481_v38  ;;  %v66_v38 = vld [vmem:[#allocation2 + $0x128] sm:$0xff] }
 0x189   :  { %4447 = vmatpush2.bf16.msra.mxu1 %v5737_v40  ;;  %4407 = vmatprep.subr.bf16.mxu0 %v5466_v41  ;;  %v74_v40 = vld [vmem:[#allocation2 + $0x168] sm:$0xff]  ;;  %v5881_v41 = vcombine.low %v593_v54, %v601_v28  ;;  %v5675_v54 = vcombine.low %v386_v12, %v394_v13 }
 0x18a   :  { %4448 = vmatprep.subr.bf16.mxu1 %v5722_v42  ;;  %v5371_v42 = vcombine.low %v82_v29, %v90_v6  ;;  %v5356_v44 = vcombine.high %v66_v38, %v74_v40  ;;  %v5660_v6 = vcombine.high %v370_v22, %v378_v24  ;;  %v290_v13 = vld [vmem:[#allocation2 + $0x828] sm:$0xff] }
 0x18c   :  { %4408 = vmatpush2.bf16.msra.mxu0 %v5465_v47  ;;  %v50_v47 = vld [vmem:[#allocation2 + $0xa8] sm:$0xff] }
 0x18d   :  { %4449 = vmatpush2.bf16.msra.mxu1 %v5721_v48  ;;  %4409 = vmatprep.subr.bf16.mxu0 %v5450_v49  ;;  %v58_v48 = vld [vmem:[#allocation2 + $0xe8] sm:$0xff]  ;;  %v5865_v49 = vcombine.low %v577_v36, %v585_v37 }
 0x18e   :  { %4450 = vmatprep.subr.bf16.mxu1 %v5706_v50  ;;  %v5355_v50 = vcombine.low %v66_v38, %v74_v40  ;;  %v5340_v52 = vcombine.high %v50_v47, %v58_v48  ;;  %v226_v36 = vld [vmem:[#allocation2 + $0x628] sm:$0xff]  ;;  %v5659_v40 = vcombine.low %v370_v22, %v378_v24 }
 0x18f   :  { %v234_v37 = vld [vmem:[#allocation2 + $0x668] sm:$0xff] }
 0x190   :  { %4410 = vmatpush2.bf16.msra.mxu0 %v5449_v60  ;;  %v34_v60 = vld [vmem:[#allocation2 + $0x28] sm:$0xff] }
 0x191   :  { %4451 = vmatpush2.bf16.msra.mxu1 %v5705_v61  ;;  %4461 = vmatprep.subr.bf16.mxu0 %v5946_v62  ;;  %v42_v61 = vld [vmem:[#allocation2 + $0x68] sm:$0xff]  ;;  %v5849_v62 = vcombine.low %v561_v45, %v569_v46  ;;  %v5516_v45 = vcombine.high %v226_v36, %v234_v37 }
 0x192   :  { %4502 = vmatprep.subr.bf16.mxu1 %v5436_v63  ;;  %v5339_v63 = vcombine.low %v50_v47, %v58_v48  ;;  %v5324_v2 = vcombine.high %v34_v60, %v42_v61  ;;  %v338_v46 = vld [vmem:[#allocation2 + $0x9a8] sm:$0xff] }
 0x193   :  { %4412 = vmatmul.mubr.bf16.vlgmr.msra.gmra.mxu0 %v6065_v16  ;;  %v346_v47 = vld [vmem:[#allocation2 + $0x9e8] sm:$0xff] }
 0x194   :  { %4453 = vmatmul.mubr.bf16.vlgmr.msra.gmra.mxu1 %v6069_v19  ;;  %4462 = vmatpush1.bf16.msra.mxu0 %v5945_v34  ;;  %v274_v34 = vld [vmem:[#allocation2 + $0x7a8] sm:$0xff] }
 0x195   :  { %4503 = vmatpush1.bf16.msra.mxu1 %v5435_v8  ;;  %4463 = vmatprep.subr.bf16.mxu0 %v5930_v10  ;;  %v282_v8 = vld [vmem:[#allocation2 + $0x7e8] sm:$0xff]  ;;  %v5833_v10 = vcombine.low %v545_v55, %v553_v56 }
 0x196   :  { %4504 = vmatprep.subr.bf16.mxu1 %v5420_v11  ;;  %4493 = vmatprep.mubr.bf16.mxu0 %v6023_v32  ;;  %v5323_v11 = vcombine.low %v34_v60, %v42_v61  ;;  %v5564_v39 = vcombine.high %v274_v34, %v282_v8  ;;  %v210_v48 = vld [vmem:[#allocation2 + $0x5a8] sm:$0xff] }
 0x197   :  { %4534 = vmatprep.mubr.bf16.mxu1 %v6055_v58  ;;  %v322_v56 = vld [vmem:[#allocation2 + $0x928] sm:$0xff] }
 0x198   :  { %4464 = vmatpush1.bf16.msra.mxu0 %v5929_v14  ;;  %v258_v14 = vld [vmem:[#allocation2 + $0x728] sm:$0xff] }
 0x199   :  { %4505 = vmatpush1.bf16.msra.mxu1 %v5419_v15  ;;  %4465 = vmatprep.subr.bf16.mxu0 %v5914_v17  ;;  %v266_v15 = vld [vmem:[#allocation2 + $0x768] sm:$0xff]  ;;  %v5691_v17 = vcombine.low %v402_v3, %v410_v5 }
 0x19a   :  { %4506 = vmatprep.subr.bf16.mxu1 %v5404_v18  ;;  %v5563_v18 = vcombine.low %v274_v34, %v282_v8  ;;  %v5548_v21 = vcombine.high %v258_v14, %v266_v15  ;;  %v5547_v29 = vcombine.low %v258_v14, %v266_v15  ;;  %v330_v60 = vld [vmem:[#allocation2 + $0x968] sm:$0xff] }
 0x19b   :  { %v194_v61 = vld [vmem:[#allocation2 + $0x528] sm:$0xff] }
 0x19c   :  { %4466 = vmatpush1.bf16.msra.mxu0 %v5913_v53  ;;  %v306_v5 = vld [vmem:[#allocation2 + $0x8a8] sm:$0xff] }
 0x19d   :  { %4507 = vmatpush1.bf16.msra.mxu1 %v5403_v26  ;;  %4467 = vmatprep.subr.bf16.mxu0 %v5898_v1  ;;  %v242_v26 = vld [vmem:[#allocation2 + $0x6a8] sm:$0xff] }
 0x19e   :  { %4508 = vmatprep.subr.bf16.mxu1 %v5388_v4  ;;  %v250_v1 = vld [vmem:[#allocation2 + $0x6e8] sm:$0xff] }
 0x19f   :  { %v314_v34 = vld [vmem:[#allocation2 + $0x8e8] sm:$0xff] }
 0x1a0   :  { %4468 = vmatpush1.bf16.msra.mxu0 %v5897_v9  ;;  %v178_v8 = vld [vmem:[#allocation2 + $0x4a8] sm:$0xff] }
 0x1a1   :  { %4509 = vmatpush1.bf16.msra.mxu1 %v5387_v30  ;;  %4469 = vmatprep.subr.bf16.mxu0 %v5882_v31  ;;  %v5532_v30 = vcombine.high %v242_v26, %v250_v1  ;;  %v354_v31 = vld [vmem:[#allocation2 + $0xa28] sm:$0xff] }
 0x1a2   :  { %4510 = vmatprep.subr.bf16.mxu1 %v5372_v33  ;;  %v298_v14 = vld [vmem:[#allocation2 + $0x868] sm:$0xff] }
 0x1a3   :  { %v162_v15 = vld [vmem:[#allocation2 + $0x428] sm:$0xff] }
 0x1a4   :  { %4470 = vmatpush1.bf16.msra.mxu0 %v5881_v41  ;;  %v530_v24 = vld [vmem:[#allocation2 + $0xfa8] sm:$0xff] }
 0x1a5   :  { %4511 = vmatpush1.bf16.msra.mxu1 %v5371_v42  ;;  %4471 = vmatprep.subr.bf16.mxu0 %v5866_v43  ;;  %v5531_v42 = vcombine.low %v242_v26, %v250_v1  ;;  %v538_v26 = vld [vmem:[#allocation2 + $0xfe8] sm:$0xff] }
 0x1a6   :  { %4512 = vmatprep.subr.bf16.mxu1 %v5356_v44  ;;  %v658_v1 = vld [vmem:[#allocation2 + $0x13a8] sm:$0xff] }
 0x1a8   :  { %4472 = vmatpush1.bf16.msra.mxu0 %v5865_v49  ;;  %v218_v49 = vld [vmem:[#allocation2 + $0x5e8] sm:$0xff] }
 0x1a9   :  { %4513 = vmatpush1.bf16.msra.mxu1 %v5355_v50  ;;  %4473 = vmatprep.subr.bf16.mxu0 %v5850_v51  ;;  %v5515_v51 = vcombine.low %v226_v36, %v234_v37  ;;  %v5500_v55 = vcombine.high %v210_v48, %v218_v49  ;;  %v642_v36 = vld [vmem:[#allocation2 + $0x1328] sm:$0xff] }
 0x1aa   :  { %4514 = vmatprep.subr.bf16.mxu1 %v5340_v52  ;;  %v5628_v52 = vcombine.high %v338_v46, %v346_v47  ;;  %v650_v37 = vld [vmem:[#allocation2 + $0x1368] sm:$0xff] }
 0x1ac   :  { %4474 = vmatpush1.bf16.msra.mxu0 %v5849_v62  ;;  %v202_v62 = vld [vmem:[#allocation2 + $0x568] sm:$0xff] }
 0x1ad   :  { %4515 = vmatpush1.bf16.msra.mxu1 %v5339_v63  ;;  %4475 = vmatprep.subr.bf16.mxu0 %v5834_v0  ;;  %v5627_v63 = vcombine.low %v338_v46, %v346_v47  ;;  %v5499_v0 = vcombine.low %v210_v48, %v218_v49  ;;  %v5484_v3 = vcombine.high %v194_v61, %v202_v62  ;;  %v506_v46 = vld [vmem:[#allocation2 + $0xee8] sm:$0xff] }
 0x1ae   :  { %4516 = vmatprep.subr.bf16.mxu1 %v5324_v2  ;;  %v5612_v2 = vcombine.high %v322_v56, %v330_v60  ;;  %v626_v47 = vld [vmem:[#allocation2 + $0x12a8] sm:$0xff] }
 0x1af   :  { %v634_v48 = vld [vmem:[#allocation2 + $0x12e8] sm:$0xff] }
 0x1b0   :  { %4476 = vmatpush1.bf16.msra.mxu0 %v5833_v10  ;;  %v186_v10 = vld [vmem:[#allocation2 + $0x4e8] sm:$0xff] }
 0x1b1   :  { %4517 = vmatpush1.bf16.msra.mxu1 %v5323_v11  ;;  %4543 = vmatprep.subr.bf16.mxu0 %v5692_v23  ;;  %v5611_v11 = vcombine.low %v322_v56, %v330_v60  ;;  %v5483_v23 = vcombine.low %v194_v61, %v202_v62  ;;  %v5468_v12 = vcombine.high %v178_v8, %v186_v10  ;;  %v482_v61 = vld [vmem:[#allocation2 + $0xe28] sm:$0xff] }
 0x1b2   :  { %4518 = vmatprep.subr.bf16.mxu1 %v5564_v39  ;;  %v5596_v39 = vcombine.high %v306_v5, %v314_v34  ;;  %v5916_v60 = vcombine.high %v626_v47, %v634_v48  ;;  %v610_v62 = vld [vmem:[#allocation2 + $0x1228] sm:$0xff] }
 0x1b3   :  { %v6143_v53 = vpop.f32.mrf.mxu0  ;;  %4494 = vmatmul.mubr.bf16.vlgmr.msra.gmra.mxu0 %v6122_v35  ;;  %v362_v35 = vld [vmem:[#allocation2 + $0xa68] sm:$0xff] }
 0x1b4   :  { %v6146_v4 = vpop.f32.mrf.mxu1  ;;  %4544 = vmatpush1.bf16.msra.mxu0 %v5691_v17  ;;  %4575 = vmatprep.mubr.bf16.mxu0 %v6059_v59  ;;  %v5644_v43 = vcombine.high %v354_v31, %v362_v35  ;;  %v5643_v50 = vcombine.low %v354_v31, %v362_v35  ;;  %v170_v17 = vld [vmem:[#allocation2 + $0x468] sm:$0xff] }
 0x1b5   :  { %4519 = vmatpush2.bf16.msra.mxu1 %v5563_v18  ;;  %v6149_v28 = vpop.f32.mrf.mxu0  ;;  %4545 = vmatprep.subr.bf16.mxu0 %v5676_v20  ;;  %v5595_v18 = vcombine.low %v306_v5, %v314_v34  ;;  %v5467_v20 = vcombine.low %v178_v8, %v186_v10  ;;  %v5452_v22 = vcombine.high %v162_v15, %v170_v17  ;;  %v514_v35 = vld [vmem:[#allocation2 + $0xf28] sm:$0xff] }
 0x1b6   :  { %v6151_v9 = vpop.f32.mrf.mxu1  ;;  %4520 = vmatprep.subr.bf16.mxu1 %v5548_v21  ;;  %v5580_v21 = vcombine.high %v290_v13, %v298_v14  ;;  %v5915_v5 = vcombine.low %v626_v47, %v634_v48  ;;  %v466_v10 = vld [vmem:[#allocation2 + $0xda8] sm:$0xff]  ;;  %v155_v47 = vld [vmem:[#allocation2 + $0x3f0] sm:$0xff] }
 0x1b7   :  { %v4171_v33 = vpop.f32.mrf.mxu0  ;;  %v4211_v49 = vadd.f32 %v6151_v9, %v6149_v28  ;;  %v490_v28 = vld [vmem:[#allocation2 + $0xe68] sm:$0xff]  ;;  %v403_v48 = vld [vmem:[#allocation2 + $0xbb0] sm:$0xff] }
 0x1b8   :  { %v4212_v38 = vpop.f32.mrf.mxu1  ;;  %4546 = vmatpush1.bf16.msra.mxu0 %v5675_v54  ;;  %v666_v54 = vld [vmem:[#allocation2 + $0x13e8] sm:$0xff]  ;;  %v5772_v34 = vcombine.high %v482_v61, %v490_v28 }
 0x1b9   :  { %4521 = vmatpush2.bf16.msra.mxu1 %v5547_v29  ;;  %v4172_v41 = vpop.f32.mrf.mxu0  ;;  %4547 = vmatprep.subr.bf16.mxu0 %v5660_v6  ;;  %v5579_v29 = vcombine.low %v290_v13, %v298_v14  ;;  %v5451_v6 = vcombine.low %v162_v15, %v170_v17  ;;  %v5948_v31 = vcombine.high %v658_v1, %v666_v54  ;;  %v522_v33 = vld [vmem:[#allocation2 + $0xf68] sm:$0xff] }
 0x1ba   :  { %v4213_v44 = vpop.f32.mrf.mxu1  ;;  %4522 = vmatprep.subr.bf16.mxu1 %v5532_v30  ;;  %v5820_v30 = vcombine.high %v530_v24, %v538_v26  ;;  %v5819_v38 = vcombine.low %v530_v24, %v538_v26  ;;  %v5804_v41 = vcombine.high %v514_v35, %v522_v33  ;;  %v450_v17 = vld [vmem:[#allocation2 + $0xd28] sm:$0xff] }
 0x1bb   :  { %v498_v44 = vld [vmem:[#allocation2 + $0xea8] sm:$0xff] }
 0x1bc   :  { %4548 = vmatpush1.bf16.msra.mxu0 %v5659_v40  ;;  %v5947_v40 = vcombine.low %v658_v1, %v666_v54  ;;  %v5788_v56 = vcombine.high %v498_v44, %v506_v46  ;;  %v434_v54 = vld [vmem:[#allocation2 + $0xca8] sm:$0xff] }
 0x1bd   :  { %4523 = vmatpush2.bf16.msra.mxu1 %v5531_v42  ;;  %4549 = vmatprep.subr.bf16.mxu0 %v5644_v43  ;;  %v4209_v42 = vadd.f32 %v6146_v4, %v6143_v53  ;;  %v5932_v43 = vcombine.high %v642_v36, %v650_v37  ;;  %v5931_v53 = vcombine.low %v642_v36, %v650_v37  ;;  %v418_v37 = vld [vmem:[#allocation2 + $0xc28] sm:$0xff] }
 0x1be   :  { %4524 = vmatprep.subr.bf16.mxu1 %v5516_v45 }
 0x1c0   :  { %4550 = vmatpush1.bf16.msra.mxu0 %v5643_v50 }
 0x1c1   :  { %4525 = vmatpush2.bf16.msra.mxu1 %v5515_v51  ;;  %4551 = vmatprep.subr.bf16.mxu0 %v5628_v52  ;;  %v5803_v51 = vcombine.low %v514_v35, %v522_v33 }
 0x1c2   :  { %4526 = vmatprep.subr.bf16.mxu1 %v5500_v55 }
 0x1c4   :  { %4552 = vmatpush1.bf16.msra.mxu0 %v5627_v63  ;;  %v618_v63 = vld [vmem:[#allocation2 + $0x1268] sm:$0xff] }
 0x1c5   :  { %4527 = vmatpush2.bf16.msra.mxu1 %v5499_v0  ;;  %4553 = vmatprep.subr.bf16.mxu0 %v5612_v2  ;;  %v5787_v2 = vcombine.low %v498_v44, %v506_v46  ;;  %v5900_v8 = vcombine.high %v610_v62, %v618_v63  ;;  %v5899_v13 = vcombine.low %v610_v62, %v618_v63  ;;  %v147_v46 = vld [vmem:[#allocation2 + $0x3b0] sm:$0xff] }
 0x1c6   :  { %4528 = vmatprep.subr.bf16.mxu1 %v5484_v3 }
 0x1c8   :  { %4554 = vmatpush1.bf16.msra.mxu0 %v5611_v11  ;;  %v474_v11 = vld [vmem:[#allocation2 + $0xde8] sm:$0xff] }
 0x1c9   :  { %4529 = vmatpush2.bf16.msra.mxu1 %v5483_v23  ;;  %4555 = vmatprep.subr.bf16.mxu0 %v5596_v39  ;;  %v594_v23 = vld [vmem:[#allocation2 + $0x11a8] sm:$0xff]  ;;  %v5756_v14 = vcombine.high %v466_v10, %v474_v11 }
 0x1ca   :  { %4530 = vmatprep.subr.bf16.mxu1 %v5468_v12  ;;  %v602_v39 = vld [vmem:[#allocation2 + $0x11e8] sm:$0xff]  ;;  %v5771_v12 = vcombine.low %v482_v61, %v490_v28  ;;  %v387_v61 = vld [vmem:[#allocation2 + $0xb30] sm:$0xff] }
 0x1cb   :  { %v5884_v15 = vcombine.high %v594_v23, %v602_v39  ;;  %v5883_v24 = vcombine.low %v594_v23, %v602_v39  ;;  %v395_v28 = vld [vmem:[#allocation2 + $0xb70] sm:$0xff] }
 0x1cc   :  { %4556 = vmatpush1.bf16.msra.mxu0 %v5595_v18  ;;  %v458_v18 = vld [vmem:[#allocation2 + $0xd68] sm:$0xff]  ;;  %v5677_v23 = vcombine.low %v387_v61, %v395_v28 }
 0x1cd   :  { %4531 = vmatpush2.bf16.msra.mxu1 %v5467_v20  ;;  %4557 = vmatprep.subr.bf16.mxu0 %v5580_v21  ;;  %v578_v20 = vld [vmem:[#allocation2 + $0x1128] sm:$0xff]  ;;  %v5740_v26 = vcombine.high %v450_v17, %v458_v18 }
 0x1ce   :  { %4532 = vmatprep.subr.bf16.mxu1 %v5452_v22  ;;  %v586_v21 = vld [vmem:[#allocation2 + $0x1168] sm:$0xff]  ;;  %v5755_v22 = vcombine.low %v466_v10, %v474_v11  ;;  %v6173_v10 = vld [vmem:[%s6418_s1 + $0x10] ss:$0 sps:$4 sm:$0x77]  }
 0x1cf   :  { %v5868_v1 = vcombine.high %v578_v20, %v586_v21  ;;  %v5867_v35 = vcombine.low %v578_v20, %v586_v21 }
 0x1d0   :  { %4558 = vmatpush1.bf16.msra.mxu0 %v5579_v29  ;;  %v442_v29 = vld [vmem:[#allocation2 + $0xce8] sm:$0xff] }
 0x1d1   :  { %4533 = vmatpush2.bf16.msra.mxu1 %v5451_v6  ;;  %4559 = vmatprep.subr.bf16.mxu0 %v5820_v30  ;;  %v562_v6 = vld [vmem:[#allocation2 + $0x10a8] sm:$0xff]  ;;  %v5724_v33 = vcombine.high %v434_v54, %v442_v29 }
 0x1d2   :  { %4584 = vmatprep.subr.bf16.mxu1 %v5948_v31  ;;  %v570_v30 = vld [vmem:[#allocation2 + $0x10e8] sm:$0xff]  ;;  %v5739_v31 = vcombine.low %v450_v17, %v458_v18  ;;  %v355_v17 = vld [vmem:[#allocation2 + $0xa30] sm:$0xff] }
 0x1d3   :  { %v4249_v45 = vpop.f32.mrf.mxu0  ;;  %v5852_v36 = vcombine.high %v562_v6, %v570_v30  ;;  %v363_v18 = vld [vmem:[#allocation2 + $0xa70] sm:$0xff] }
 0x1d4   :  { %v6157_v50 = vadd.f32 %v4249_v45, %v4209_v42  ;;  %4535 = vmatmul.mubr.bf16.vlgmr.msra.gmra.mxu1 %v6065_v16  ;;  %4560 = vmatpush2.bf16.msra.mxu0 %v5819_v38  ;;  %v426_v38 = vld [vmem:[#allocation2 + $0xc68] sm:$0xff]  ;;  %v5723_v42 = vcombine.low %v434_v54, %v442_v29  ;;  %v83_v54 = vld [vmem:[#allocation2 + $0x1b0] sm:$0xff] }
 0x1d5   :  { %4585 = vmatpush1.bf16.msra.mxu1 %v5947_v40  ;;  %v4251_v52 = vpop.f32.mrf.mxu0  ;;  %4561 = vmatprep.subr.bf16.mxu0 %v5804_v41  ;;  %v546_v40 = vld [vmem:[#allocation2 + $0x1028] sm:$0xff]  ;;  %v5708_v44 = vcombine.high %v418_v37, %v426_v38  ;;  %v91_v29 = vld [vmem:[#allocation2 + $0x1f0] sm:$0xff] }
 0x1d6   :  { %v6160_v4 = vadd.f32 %v4251_v52, %v4211_v49  ;;  %4586 = vmatprep.subr.bf16.mxu1 %v5932_v43  ;;  %v4931_v55 = vsel %vm4874_vm0, %v6157_v50, 0.0  ;;  %4616 = vmatprep.mubr.bf16.mxu1 %v6023_v32  ;;  %v554_v41 = vld [vmem:[#allocation2 + $0x1068] sm:$0xff]  ;;  %v5851_v43 = vcombine.low %v562_v6, %v570_v30  ;;  %v411_v49 = vld [vmem:[#allocation2 + $0xbf0] sm:$0xff] }
 0x1d7   :  { %v4253_v9 = vpop.f32.mrf.mxu0  ;;  %4932 = vadd.xlane.f32.xlu0 %v4931_v55  ;;  %v5836_v45 = vcombine.high %v546_v40, %v554_v41  ;;  %v5835_v52 = vcombine.low %v546_v40, %v554_v41  ;;  %v5694_v55 = vcombine.high %v403_v48, %v411_v49  ;;  %v5693_v62 = vcombine.low %v403_v48, %v411_v49  ;;  %v339_v6 = vld [vmem:[#allocation2 + $0x9b0] sm:$0xff] }
 0x1d8   :  { %4562 = vmatpush2.bf16.msra.mxu0 %v5803_v51  ;;  %v4945_v0 = vsel %vm4874_vm0, %v6160_v4, 0.0  ;;  %v5707_v51 = vcombine.low %v418_v37, %v426_v38  ;;  %v5437_v9 = vcombine.low %v147_v46, %v155_v47  ;;  %v347_v30 = vld [vmem:[#allocation2 + $0x9f0] sm:$0xff] }
 0x1d9   :  { %4587 = vmatpush1.bf16.msra.mxu1 %v5931_v53  ;;  %v4254_v3 = vpop.f32.mrf.mxu0  ;;  %4946 = vadd.xlane.f32.xlu1 %v4945_v0  ;;  %v5438_v53 = vcombine.high %v147_v46, %v155_v47  ;;  %v5678_v0 = vcombine.high %v387_v61, %v395_v28  ;;  %v67_v37 = vld [vmem:[#allocation2 + $0x130] sm:$0xff] }
 0x1da   :  { %4563 = vmatprep.subr.bf16.mxu0 %v5788_v56  ;;  %4588 = vmatprep.subr.bf16.mxu1 %v5916_v60  ;;  %v131_v56 = vld [vmem:[#allocation2 + $0x330] sm:$0xff] }
 0x1db   :  { %v139_v60 = vld [vmem:[#allocation2 + $0x370] sm:$0xff] }
 0x1dc   :  { %4564 = vmatpush2.bf16.msra.mxu0 %v5787_v2  ;;  %v5422_v63 = vcombine.high %v131_v56, %v139_v60  ;;  %v115_v2 = vld [vmem:[#allocation2 + $0x2b0] sm:$0xff]  ;;  %v5421_v11 = vcombine.low %v131_v56, %v139_v60 }
 0x1dd   :  { %4589 = vmatpush1.bf16.msra.mxu1 %v5915_v5  ;;  %4565 = vmatprep.subr.bf16.mxu0 %v5772_v34  ;;  %v123_v3 = vld [vmem:[#allocation2 + $0x2f0] sm:$0xff] }
 0x1de   :  { %4590 = vmatprep.subr.bf16.mxu1 %v5900_v8  ;;  %v371_v5 = vld [vmem:[#allocation2 + $0xab0] sm:$0xff]  ;;  %v5406_v39 = vcombine.high %v115_v2, %v123_v3  ;;  %v5405_v21 = vcombine.low %v115_v2, %v123_v3 }
 0x1df   :  { %v379_v34 = vld [vmem:[#allocation2 + $0xaf0] sm:$0xff] }
 0x1e0   :  { %4566 = vmatpush2.bf16.msra.mxu0 %v5771_v12  ;;  %v75_v38 = vld [vmem:[#allocation2 + $0x170] sm:$0xff] }
 0x1e1   :  { %4591 = vmatpush1.bf16.msra.mxu1 %v5899_v13  ;;  %4567 = vmatprep.subr.bf16.mxu0 %v5756_v14  ;;  %v5662_v13 = vcombine.high %v371_v5, %v379_v34  ;;  %v99_v14 = vld [vmem:[#allocation2 + $0x230] sm:$0xff] }
 0x1e2   :  { %4592 = vmatprep.subr.bf16.mxu1 %v5884_v15  ;;  %v107_v15 = vld [vmem:[#allocation2 + $0x270] sm:$0xff] }
 0x1e3   :  { %v323_v40 = vld [vmem:[#allocation2 + $0x930] sm:$0xff] }
 0x1e4   :  { %4568 = vmatpush2.bf16.msra.mxu0 %v5755_v22  ;;  %v5661_v22 = vcombine.low %v371_v5, %v379_v34  ;;  %v331_v41 = vld [vmem:[#allocation2 + $0x970] sm:$0xff] }
 0x1e5   :  { %4593 = vmatpush1.bf16.msra.mxu1 %v5883_v24  ;;  %4569 = vmatprep.subr.bf16.mxu0 %v5740_v26  ;;  %v5390_v24 = vcombine.high %v99_v14, %v107_v15  ;;  %v51_v46 = vld [vmem:[#allocation2 + $0xb0] sm:$0xff] }
 0x1e6   :  { %4594 = vmatprep.subr.bf16.mxu1 %v5868_v1  ;;  %v5646_v1 = vcombine.high %v355_v17, %v363_v18  ;;  %v59_v47 = vld [vmem:[#allocation2 + $0xf0] sm:$0xff] }
 0x1e7   :  { %v307_v48 = vld [vmem:[#allocation2 + $0x8b0] sm:$0xff] }
 0x1e8   :  { %4570 = vmatpush2.bf16.msra.mxu0 %v5739_v31  ;;  %v5389_v31 = vcombine.low %v99_v14, %v107_v15  ;;  %v315_v49 = vld [vmem:[#allocation2 + $0x8f0] sm:$0xff] }
 0x1e9   :  { %4595 = vmatpush1.bf16.msra.mxu1 %v5867_v35  ;;  %4571 = vmatprep.subr.bf16.mxu0 %v5724_v33  ;;  %v5645_v35 = vcombine.low %v355_v17, %v363_v18  ;;  %v5374_v33 = vcombine.high %v83_v54, %v91_v29  ;;  %v35_v56 = vld [vmem:[#allocation2 + $0x30] sm:$0xff] }
 0x1ea   :  { %4596 = vmatprep.subr.bf16.mxu1 %v5852_v36  ;;  %v5630_v36 = vcombine.high %v339_v6, %v347_v30  ;;  %v43_v60 = vld [vmem:[#allocation2 + $0x70] sm:$0xff] }
 0x1eb   :  { %v291_v61 = vld [vmem:[#allocation2 + $0x830] sm:$0xff] }
 0x1ec   :  { %4572 = vmatpush2.bf16.msra.mxu0 %v5723_v42  ;;  %v5373_v42 = vcombine.low %v83_v54, %v91_v29  ;;  %v299_v28 = vld [vmem:[#allocation2 + $0x870] sm:$0xff] }
 0x1ed   :  { %4597 = vmatpush1.bf16.msra.mxu1 %v5851_v43  ;;  %4573 = vmatprep.subr.bf16.mxu0 %v5708_v44  ;;  %v5629_v43 = vcombine.low %v339_v6, %v347_v30  ;;  %v5358_v44 = vcombine.high %v67_v37, %v75_v38  ;;  %v275_v2 = vld [vmem:[#allocation2 + $0x7b0] sm:$0xff] }
 0x1ee   :  { %4598 = vmatprep.subr.bf16.mxu1 %v5836_v45  ;;  %v5614_v45 = vcombine.high %v323_v40, %v331_v41  ;;  %v283_v3 = vld [vmem:[#allocation2 + $0x7f0] sm:$0xff] }
 0x1ef   :  { %v531_v5 = vld [vmem:[#allocation2 + $0xfb0] sm:$0xff] }
 0x1f0   :  { %4574 = vmatpush2.bf16.msra.mxu0 %v5707_v51  ;;  %v5357_v51 = vcombine.low %v67_v37, %v75_v38  ;;  %v539_v34 = vld [vmem:[#allocation2 + $0xff0] sm:$0xff] }
 0x1f1   :  { %4599 = vmatpush1.bf16.msra.mxu1 %v5835_v52  ;;  %4625 = vmatprep.subr.bf16.mxu0 %v5438_v53  ;;  %v5613_v52 = vcombine.low %v323_v40, %v331_v41  ;;  %v5342_v53 = vcombine.high %v51_v46, %v59_v47  ;;  %v259_v14 = vld [vmem:[#allocation2 + $0x730] sm:$0xff] }
 0x1f2   :  { %4666 = vmatprep.subr.bf16.mxu1 %v5694_v55  ;;  %v5598_v55 = vcombine.high %v307_v48, %v315_v49  ;;  %v267_v15 = vld [vmem:[#allocation2 + $0x770] sm:$0xff] }
 0x1f3   :  { %4576 = vmatmul.mubr.bf16.vlgmr.msra.gmra.mxu0 %v6069_v19  ;;  %v515_v17 = vld [vmem:[#allocation2 + $0xf30] sm:$0xff] }
 0x1f4   :  { %v6168_v8 = vpop.f32.mrf.mxu1  ;;  %4617 = vmatmul.mubr.bf16.vlgmr.msra.gmra.mxu1 %v6173_v10  ;;  %4626 = vmatpush1.bf16.msra.mxu0 %v5437_v9  ;;  %v5341_v9 = vcombine.low %v51_v46, %v59_v47  ;;  %v523_v18 = vld [vmem:[#allocation2 + $0xf70] sm:$0xff] }
 0x1f5   :  { %4667 = vmatpush1.bf16.msra.mxu1 %v5693_v62  ;;  %4627 = vmatprep.subr.bf16.mxu0 %v5422_v63  ;;  %v5597_v62 = vcombine.low %v307_v48, %v315_v49  ;;  %v5326_v63 = vcombine.high %v35_v56, %v43_v60  ;;  %v251_v54 = vld [vmem:[#allocation2 + $0x6f0] sm:$0xff] }
 0x1f6   :  { %v6176_v12 = vpop.f32.mrf.mxu1  ;;  %4668 = vmatprep.subr.bf16.mxu1 %v5678_v0  ;;  %4657 = vmatprep.mubr.bf16.mxu0 %v6055_v58  ;;  %v5582_v0 = vcombine.high %v291_v61, %v299_v28  ;;  %v499_v29 = vld [vmem:[#allocation2 + $0xeb0] sm:$0xff] }
 0x1f7   :  { %4698 = vmatprep.mubr.bf16.mxu1 %v6059_v59  ;;  %v507_v6 = vld [vmem:[#allocation2 + $0xef0] sm:$0xff] }
 0x1f8   :  { %v4294_v20 = vpop.f32.mrf.mxu1  ;;  %4628 = vmatpush1.bf16.msra.mxu0 %v5421_v11  ;;  %v5325_v11 = vcombine.low %v35_v56, %v43_v60  ;;  %v483_v46 = vld [vmem:[#allocation2 + $0xe30] sm:$0xff] }
 0x1f9   :  { %4669 = vmatpush1.bf16.msra.mxu1 %v5677_v23  ;;  %4629 = vmatprep.subr.bf16.mxu0 %v5406_v39  ;;  %v5581_v23 = vcombine.low %v291_v61, %v299_v28  ;;  %v5566_v39 = vcombine.high %v275_v2, %v283_v3  ;;  %v5565_v20 = vcombine.low %v275_v2, %v283_v3  ;;  %v211_v61 = vld [vmem:[#allocation2 + $0x5b0] sm:$0xff] }
 0x1fa   :  { %v4295_v26 = vpop.f32.mrf.mxu1  ;;  %4670 = vmatprep.subr.bf16.mxu1 %v5662_v13  ;;  %v5822_v13 = vcombine.high %v531_v5, %v539_v34  ;;  %v219_v28 = vld [vmem:[#allocation2 + $0x5f0] sm:$0xff] }
 0x1fb   :  { %v243_v26 = vld [vmem:[#allocation2 + $0x6b0] sm:$0xff]  ;;  %v5502_v2 = vcombine.high %v211_v61, %v219_v28 }
 0x1fc   :  { %4630 = vmatpush1.bf16.msra.mxu0 %v5405_v21  ;;  %v5821_v21 = vcombine.low %v531_v5, %v539_v34  ;;  %v5534_v41 = vcombine.high %v243_v26, %v251_v54  ;;  %v195_v5 = vld [vmem:[#allocation2 + $0x530] sm:$0xff] }
 0x1fd   :  { %4671 = vmatpush1.bf16.msra.mxu1 %v5661_v22  ;;  %4631 = vmatprep.subr.bf16.mxu0 %v5390_v24  ;;  %v5550_v22 = vcombine.high %v259_v14, %v267_v15  ;;  %v5806_v24 = vcombine.high %v515_v17, %v523_v18  ;;  %v203_v34 = vld [vmem:[#allocation2 + $0x570] sm:$0xff] }
 0x1fe   :  { %4672 = vmatprep.subr.bf16.mxu1 %v5646_v1 }
 0x200   :  { %4632 = vmatpush1.bf16.msra.mxu0 %v5389_v31 }
 0x201   :  { %4673 = vmatpush1.bf16.msra.mxu1 %v5645_v35  ;;  %4633 = vmatprep.subr.bf16.mxu0 %v5374_v33  ;;  %v5549_v35 = vcombine.low %v259_v14, %v267_v15  ;;  %v5486_v14 = vcombine.high %v195_v5, %v203_v34 }
 0x202   :  { %4674 = vmatprep.subr.bf16.mxu1 %v5630_v36  ;;  %v5805_v36 = vcombine.low %v515_v17, %v523_v18  ;;  %v179_v17 = vld [vmem:[#allocation2 + $0x4b0] sm:$0xff] }
 0x203   :  { %v187_v18 = vld [vmem:[#allocation2 + $0x4f0] sm:$0xff] }
 0x204   :  { %4634 = vmatpush1.bf16.msra.mxu0 %v5373_v42  ;;  %v5790_v42 = vcombine.high %v499_v29, %v507_v6 }
 0x205   :  { %4675 = vmatpush1.bf16.msra.mxu1 %v5629_v43  ;;  %4635 = vmatprep.subr.bf16.mxu0 %v5358_v44  ;;  %v227_v43 = vld [vmem:[#allocation2 + $0x630] sm:$0xff] }
 0x206   :  { %4676 = vmatprep.subr.bf16.mxu1 %v5614_v45  ;;  %v235_v44 = vld [vmem:[#allocation2 + $0x670] sm:$0xff] }
 0x208   :  { %4636 = vmatpush1.bf16.msra.mxu0 %v5357_v51  ;;  %v5533_v51 = vcombine.low %v243_v26, %v251_v54  ;;  %v5470_v26 = vcombine.high %v179_v17, %v187_v18  ;;  %v163_v54 = vld [vmem:[#allocation2 + $0x430] sm:$0xff] }
 0x209   :  { %4677 = vmatpush1.bf16.msra.mxu1 %v5613_v52  ;;  %4637 = vmatprep.subr.bf16.mxu0 %v5342_v53  ;;  %v5518_v53 = vcombine.high %v227_v43, %v235_v44 }
 0x20a   :  { %4678 = vmatprep.subr.bf16.mxu1 %v5598_v55 }
 0x20c   :  { %4638 = vmatpush1.bf16.msra.mxu0 %v5341_v9  ;;  %v467_v9 = vld [vmem:[#allocation2 + $0xdb0] sm:$0xff] }
 0x20d   :  { %4679 = vmatpush1.bf16.msra.mxu1 %v5597_v62  ;;  %4639 = vmatprep.subr.bf16.mxu0 %v5326_v63  ;;  %v475_v62 = vld [vmem:[#allocation2 + $0xdf0] sm:$0xff]  ;;  %v5517_v63 = vcombine.low %v227_v43, %v235_v44 }
 0x20e   :  { %4680 = vmatprep.subr.bf16.mxu1 %v5582_v0  ;;  %v5758_v3 = vcombine.high %v467_v9, %v475_v62 }
 0x210   :  { %4640 = vmatpush1.bf16.msra.mxu0 %v5325_v11  ;;  %v451_v11 = vld [vmem:[#allocation2 + $0xd30] sm:$0xff] }
 0x211   :  { %4681 = vmatpush1.bf16.msra.mxu1 %v5581_v23  ;;  %4641 = vmatprep.subr.bf16.mxu0 %v5566_v39  ;;  %v459_v23 = vld [vmem:[#allocation2 + $0xd70] sm:$0xff]  ;;  %v5501_v39 = vcombine.low %v211_v61, %v219_v28  ;;  %v116_v61 = vld [vmem:[#allocation2 + $0x2b8] sm:$0xff] }
 0x212   :  { %4682 = vmatprep.subr.bf16.mxu1 %v5822_v13  ;;  %v5757_v13 = vcombine.low %v467_v9, %v475_v62  ;;  %v5742_v15 = vcombine.high %v451_v11, %v459_v23  ;;  %v124_v28 = vld [vmem:[#allocation2 + $0x2f8] sm:$0xff] }
 0x213   :  { %v4331_v1 = vpop.f32.mrf.mxu0 }
 0x214   :  { %v4332_v30 = vadd.f32 %v4331_v1, %v6168_v8  ;;  %v4372_v31 = vpop.f32.mrf.mxu1  ;;  %4642 = vmatpush2.bf16.msra.mxu0 %v5565_v20  ;;  %v491_v8 = vld [vmem:[#allocation2 + $0xe70] sm:$0xff] }
 0x215   :  { %4683 = vmatpush2.bf16.msra.mxu1 %v5821_v21  ;;  %v4333_v33 = vpop.f32.mrf.mxu0  ;;  %4643 = vmatprep.subr.bf16.mxu0 %v5550_v22  ;;  %v5774_v60 = vcombine.high %v483_v46, %v491_v8  ;;  %v5773_v0 = vcombine.low %v483_v46, %v491_v8  ;;  %v435_v20 = vld [vmem:[#allocation2 + $0xcb0] sm:$0xff]  ;;  %v5485_v22 = vcombine.low %v195_v5, %v203_v34  ;;  %v100_v5 = vld [vmem:[#allocation2 + $0x238] sm:$0xff] }
 0x216   :  { %v6181_v37 = vadd.f32 %v4372_v31, %v4332_v30  ;;  %v4334_v38 = vadd.f32 %v4333_v33, %v6176_v12  ;;  %v4374_v40 = vpop.f32.mrf.mxu1  ;;  %4684 = vmatprep.subr.bf16.mxu1 %v5806_v24  ;;  %v5789_v12 = vcombine.low %v499_v29, %v507_v6  ;;  %v443_v21 = vld [vmem:[#allocation2 + $0xcf0] sm:$0xff]  ;;  %v5741_v24 = vcombine.low %v451_v11, %v459_v23  ;;  %v108_v34 = vld [vmem:[#allocation2 + $0x278] sm:$0xff] }
 0x217   :  { %v4335_v45 = vpop.f32.mrf.mxu0  ;;  %v5726_v1 = vcombine.high %v435_v20, %v443_v21  ;;  %v171_v29 = vld [vmem:[#allocation2 + $0x470] sm:$0xff]  ;;  %v5469_v31 = vcombine.low %v179_v17, %v187_v18  ;;  %v5407_v23 = vcombine.low %v116_v61, %v124_v28  ;;  %v84_v17 = vld [vmem:[#allocation2 + $0x1b8] sm:$0xff] }
 0x218   :  { %v6184_v47 = vadd.f32 %v4374_v40, %v4334_v38  ;;  %v4376_v48 = vpop.f32.mrf.mxu1  ;;  %4644 = vmatpush2.bf16.msra.mxu0 %v5549_v35  ;;  %v4959_v49 = vsel %vm4874_vm0, %v6181_v37, 0.0  ;;  %v419_v6 = vld [vmem:[#allocation2 + $0xc30] sm:$0xff]  ;;  %v5725_v35 = vcombine.low %v435_v20, %v443_v21  ;;  %v5454_v33 = vcombine.high %v163_v54, %v171_v29  ;;  %v92_v18 = vld [vmem:[#allocation2 + $0x1f8] sm:$0xff] }
 0x219   :  { %4685 = vmatpush2.bf16.msra.mxu1 %v5805_v36  ;;  %v4336_v52 = vpop.f32.mrf.mxu0  ;;  %4960 = vadd.xlane.f32.xlu0 %v4959_v49  ;;  %v427_v30 = vld [vmem:[#allocation2 + $0xc70] sm:$0xff]  ;;  %v5453_v43 = vcombine.low %v163_v54, %v171_v29  ;;  %v132_v49 = vld [vmem:[#allocation2 + $0x338] sm:$0xff]  ;;  %v5391_v21 = vcombine.low %v100_v5, %v108_v34 }
 0x21a   :  { %v4377_v55 = vpop.f32.mrf.mxu1  ;;  %4645 = vmatprep.subr.bf16.mxu0 %v5534_v41  ;;  %4686 = vmatprep.subr.bf16.mxu1 %v5790_v42  ;;  %v4973_v56 = vsel %vm4874_vm0, %v6184_v47, 0.0  ;;  %v5710_v36 = vcombine.high %v419_v6, %v427_v30  ;;  %v659_v38 = vld [vmem:[#allocation2 + $0x13b0] sm:$0xff]  ;;  %v148_v41 = vld [vmem:[#allocation2 + $0x3b8] sm:$0xff]  ;;  %v5709_v44 = vcombine.low %v419_v6, %v427_v30  ;;  %v5375_v6 = vcombine.low %v84_v17, %v92_v18 }
 0x21b   :  { %4974 = vadd.xlane.f32.xlu1 %v4973_v56  ;;  %v667_v40 = vld [vmem:[#allocation2 + $0x13f0] sm:$0xff]  ;;  %v156_v42 = vld [vmem:[#allocation2 + $0x3f8] sm:$0xff] }
 0x21c   :  { %4646 = vmatpush2.bf16.msra.mxu0 %v5533_v51  ;;  %v5950_v45 = vcombine.high %v659_v38, %v667_v40  ;;  %v5440_v46 = vcombine.high %v148_v41, %v156_v42  ;;  %v643_v8 = vld [vmem:[#allocation2 + $0x1330] sm:$0xff]  ;;  %v140_v51 = vld [vmem:[#allocation2 + $0x378] sm:$0xff]  ;;  %v5949_v52 = vcombine.low %v659_v38, %v667_v40 }
 0x21d   :  { %4687 = vmatpush2.bf16.msra.mxu1 %v5789_v12  ;;  %4647 = vmatprep.subr.bf16.mxu0 %v5518_v53  ;;  %v651_v48 = vld [vmem:[#allocation2 + $0x1370] sm:$0xff]  ;;  %v5439_v12 = vcombine.low %v148_v41, %v156_v42  ;;  %v5424_v55 = vcombine.high %v132_v49, %v140_v51  ;;  %v5423_v62 = vcombine.low %v132_v49, %v140_v51  ;;  %v76_v54 = vld [vmem:[#allocation2 + $0x178] sm:$0xff] }
 0x21e   :  { %4688 = vmatprep.subr.bf16.mxu1 %v5774_v60  ;;  %v5934_v53 = vcombine.high %v643_v8, %v651_v48  ;;  %v627_v56 = vld [vmem:[#allocation2 + $0x12b0] sm:$0xff]  ;;  %v5933_v9 = vcombine.low %v643_v8, %v651_v48  ;;  %v60_v38 = vld [vmem:[#allocation2 + $0xf8] sm:$0xff] }
 0x21f   :  { %v635_v60 = vld [vmem:[#allocation2 + $0x12f0] sm:$0xff]  ;;  %v44_v8 = vld [vmem:[#allocation2 + $0x78] sm:$0xff] }
 0x220   :  { %4648 = vmatpush2.bf16.msra.mxu0 %v5517_v63  ;;  %v5918_v63 = vcombine.high %v627_v56, %v635_v60  ;;  %v5917_v11 = vcombine.low %v627_v56, %v635_v60  ;;  %v284_v56 = vld [vmem:[#allocation2 + $0x7f8] sm:$0xff] }
 0x221   :  { %4689 = vmatpush2.bf16.msra.mxu1 %v5773_v0  ;;  %4649 = vmatprep.subr.bf16.mxu0 %v5502_v2  ;;  %v5408_v0 = vcombine.high %v116_v61, %v124_v28  ;;  %v611_v2 = vld [vmem:[#allocation2 + $0x1230] sm:$0xff] }
 0x222   :  { %4690 = vmatprep.subr.bf16.mxu1 %v5758_v3  ;;  %v619_v3 = vld [vmem:[#allocation2 + $0x1270] sm:$0xff] }
 0x223   :  { %v5901_v20 = vcombine.low %v611_v2, %v619_v3 }
 0x224   :  { %4650 = vmatpush2.bf16.msra.mxu0 %v5501_v39  ;;  %v5902_v39 = vcombine.high %v611_v2, %v619_v3  ;;  %v268_v2 = vld [vmem:[#allocation2 + $0x778] sm:$0xff] }
 0x225   :  { %4691 = vmatpush2.bf16.msra.mxu1 %v5757_v13  ;;  %4651 = vmatprep.subr.bf16.mxu0 %v5486_v14  ;;  %v5392_v13 = vcombine.high %v100_v5, %v108_v34  ;;  %v595_v14 = vld [vmem:[#allocation2 + $0x11b0] sm:$0xff] }
 0x226   :  { %4692 = vmatprep.subr.bf16.mxu1 %v5742_v15  ;;  %v603_v15 = vld [vmem:[#allocation2 + $0x11f0] sm:$0xff] }
 0x227   :  { %v5885_v29 = vcombine.low %v595_v14, %v603_v15 }
 0x228   :  { %4652 = vmatpush2.bf16.msra.mxu0 %v5485_v22  ;;  %v5886_v22 = vcombine.high %v595_v14, %v603_v15  ;;  %v244_v14 = vld [vmem:[#allocation2 + $0x6b8] sm:$0xff] }
 0x229   :  { %4693 = vmatpush2.bf16.msra.mxu1 %v5741_v24  ;;  %4653 = vmatprep.subr.bf16.mxu0 %v5470_v26  ;;  %v579_v24 = vld [vmem:[#allocation2 + $0x1130] sm:$0xff]  ;;  %v252_v15 = vld [vmem:[#allocation2 + $0x6f8] sm:$0xff] }
 0x22a   :  { %4694 = vmatprep.subr.bf16.mxu1 %v5726_v1  ;;  %v587_v26 = vld [vmem:[#allocation2 + $0x1170] sm:$0xff]  ;;  %v68_v1 = vld [vmem:[#allocation2 + $0x138] sm:$0xff] }
 0x22b   :  { %v5870_v30 = vcombine.high %v579_v24, %v587_v26  ;;  %v5869_v40 = vcombine.low %v579_v24, %v587_v26  ;;  %v5359_v41 = vcombine.low %v68_v1, %v76_v54  ;;  %v5536_v24 = vcombine.high %v244_v14, %v252_v15  ;;  %v356_v26 = vld [vmem:[#allocation2 + $0xa38] sm:$0xff] }
 0x22c   :  { %4654 = vmatpush2.bf16.msra.mxu0 %v5469_v31  ;;  %v5360_v31 = vcombine.high %v68_v1, %v76_v54  ;;  %v228_v54 = vld [vmem:[#allocation2 + $0x638] sm:$0xff] }
 0x22d   :  { %4695 = vmatpush2.bf16.msra.mxu1 %v5725_v35  ;;  %4655 = vmatprep.subr.bf16.mxu0 %v5454_v33  ;;  %v563_v35 = vld [vmem:[#allocation2 + $0x10b0] sm:$0xff] }
 0x22e   :  { %4696 = vmatprep.subr.bf16.mxu1 %v5710_v36  ;;  %v571_v33 = vld [vmem:[#allocation2 + $0x10f0] sm:$0xff]  ;;  %v52_v36 = vld [vmem:[#allocation2 + $0xb8] sm:$0xff] }
 0x22f   :  { %v5854_v42 = vcombine.high %v563_v35, %v571_v33  ;;  %v5853_v48 = vcombine.low %v563_v35, %v571_v33  ;;  %v5343_v49 = vcombine.low %v52_v36, %v60_v38 }
 0x230   :  { %4656 = vmatpush2.bf16.msra.mxu0 %v5453_v43  ;;  %v5344_v43 = vcombine.high %v52_v36, %v60_v38  ;;  %v340_v38 = vld [vmem:[#allocation2 + $0x9b8] sm:$0xff] }
 0x231   :  { %4697 = vmatpush2.bf16.msra.mxu1 %v5709_v44  ;;  %4707 = vmatprep.subr.bf16.mxu0 %v5950_v45  ;;  %v547_v44 = vld [vmem:[#allocation2 + $0x1030] sm:$0xff] }
 0x232   :  { %4748 = vmatprep.subr.bf16.mxu1 %v5440_v46  ;;  %v555_v45 = vld [vmem:[#allocation2 + $0x1070] sm:$0xff]  ;;  %v36_v46 = vld [vmem:[#allocation2 + $0x38] sm:$0xff] }
 0x233   :  { %4658 = vmatmul.mubr.bf16.vlgmr.msra.gmra.mxu0 %v6065_v16  ;;  %v5838_v51 = vcombine.high %v547_v44, %v555_v45  ;;  %v5837_v60 = vcombine.low %v547_v44, %v555_v45  ;;  %v5327_v61 = vcombine.low %v36_v46, %v44_v8 }
 0x234   :  { %4699 = vmatmul.mubr.bf16.vlgmr.msra.gmra.mxu1 %v6069_v19  ;;  %4708 = vmatpush1.bf16.msra.mxu0 %v5949_v52  ;;  %v5328_v52 = vcombine.high %v36_v46, %v44_v8  ;;  %v324_v8 = vld [vmem:[#allocation2 + $0x938] sm:$0xff] }
 0x235   :  { %4749 = vmatpush1.bf16.msra.mxu1 %v5439_v12  ;;  %4709 = vmatprep.subr.bf16.mxu0 %v5934_v53  ;;  %v404_v12 = vld [vmem:[#allocation2 + $0xbb8] sm:$0xff] }
 0x236   :  { %4750 = vmatprep.subr.bf16.mxu1 %v5424_v55  ;;  %4739 = vmatprep.mubr.bf16.mxu0 %v6023_v32  ;;  %v412_v53 = vld [vmem:[#allocation2 + $0xbf8] sm:$0xff] }
 0x237   :  { %4780 = vmatprep.mubr.bf16.mxu1 %v6055_v58  ;;  %v5376_v58 = vcombine.high %v84_v17, %v92_v18  ;;  %v276_v55 = vld [vmem:[#allocation2 + $0x7b8] sm:$0xff]  ;;  %v5696_v28 = vcombine.high %v404_v12, %v412_v53  ;;  %v5695_v3 = vcombine.low %v404_v12, %v412_v53 }
 0x238   :  { %4710 = vmatpush1.bf16.msra.mxu0 %v5933_v9  ;;  %v5568_v9 = vcombine.high %v276_v55, %v284_v56  ;;  %v5567_v5 = vcombine.low %v276_v55, %v284_v56  ;;  %v308_v56 = vld [vmem:[#allocation2 + $0x8b8] sm:$0xff] }
 0x239   :  { %4751 = vmatpush1.bf16.msra.mxu1 %v5423_v62  ;;  %4711 = vmatprep.subr.bf16.mxu0 %v5918_v63  ;;  %v388_v62 = vld [vmem:[#allocation2 + $0xb38] sm:$0xff] }
 0x23a   :  { %4752 = vmatprep.subr.bf16.mxu1 %v5408_v0  ;;  %v396_v63 = vld [vmem:[#allocation2 + $0xb78] sm:$0xff] }
 0x23b   :  { %v260_v0 = vld [vmem:[#allocation2 + $0x738] sm:$0xff]  ;;  %v5680_v34 = vcombine.high %v388_v62, %v396_v63  ;;  %v5679_v18 = vcombine.low %v388_v62, %v396_v63 }
 0x23c   :  { %4712 = vmatpush1.bf16.msra.mxu0 %v5917_v11  ;;  %v5552_v11 = vcombine.high %v260_v0, %v268_v2 }
 0x23d   :  { %4753 = vmatpush1.bf16.msra.mxu1 %v5407_v23  ;;  %4713 = vmatprep.subr.bf16.mxu0 %v5902_v39  ;;  %v372_v23 = vld [vmem:[#allocation2 + $0xab8] sm:$0xff] }
 0x23e   :  { %4754 = vmatprep.subr.bf16.mxu1 %v5392_v13  ;;  %v380_v39 = vld [vmem:[#allocation2 + $0xaf8] sm:$0xff] }
 0x240   :  { %4714 = vmatpush1.bf16.msra.mxu0 %v5901_v20 }
 0x241   :  { %4755 = vmatpush1.bf16.msra.mxu1 %v5391_v21  ;;  %4715 = vmatprep.subr.bf16.mxu0 %v5886_v22  ;;  %v5551_v21 = vcombine.low %v260_v0, %v268_v2  ;;  %v5664_v22 = vcombine.high %v372_v23, %v380_v39  ;;  %v292_v2 = vld [vmem:[#allocation2 + $0x838] sm:$0xff] }
 0x242   :  { %4756 = vmatprep.subr.bf16.mxu1 %v5376_v58 }
 0x244   :  { %4716 = vmatpush1.bf16.msra.mxu0 %v5885_v29  ;;  %v236_v29 = vld [vmem:[#allocation2 + $0x678] sm:$0xff] }
 0x245   :  { %4757 = vmatpush1.bf16.msra.mxu1 %v5375_v6  ;;  %4717 = vmatprep.subr.bf16.mxu0 %v5870_v30  ;;  %v5663_v30 = vcombine.low %v372_v23, %v380_v39  ;;  %v5520_v36 = vcombine.high %v228_v54, %v236_v29  ;;  %v5519_v44 = vcombine.low %v228_v54, %v236_v29  ;;  %v516_v54 = vld [vmem:[#allocation2 + $0xf38] sm:$0xff] }
 0x246   :  { %4758 = vmatprep.subr.bf16.mxu1 %v5360_v31  ;;  %v5535_v31 = vcombine.low %v244_v14, %v252_v15  ;;  %v532_v15 = vld [vmem:[#allocation2 + $0xfb8] sm:$0xff] }
 0x247   :  { %v524_v29 = vld [vmem:[#allocation2 + $0xf78] sm:$0xff] }
 0x248   :  { %4718 = vmatpush1.bf16.msra.mxu0 %v5869_v40  ;;  %v348_v40 = vld [vmem:[#allocation2 + $0x9f8] sm:$0xff] }
 0x249   :  { %4759 = vmatpush1.bf16.msra.mxu1 %v5359_v41  ;;  %4719 = vmatprep.subr.bf16.mxu0 %v5854_v42  ;;  %v212_v41 = vld [vmem:[#allocation2 + $0x5b8] sm:$0xff]  ;;  %v5632_v45 = vcombine.high %v340_v38, %v348_v40 }
 0x24a   :  { %4760 = vmatprep.subr.bf16.mxu1 %v5344_v43  ;;  %v220_v42 = vld [vmem:[#allocation2 + $0x5f8] sm:$0xff] }
 0x24b   :  { %v5504_v46 = vcombine.high %v212_v41, %v220_v42  ;;  %v5503_v12 = vcombine.low %v212_v41, %v220_v42  ;;  %v508_v41 = vld [vmem:[#allocation2 + $0xef8] sm:$0xff] }
 0x24c   :  { %4720 = vmatpush1.bf16.msra.mxu0 %v5853_v48  ;;  %v332_v48 = vld [vmem:[#allocation2 + $0x978] sm:$0xff] }
 0x24d   :  { %4761 = vmatpush1.bf16.msra.mxu1 %v5343_v49  ;;  %4721 = vmatprep.subr.bf16.mxu0 %v5838_v51  ;;  %v196_v49 = vld [vmem:[#allocation2 + $0x538] sm:$0xff]  ;;  %v5616_v53 = vcombine.high %v324_v8, %v332_v48 }
 0x24e   :  { %4762 = vmatprep.subr.bf16.mxu1 %v5328_v52  ;;  %v204_v51 = vld [vmem:[#allocation2 + $0x578] sm:$0xff]  ;;  %v5631_v52 = vcombine.low %v340_v38, %v348_v40 }
 0x24f   :  { %v5488_v55 = vcombine.high %v196_v49, %v204_v51  ;;  %v5487_v62 = vcombine.low %v196_v49, %v204_v51  ;;  %v500_v38 = vld [vmem:[#allocation2 + $0xeb8] sm:$0xff] }
 0x250   :  { %4722 = vmatpush1.bf16.msra.mxu0 %v5837_v60  ;;  %v316_v60 = vld [vmem:[#allocation2 + $0x8f8] sm:$0xff]  ;;  %v5792_v49 = vcombine.high %v500_v38, %v508_v41 }
 0x251   :  { %4763 = vmatpush1.bf16.msra.mxu1 %v5327_v61  ;;  %4789 = vmatprep.subr.bf16.mxu0 %v5696_v28  ;;  %v180_v61 = vld [vmem:[#allocation2 + $0x4b8] sm:$0xff]  ;;  %v5600_v63 = vcombine.high %v308_v56, %v316_v60 }
 0x252   :  { %4764 = vmatprep.subr.bf16.mxu1 %v5568_v9  ;;  %v188_v28 = vld [vmem:[#allocation2 + $0x4f8] sm:$0xff]  ;;  %v5615_v9 = vcombine.low %v324_v8, %v332_v48 }
 0x253   :  { %v6194_v13 = vpop.f32.mrf.mxu0  ;;  %4740 = vmatmul.mubr.bf16.vlgmr.msra.gmra.mxu0 %v6173_v10  ;;  %v364_v10 = vld [vmem:[#allocation2 + $0xa78] sm:$0xff]  ;;  %v5472_v0 = vcombine.high %v180_v61, %v188_v28  ;;  %v5471_v23 = vcombine.low %v180_v61, %v188_v28 }
 0x254   :  { %v6197_v17 = vpop.f32.mrf.mxu1  ;;  %4790 = vmatpush1.bf16.msra.mxu0 %v5695_v3  ;;  %4821 = vmatprep.mubr.bf16.mxu0 %v6059_v59  ;;  %v5648_v35 = vcombine.high %v356_v26, %v364_v10  ;;  %v5647_v43 = vcombine.low %v356_v26, %v364_v10  ;;  %v300_v3 = vld [vmem:[#allocation2 + $0x878] sm:$0xff] }
 0x255   :  { %4765 = vmatpush2.bf16.msra.mxu1 %v5567_v5  ;;  %v6200_v20 = vpop.f32.mrf.mxu0  ;;  %4791 = vmatprep.subr.bf16.mxu0 %v5680_v34  ;;  %v164_v5 = vld [vmem:[#allocation2 + $0x438] sm:$0xff]  ;;  %v5584_v39 = vcombine.high %v292_v2, %v300_v3 }
 0x256   :  { %v6202_v58 = vpop.f32.mrf.mxu1  ;;  %4766 = vmatprep.subr.bf16.mxu1 %v5552_v11  ;;  %v172_v34 = vld [vmem:[#allocation2 + $0x478] sm:$0xff]  ;;  %v5599_v11 = vcombine.low %v308_v56, %v316_v60 }
 0x257   :  { %v4417_v1 = vpop.f32.mrf.mxu0  ;;  %v5456_v14 = vcombine.high %v164_v5, %v172_v34  ;;  %v5455_v26 = vcombine.low %v164_v5, %v172_v34  ;;  %v628_v42 = vld [vmem:[#allocation2 + $0x12b8] sm:$0xff] }
 0x258   :  { %v4458_v6 = vpop.f32.mrf.mxu1  ;;  %4792 = vmatpush1.bf16.msra.mxu0 %v5679_v18  ;;  %v540_v18 = vld [vmem:[#allocation2 + $0xff8] sm:$0xff] }
 0x259   :  { %4767 = vmatpush2.bf16.msra.mxu1 %v5551_v21  ;;  %v4418_v59 = vpop.f32.mrf.mxu0  ;;  %4793 = vmatprep.subr.bf16.mxu0 %v5664_v22  ;;  %v660_v21 = vld [vmem:[#allocation2 + $0x13b8] sm:$0xff]  ;;  %v5824_v10 = vcombine.high %v532_v15, %v540_v18 }
 0x25a   :  { %v4459_v33 = vpop.f32.mrf.mxu1  ;;  %4768 = vmatprep.subr.bf16.mxu1 %v5536_v24  ;;  %v668_v22 = vld [vmem:[#allocation2 + $0x13f8] sm:$0xff]  ;;  %v5583_v24 = vcombine.low %v292_v2, %v300_v3  ;;  %v5823_v59 = vcombine.low %v532_v15, %v540_v18 }
 0x25b   :  { %v5952_v1 = vcombine.high %v660_v21, %v668_v22  ;;  %v644_v6 = vld [vmem:[#allocation2 + $0x1338] sm:$0xff]  ;;  %v4455_v33 = vadd.f32 %v6197_v17, %v6194_v13 }
 0x25c   :  { %4794 = vmatpush1.bf16.msra.mxu0 %v5663_v30  ;;  %v652_v30 = vld [vmem:[#allocation2 + $0x1378] sm:$0xff] }
 0x25d   :  { %4769 = vmatpush2.bf16.msra.mxu1 %v5535_v31  ;;  %4795 = vmatprep.subr.bf16.mxu0 %v5648_v35  ;;  %v5951_v31 = vcombine.low %v660_v21, %v668_v22  ;;  %v5808_v35 = vcombine.high %v516_v54, %v524_v29  ;;  %v5935_v13 = vcombine.low %v644_v6, %v652_v30  ;;  %v452_v34 = vld [vmem:[#allocation2 + $0xd38] sm:$0xff] }
 0x25e   :  { %4770 = vmatprep.subr.bf16.mxu1 %v5520_v36  ;;  %v5936_v36 = vcombine.high %v644_v6, %v652_v30  ;;  %v436_v22 = vld [vmem:[#allocation2 + $0xcb8] sm:$0xff] }
 0x25f   :  { %v420_v30 = vld [vmem:[#allocation2 + $0xc38] sm:$0xff] }
 0x260   :  { %4796 = vmatpush1.bf16.msra.mxu0 %v5647_v43  ;;  %v636_v43 = vld [vmem:[#allocation2 + $0x12f8] sm:$0xff] }
 0x261   :  { %4771 = vmatpush2.bf16.msra.mxu1 %v5519_v44  ;;  %4797 = vmatprep.subr.bf16.mxu0 %v5632_v45  ;;  %v4457_v44 = vadd.f32 %v6202_v58, %v6200_v20  ;;  %v5920_v51 = vcombine.high %v628_v42, %v636_v43  ;;  %v492_v20 = vld [vmem:[#allocation2 + $0xe78] sm:$0xff]  ;;  %v5919_v60 = vcombine.low %v628_v42, %v636_v43 }
 0x262   :  { %4772 = vmatprep.subr.bf16.mxu1 %v5504_v46  ;;  %v5807_v46 = vcombine.low %v516_v54, %v524_v29 }
 0x264   :  { %4798 = vmatpush1.bf16.msra.mxu0 %v5631_v52  ;;  %v484_v52 = vld [vmem:[#allocation2 + $0xe38] sm:$0xff] }
 0x265   :  { %4773 = vmatpush2.bf16.msra.mxu1 %v5503_v12  ;;  %4799 = vmatprep.subr.bf16.mxu0 %v5616_v53  ;;  %v620_v12 = vld [vmem:[#allocation2 + $0x1278] sm:$0xff]  ;;  %v5776_v61 = vcombine.high %v484_v52, %v492_v20 }
 0x266   :  { %4774 = vmatprep.subr.bf16.mxu1 %v5488_v55  ;;  %v5791_v55 = vcombine.low %v500_v38, %v508_v41 }
 0x268   :  { %4800 = vmatpush1.bf16.msra.mxu0 %v5615_v9  ;;  %v468_v9 = vld [vmem:[#allocation2 + $0xdb8] sm:$0xff] }
 0x269   :  { %4775 = vmatpush2.bf16.msra.mxu1 %v5487_v62  ;;  %4801 = vmatprep.subr.bf16.mxu0 %v5600_v63  ;;  %v476_v62 = vld [vmem:[#allocation2 + $0xdf8] sm:$0xff] }
 0x26a   :  { %4776 = vmatprep.subr.bf16.mxu1 %v5472_v0  ;;  %v604_v63 = vld [vmem:[#allocation2 + $0x11f8] sm:$0xff]  ;;  %v5775_v0 = vcombine.low %v484_v52, %v492_v20  ;;  %v5760_v3 = vcombine.high %v468_v9, %v476_v62 }
 0x26c   :  { %4802 = vmatpush1.bf16.msra.mxu0 %v5599_v11  ;;  %v460_v11 = vld [vmem:[#allocation2 + $0xd78] sm:$0xff] }
 0x26d   :  { %4777 = vmatpush2.bf16.msra.mxu1 %v5471_v23  ;;  %4803 = vmatprep.subr.bf16.mxu0 %v5584_v39  ;;  %v580_v23 = vld [vmem:[#allocation2 + $0x1138] sm:$0xff]  ;;  %v5744_v18 = vcombine.high %v452_v34, %v460_v11 }
 0x26e   :  { %4778 = vmatprep.subr.bf16.mxu1 %v5456_v14  ;;  %v588_v39 = vld [vmem:[#allocation2 + $0x1178] sm:$0xff]  ;;  %v5759_v14 = vcombine.low %v468_v9, %v476_v62 }
 0x26f   :  { %v5872_v21 = vcombine.high %v580_v23, %v588_v39  ;;  %v5871_v54 = vcombine.low %v580_v23, %v588_v39 }
 0x270   :  { %4804 = vmatpush1.bf16.msra.mxu0 %v5583_v24  ;;  %v444_v24 = vld [vmem:[#allocation2 + $0xcf8] sm:$0xff] }
 0x271   :  { %4779 = vmatpush2.bf16.msra.mxu1 %v5455_v26  ;;  %4805 = vmatprep.subr.bf16.mxu0 %v5824_v10  ;;  %v564_v26 = vld [vmem:[#allocation2 + $0x10b8] sm:$0xff]  ;;  %v5728_v29 = vcombine.high %v436_v22, %v444_v24 }
 0x272   :  { %4830 = vmatprep.subr.bf16.mxu1 %v5952_v1  ;;  %v572_v10 = vld [vmem:[#allocation2 + $0x10f8] sm:$0xff]  ;;  %v5743_v1 = vcombine.low %v452_v34, %v460_v11 }
 0x273   :  { %v4495_v40 = vpop.f32.mrf.mxu0  ;;  %v5856_v6 = vcombine.high %v564_v26, %v572_v10 }
 0x274   :  { %v6208_v45 = vadd.f32 %v4495_v40, %v4455_v33  ;;  %4781 = vmatmul.mubr.bf16.vlgmr.msra.gmra.mxu1 %v6065_v16  ;;  %4806 = vmatpush2.bf16.msra.mxu0 %v5823_v59  ;;  %v612_v16 = vld [vmem:[#allocation2 + $0x1238] sm:$0xff]  ;;  %v5727_v33 = vcombine.low %v436_v22, %v444_v24 }
 0x275   :  { %4831 = vmatpush1.bf16.msra.mxu1 %v5951_v31  ;;  %v4497_v8 = vpop.f32.mrf.mxu0  ;;  %4807 = vmatprep.subr.bf16.mxu0 %v5808_v35  ;;  %v5904_v28 = vcombine.high %v612_v16, %v620_v12  ;;  %v5903_v2 = vcombine.low %v612_v16, %v620_v12  ;;  %v428_v59 = vld [vmem:[#allocation2 + $0xc78] sm:$0xff] }
 0x276   :  { %v6211_v17 = vadd.f32 %v4497_v8, %v4457_v44  ;;  %4832 = vmatprep.subr.bf16.mxu1 %v5936_v36  ;;  %v4987_v48 = vsel %vm4874_vm0, %v6208_v45, 0.0  ;;  %4862 = vmatprep.mubr.bf16.mxu1 %v6023_v32  ;;  %v596_v32 = vld [vmem:[#allocation2 + $0x11b8] sm:$0xff]  ;;  %v5855_v36 = vcombine.low %v564_v26, %v572_v10  ;;  %v5712_v38 = vcombine.high %v420_v30, %v428_v59  ;;  %v5997_v44 = vld [vmem:[%s6418_s1 + $0x10] ss:$0 sps:$4 sm:$0x77]  }
 0x277   :  { %v4499_v58 = vpop.f32.mrf.mxu0  ;;  %4988 = vadd.xlane.f32.xlu0 %v4987_v48  ;;  %v5888_v5 = vcombine.high %v596_v32, %v604_v63  ;;  %v5887_v15 = vcombine.low %v596_v32, %v604_v63  ;;  %v548_v31 = vld [vmem:[#allocation2 + $0x1038] sm:$0xff]  ;;  %v5711_v41 = vcombine.low %v420_v30, %v428_v59 }
 0x278   :  { %4808 = vmatpush2.bf16.msra.mxu0 %v5807_v46  ;;  %v5001_v53 = vsel %vm4874_vm0, %v6211_v17, 0.0  ;;  %v556_v35 = vld [vmem:[#allocation2 + $0x1078] sm:$0xff] }
 0x279   :  { %4833 = vmatpush1.bf16.msra.mxu1 %v5935_v13  ;;  %v4500_v56 = vpop.f32.mrf.mxu0  ;;  %5002 = vadd.xlane.f32.xlu1 %v5001_v53  ;;  %v5840_v40 = vcombine.high %v548_v31, %v556_v35  ;;  %v5839_v42 = vcombine.low %v548_v31, %v556_v35 }
 0x27a   :  { %4809 = vmatprep.subr.bf16.mxu0 %v5792_v49  ;;  %4834 = vmatprep.subr.bf16.mxu1 %v5920_v51 }
 0x27c   :  { %4810 = vmatpush2.bf16.msra.mxu0 %v5791_v55 }
 0x27d   :  { %4835 = vmatpush1.bf16.msra.mxu1 %v5919_v60  ;;  %4811 = vmatprep.subr.bf16.mxu0 %v5776_v61 }
 0x27e   :  { %4836 = vmatprep.subr.bf16.mxu1 %v5904_v28 }
 0x280   :  { %4812 = vmatpush2.bf16.msra.mxu0 %v5775_v0 }
 0x281   :  { %4837 = vmatpush1.bf16.msra.mxu1 %v5903_v2  ;;  %4813 = vmatprep.subr.bf16.mxu0 %v5760_v3 }
 0x282   :  { %4838 = vmatprep.subr.bf16.mxu1 %v5888_v5 }
 0x284   :  { %4814 = vmatpush2.bf16.msra.mxu0 %v5759_v14 }
 0x285   :  { %4839 = vmatpush1.bf16.msra.mxu1 %v5887_v15  ;;  %4815 = vmatprep.subr.bf16.mxu0 %v5744_v18 }
 0x286   :  { %4840 = vmatprep.subr.bf16.mxu1 %v5872_v21 }
 0x288   :  { %4816 = vmatpush2.bf16.msra.mxu0 %v5743_v1 }
 0x289   :  { %4841 = vmatpush1.bf16.msra.mxu1 %v5871_v54  ;;  %4817 = vmatprep.subr.bf16.mxu0 %v5728_v29  ;;  %v4877_v54 = vpop.xlane.xlu0 %4876  ;;  %v4905_v29 = vpop.xlane.xlu1 %4904 }
 0x28a   :  { %4842 = vmatprep.subr.bf16.mxu1 %v5856_v6  ;;  %v4871_v6 = vlaneseq  ;;  %v4878_v59 = vmul.f32 0.01, %v4877_v54 }
 0x28c   :  { %4818 = vmatpush2.bf16.msra.mxu0 %v5727_v33  ;;  %v6239_v31 = vand.u32 127, %v4871_v6 }
 0x28d   :  { %4843 = vmatpush1.bf16.msra.mxu1 %v5855_v36  ;;  %4819 = vmatprep.subr.bf16.mxu0 %v5712_v38  ;;  %v4891_v30 = vpop.xlane.xlu0 %4890  ;;  %v4919_v33 = vpop.xlane.xlu1 %4918  ;;  %v4879_v36 = vsub.f32 %v6106_v25, %v4878_v59  ;;  %v4906_v38 = vmul.f32 0.01, %v4905_v29 }
 0x28e   :  { %4844 = vmatprep.subr.bf16.mxu1 %v5840_v40  ;;  %v4892_v35 = vmul.f32 0.01, %v4891_v30  ;;  %vm4873_vm1 = vcmp.lt.s32.totalorder %v6239_v31, 100 }
 0x290   :  { %4820 = vmatpush2.bf16.msra.mxu0 %v5711_v41  ;;  %v4893_v41 = vsub.f32 %v6109_v27, %v4892_v35 }
 0x291   :  { %4845 = vmatpush1.bf16.msra.mxu1 %v5839_v42  ;;  %v4933_v40 = vpop.xlane.xlu0 %4932  ;;  %v4920_v42 = vmul.f32 0.01, %v4919_v33 }
 0x293   :  { %4822 = vmatmul.mubr.bf16.vlgmr.msra.gmra.mxu0 %v6069_v19  ;;  %v4921_v27 = vsub.f32 %v6133_v7, %v4920_v42 }
 0x294   :  { %v4536_v43 = vpop.f32.mrf.mxu1  ;;  %4863 = vmatmul.mubr.bf16.vlgmr.msra.gmra.mxu1 %v5997_v44  ;;  %v4947_v44 = vpop.xlane.xlu1 %4946 }
 0x296   :  { %v4538_v46 = vpop.f32.mrf.mxu1 }
 0x298   :  { %v4540_v8 = vpop.f32.mrf.mxu1 }
 0x29a   :  { %v4541_v13 = vpop.f32.mrf.mxu1 }
 0x29b   :  { %v4907_v13 = vsub.f32 %v6130_v57, %v4906_v38 }
 0x2a2   :  { %v4961_v25 = vpop.xlane.xlu0 %4960 }
 0x2a4   :  { %v4975_v57 = vpop.xlane.xlu1 %4974 }
 0x2b3   :  { %v4577_v48 = vpop.f32.mrf.mxu0 }
 0x2b4   :  { %v4578_v49 = vadd.f32 %v4577_v48, %v4536_v43  ;;  %v4618_v51 = vpop.f32.mrf.mxu1  ;;  %v4934_v48 = vmul.f32 0.01, %v4933_v40 }
 0x2b5   :  { %v4579_v52 = vpop.f32.mrf.mxu0 }
 0x2b6   :  { %v6222_v20 = vadd.f32 %v4618_v51, %v4578_v49  ;;  %v4580_v58 = vadd.f32 %v4579_v52, %v4538_v46  ;;  %v4620_v16 = vpop.f32.mrf.mxu1  ;;  %v6247_v51 = vsel %vm4873_vm1, %v4879_v36, 0.0 }
 0x2b7   :  { %v4581_v12 = vpop.f32.mrf.mxu0 }
 0x2b8   :  { %v6224_v53 = vadd.f32 %v4620_v16, %v4580_v58  ;;  %v4622_v19 = vpop.f32.mrf.mxu1  ;;  %v5015_v55 = vsel %vm4874_vm0, %v6222_v20, 0.0  ;;  %v4948_v12 = vmul.f32 0.01, %v4947_v44 }
 0x2b9   :  { %v4582_v56 = vpop.f32.mrf.mxu0  ;;  %5016 = vadd.xlane.f32.xlu0 %v5015_v55  ;;  %v6254_v55 = vsel %vm4873_vm1, %v4893_v41, 0.0 }
 0x2ba   :  { %v4623_v60 = vpop.f32.mrf.mxu1  ;;  %v5029_v61 = vsel %vm4874_vm0, %v6224_v53, 0.0 }
 0x2bb   :  { %5030 = vadd.xlane.f32.xlu1 %v5029_v61 }
 0x2f3   :  { %v4659_v28 = vpop.f32.mrf.mxu0 }
 0x2f4   :  { %v4700_v9 = vpop.f32.mrf.mxu1 }
 0x2f5   :  { %v4661_v62 = vpop.f32.mrf.mxu0  ;;  %v4701_v5 = vadd.f32 %v4700_v9, %v4659_v28  ;;  %v4881_v28 = vmul.f32 %v6247_v51, %v6247_v51  ;;  %v4935_v9 = vsub.f32 %v6157_v50, %v4934_v48  ;;  %v6274_v50 = vsel %vm4873_vm1, %v4921_v27, 0.0 }
 0x2f6   :  { %v4702_v32 = vpop.f32.mrf.mxu1 }
 0x2f7   :  { %v4663_v63 = vpop.f32.mrf.mxu0  ;;  %v4703_v11 = vadd.f32 %v4702_v32, %v4661_v62  ;;  %v4962_v62 = vmul.f32 0.01, %v4961_v25  ;;  %v6265_v32 = vsel %vm4873_vm1, %v4907_v13, 0.0 }
 0x2f8   :  { %v4704_v0 = vpop.f32.mrf.mxu1 }
 0x2f9   :  { %v4664_v2 = vpop.f32.mrf.mxu0 }
 0x2fa   :  { %v4705_v3 = vpop.f32.mrf.mxu1 }
 0x2fb   :  { %v4895_v3 = vmul.f32 %v6254_v55, %v6254_v55 }
 0x300   :  { %v4989_v63 = vpop.xlane.xlu0 %4988 }
 0x313   :  { %v4741_v34 = vpop.f32.mrf.mxu0 }
 0x314   :  { %v6230_v23 = vadd.f32 %v4741_v34, %v4701_v5  ;;  %v4949_v5 = vsub.f32 %v6160_v4, %v4948_v12  ;;  %v4976_v34 = vmul.f32 0.01, %v4975_v57 }
 0x315   :  { %v4743_v39 = vpop.f32.mrf.mxu0 }
 0x316   :  { %v6232_v14 = vadd.f32 %v4743_v39, %v4703_v11  ;;  %v5043_v15 = vsel %vm4874_vm0, %v6230_v23, 0.0  ;;  %v5003_v11 = vpop.xlane.xlu1 %5002  ;;  %v4882_v39 = vsel %vm4874_vm0, %v4881_v28, 0.0  ;;  %v6290_v54 = vsel %vm4873_vm1, %v4949_v5, 0.0 }
 0x317   :  { %v4745_v18 = vpop.f32.mrf.mxu0  ;;  %5044 = vadd.xlane.f32.xlu0 %v5043_v15  ;;  %v4909_v15 = vmul.f32 %v6265_v32, %v6265_v32  ;;  %v4951_v36 = vmul.f32 %v6290_v54, %v6290_v54 }
 0x318   :  { %v5057_v21 = vsel %vm4874_vm0, %v6232_v14, 0.0  ;;  %v4963_v18 = vsub.f32 %v6181_v37, %v4962_v62 }
 0x319   :  { %v4746_v22 = vpop.f32.mrf.mxu0  ;;  %5058 = vadd.xlane.f32.xlu1 %v5057_v21  ;;  %v4990_v21 = vmul.f32 0.01, %v4989_v63  ;;  %v4910_v29 = vsel %vm4874_vm0, %v4909_v15, 0.0 }
 0x31a   :  { %v6282_v22 = vsel %vm4873_vm1, %v4935_v9, 0.0  ;;  %v6298_v33 = vsel %vm4873_vm1, %v4963_v18, 0.0 }
 0x31b   :  { %v4937_v30 = vmul.f32 %v6282_v22, %v6282_v22  ;;  %v4991_v59 = vsub.f32 %v6208_v45, %v4990_v21  ;;  %v4965_v42 = vmul.f32 %v6298_v33, %v6298_v33 }
 0x31d   :  { %v4938_v45 = vsel %vm4874_vm0, %v4937_v30, 0.0  ;;  %v6314_v44 = vsel %vm4873_vm1, %v4991_v59, 0.0  ;;  %v4966_v48 = vsel %vm4874_vm0, %v4965_v42, 0.0 }
 0x334   :  { %v4782_v24 = vpop.f32.mrf.mxu1 }
 0x336   :  { %v4784_v26 = vpop.f32.mrf.mxu1 }
 0x338   :  { %v4786_v10 = vpop.f32.mrf.mxu1 }
 0x339   :  { %v4977_v10 = vsub.f32 %v6184_v47, %v4976_v34 }
 0x33a   :  { %v4787_v1 = vpop.f32.mrf.mxu1 }
 0x33b   :  { %v5004_v1 = vmul.f32 0.01, %v5003_v11  ;;  %v6306_v41 = vsel %vm4873_vm1, %v4977_v10, 0.0 }
 0x33d   :  { %v5005_v38 = vsub.f32 %v6211_v17, %v5004_v1  ;;  %v4952_v17 = vsel %vm4874_vm0, %v4951_v36, 0.0 }
 0x33f   :  { %v6322_v13 = vsel %vm4873_vm1, %v5005_v38, 0.0 }
 0x342   :  { %v5017_v4 = vpop.xlane.xlu0 %5016 }
 0x343   :  { %v5018_v35 = vmul.f32 0.01, %v5017_v4 }
 0x344   :  { %v5031_v37 = vpop.xlane.xlu1 %5030 }
 0x345   :  { %v5032_v40 = vmul.f32 0.01, %v5031_v37 }
 0x353   :  { %v4823_v43 = vpop.f32.mrf.mxu0 }
 0x354   :  { %v4824_v46 = vadd.f32 %v4823_v43, %v4782_v24  ;;  %v4864_v8 = vpop.f32.mrf.mxu1  ;;  %v4896_v24 = vsel %vm4874_vm0, %v4895_v3, 0.0  ;;  %v5019_v43 = vsub.f32 %v6222_v20, %v5018_v35  ;;  %v4993_v20 = vmul.f32 %v6314_v44, %v6314_v44 }
 0x355   :  { %v4825_v49 = vpop.f32.mrf.mxu0 }
 0x356   :  { %v6249_v52 = vadd.f32 %v4864_v8, %v4824_v46  ;;  %v4826_v58 = vadd.f32 %v4825_v49, %v4784_v26  ;;  %v4866_v16 = vpop.f32.mrf.mxu1  ;;  %v4923_v26 = vmul.f32 %v6274_v50, %v6274_v50  ;;  %v4979_v46 = vmul.f32 %v6306_v41, %v6306_v41 }
 0x357   :  { %v4827_v19 = vpop.f32.mrf.mxu0  ;;  %v5033_v8 = vsub.f32 %v6224_v53, %v5032_v40  ;;  %v6329_v49 = vsel %vm4873_vm1, %v5019_v43, 0.0  ;;  %v5007_v53 = vmul.f32 %v6322_v13, %v6322_v13 }
 0x358   :  { %v6256_v56 = vadd.f32 %v4866_v16, %v4826_v58  ;;  %v4868_v60 = vpop.f32.mrf.mxu1  ;;  %v5071_v61 = vsel %vm4874_vm0, %v6249_v52, 0.0  ;;  %v4924_v47 = vsel %vm4874_vm0, %v4923_v26, 0.0  ;;  %v4980_v25 = vsel %vm4874_vm0, %v4979_v46, 0.0 }
 0x359   :  { %v4828_v7 = vpop.f32.mrf.mxu0  ;;  %5072 = vadd.xlane.f32.xlu0 %v5071_v61  ;;  %v6336_v58 = vsel %vm4873_vm1, %v5033_v8, 0.0  ;;  %v4994_v16 = vsel %vm4874_vm0, %v4993_v20, 0.0  ;;  %v5021_v27 = vmul.f32 %v6329_v49, %v6329_v49  ;;  %v5008_v12 = vsel %vm4874_vm0, %v5007_v53, 0.0 }
 0x35a   :  { %v4869_v0 = vpop.f32.mrf.mxu1  ;;  %v5085_v2 = vsel %vm4874_vm0, %v6256_v56, 0.0  ;;  %v5035_v19 = vmul.f32 %v6336_v58, %v6336_v58 }
 0x35b   :  { %5086 = vadd.xlane.f32.xlu1 %v5085_v2  ;;  %v5022_v57 = vsel %vm4874_vm0, %v5021_v27, 0.0 }
 0x35c   :  { %v5036_v60 = vsel %vm4874_vm0, %v5035_v19, 0.0 }
 0x35d   :  { %4883 = vadd.xlane.f32.xlu0 %v4882_v39 }
 0x35f   :  { %4897 = vadd.xlane.f32.xlu1 %v4896_v24 }
 0x361   :  { %4911 = vadd.xlane.f32.xlu0 %v4910_v29 }
 0x363   :  { %4925 = vadd.xlane.f32.xlu1 %v4924_v47 }
 0x365   :  { %4939 = vadd.xlane.f32.xlu0 %v4938_v45 }
 0x367   :  { %4953 = vadd.xlane.f32.xlu1 %v4952_v17 }
 0x369   :  { %4967 = vadd.xlane.f32.xlu0 %v4966_v48 }
 0x36b   :  { %4981 = vadd.xlane.f32.xlu1 %v4980_v25 }
 0x36d   :  { %4995 = vadd.xlane.f32.xlu0 %v4994_v16 }
 0x36f   :  { %5009 = vadd.xlane.f32.xlu1 %v5008_v12 }
 0x371   :  { %5023 = vadd.xlane.f32.xlu0 %v5022_v57 }
 0x373   :  { %5037 = vadd.xlane.f32.xlu1 %v5036_v60 }
 0x3a0   :  { %v5045_v61 = vpop.xlane.xlu0 %5044 }
 0x3a1   :  { %v5046_v28 = vmul.f32 0.01, %v5045_v61 }
 0x3a2   :  { %v5059_v9 = vpop.xlane.xlu1 %5058 }
 0x3a3   :  { %v5047_v62 = vsub.f32 %v6230_v23, %v5046_v28  ;;  %v5060_v7 = vmul.f32 0.01, %v5059_v9 }
 0x3a5   :  { %v5061_v63 = vsub.f32 %v6232_v14, %v5060_v7  ;;  %v6350_v0 = vsel %vm4873_vm1, %v5047_v62, 0.0 }
 0x3a6   :  { %v5049_v2 = vmul.f32 %v6350_v0, %v6350_v0 }
 0x3a7   :  { %v6356_v3 = vsel %vm4873_vm1, %v5061_v63, 0.0 }
 0x3a8   :  { %v5050_v5 = vsel %vm4874_vm0, %v5049_v2, 0.0  ;;  %v5063_v34 = vmul.f32 %v6356_v3, %v6356_v3 }
 0x3a9   :  { %5051 = vadd.xlane.f32.xlu0 %v5050_v5 }
 0x3aa   :  { %v5064_v23 = vsel %vm4874_vm0, %v5063_v34, 0.0 }
 0x3ab   :  { %5065 = vadd.xlane.f32.xlu1 %v5064_v23 }
 0x3e2   :  { %v5073_v14 = vpop.xlane.xlu0 %5072 }
 0x3e3   :  { %v5074_v11 = vmul.f32 0.01, %v5073_v14 }
 0x3e4   :  { %v5087_v39 = vpop.xlane.xlu1 %5086 }
 0x3e5   :  { %v5075_v15 = vsub.f32 %v6249_v52, %v5074_v11  ;;  %v5088_v18 = vmul.f32 0.01, %v5087_v39  ;;  %v6024_v39 = vmov 1983009808  }
 0x3e6   :  { %v4884_v21 = vpop.xlane.xlu0 %4883 }
 0x3e7   :  { %v5089_v4 = vsub.f32 %v6256_v56, %v5088_v18  ;;  %v4885_v24 = vmul.f32 0.01, %v4884_v21  ;;  %v6366_v26 = vsel %vm4873_vm1, %v5075_v15, 0.0  ;;  %v5230_v15 = vunpack.c.l.s4 %v6024_v39 }
 0x3e8   :  { %v4898_v10 = vpop.xlane.xlu1 %4897  ;;  %v5077_v1 = vmul.f32 %v6366_v26, %v6366_v26 }
 0x3e9   :  { %v4886_v37 = vadd.f32 1e-05, %v4885_v24  ;;  %v4899_v29 = vmul.f32 0.01, %v4898_v10  ;;  %v6372_v30 = vsel %vm4873_vm1, %v5089_v4, 0.0 }
 0x3ea   :  { %v4912_v52 = vpop.xlane.xlu0 %4911  ;;  %v5078_v59 = vsel %vm4874_vm0, %v5077_v1, 0.0  ;;  %v5091_v56 = vmul.f32 %v6372_v30, %v6372_v30 }
 0x3eb   :  { %5963 = vrsqrt.f32 %v4886_v37  ;;  %v4900_v35 = vadd.f32 1e-05, %v4899_v29  ;;  %v4913_v47 = vmul.f32 0.01, %v4912_v52  ;;  %5079 = vadd.xlane.f32.xlu0 %v5078_v59 }
 0x3ec   :  { %v4926_v36 = vpop.xlane.xlu1 %4925  ;;  %v5092_v38 = vsel %vm4874_vm0, %v5091_v56, 0.0 }
 0x3ed   :  { %5965 = vrsqrt.f32 %v4900_v35  ;;  %v4914_v40 = vadd.f32 1e-05, %v4913_v47  ;;  %v4927_v45 = vmul.f32 0.01, %v4926_v36  ;;  %5093 = vadd.xlane.f32.xlu1 %v5092_v38  ;;  %v5231_v47 = vunpack.c.0.s8 %v5230_v15 }
 0x3ee   :  { %v4940_v31 = vpop.xlane.xlu0 %4939 }
 0x3ef   :  { %5967 = vrsqrt.f32 %v4914_v40  ;;  %v4928_v42 = vadd.f32 1e-05, %v4927_v45  ;;  %v4941_v43 = vmul.f32 0.01, %v4940_v31 }
 0x3f0   :  { %v4954_v17 = vpop.xlane.xlu1 %4953 }
 0x3f1   :  { %5969 = vrsqrt.f32 %v4928_v42  ;;  %v4942_v46 = vadd.f32 1e-05, %v4941_v43  ;;  %v4955_v8 = vmul.f32 0.01, %v4954_v17 }
 0x3f2   :  { %v4968_v48 = vpop.xlane.xlu0 %4967 }
 0x3f3   :  { %5971 = vrsqrt.f32 %v4942_v46  ;;  %v4956_v20 = vadd.f32 1e-05, %v4955_v8  ;;  %v4969_v25 = vmul.f32 0.01, %v4968_v48 }
 0x3f4   :  { %v4982_v53 = vpop.xlane.xlu1 %4981 }
 0x3f5   :  { %5973 = vrsqrt.f32 %v4956_v20  ;;  %v4970_v16 = vadd.f32 1e-05, %v4969_v25  ;;  %v4983_v27 = vmul.f32 0.01, %v4982_v53 }
 0x3f6   :  { %v4996_v12 = vpop.xlane.xlu0 %4995 }
 0x3f7   :  { %5975 = vrsqrt.f32 %v4970_v16  ;;  %v4984_v19 = vadd.f32 1e-05, %v4983_v27  ;;  %v4997_v57 = vmul.f32 0.01, %v4996_v12 }
 0x3f8   :  { %v5964_v60 = vpop.eup %5963  ;;  %v5010_v61 = vpop.xlane.xlu1 %5009 }
 0x3f9   :  { %v4888_v28 = vmul.f32 %v5964_v60, %v6247_v51  ;;  %5977 = vrsqrt.f32 %v4984_v19  ;;  %v4998_v9 = vadd.f32 1e-05, %v4997_v57  ;;  %v5011_v62 = vmul.f32 0.01, %v5010_v61 }
 0x3fa   :  { %v5966_v7 = vpop.eup %5965  ;;  %v5024_v63 = vpop.xlane.xlu0 %5023 }
 0x3fb   :  { %v5115_v2 = vrot.slane %v4888_v28, 2  ;;  %v4902_v5 = vmul.f32 %v5966_v7, %v6254_v55  ;;  %5979 = vrsqrt.f32 %v4998_v9  ;;  %v5012_v23 = vadd.f32 1e-05, %v5011_v62 }
 0x3fc   :  { %v5968_v34 = vpop.eup %5967  ;;  %v5025_v14 = vmul.f32 0.01, %v5024_v63  ;;  %v5038_v11 = vpop.xlane.xlu1 %5037  ;;  %v5233_v55 = vshrl.u32 %v4871_v6, 7  ;;  %v5163_v35 = vrot.slane %v4888_v28, 4 }
 0x3fd   :  { %v5116_v18 = vrot.slane %v4902_v5, 2  ;;  %v4916_v21 = vmul.f32 %v5968_v34, %v6265_v32  ;;  %5981 = vrsqrt.f32 %v5012_v23  ;;  %v5039_v24 = vmul.f32 0.01, %v5038_v11 }
 0x3fe   :  { %v5970_v4 = vpop.eup %5969  ;;  %v5026_v51 = vadd.f32 1e-05, %v5025_v14  ;;  %v5147_v10 = vadd.f32 %v5115_v2, %v4888_v28  ;;  %v5164_v37 = vrot.slane %v4902_v5, 4 }
 0x3ff   :  { %v5148_v1 = vadd.f32 %v5116_v18, %v4902_v5  ;;  %v5117_v29 = vrot.slane %v4916_v21, 2  ;;  %v4930_v59 = vmul.f32 %v5970_v4, %v6274_v50  ;;  %v5040_v56 = vadd.f32 1e-05, %v5039_v24 }
 0x400   :  { %v5972_v52 = vpop.eup %5971  ;;  %5983 = vrsqrt.f32 %v5026_v51  ;;  %v5195_v31 = vadd.f32 %v5163_v35, %v5147_v10  ;;  %v5165_v17 = vrot.slane %v4916_v21, 4  ;;  %v6385_v50 = vsub.s32 %v5231_v47, %v5233_v55 }
 0x401   :  { %v5196_v36 = vadd.f32 %v5164_v37, %v5148_v1  ;;  %v4944_v32 = vmul.f32 %v5972_v52, %v6282_v22  ;;  %v5149_v40 = vadd.f32 %v5117_v29, %v4916_v21  ;;  %v5118_v45 = vrot.slane %v4930_v59, 2 }
 0x402   :  { %v5974_v38 = vpop.eup %5973  ;;  %5985 = vrsqrt.f32 %v5040_v56  ;;  %v5166_v8 = vrot.slane %v4930_v59, 4 }
 0x403   :  { %v5119_v42 = vrot.slane %v4944_v32, 2  ;;  %v5150_v46 = vadd.f32 %v5118_v45, %v4930_v59  ;;  %v4958_v6 = vmul.f32 %v5974_v38, %v6290_v54  ;;  %v5227_v48 = vcombine.low %v5195_v31, %v5196_v36 }
 0x404   :  { %v5976_v43 = vpop.eup %5975  ;;  %v5197_v53 = vadd.f32 %v5165_v17, %v5149_v40  ;;  %v5167_v61 = vrot.slane %v4944_v32, 4 }
 0x405   :  { %v4972_v20 = vmul.f32 %v5976_v43, %v6298_v33  ;;  %v5198_v22 = vadd.f32 %v5166_v8, %v5150_v46  ;;  %v5151_v16 = vadd.f32 %v5119_v42, %v4944_v32  ;;  %v5120_v27 = vrot.slane %v4958_v6, 2 }
 0x406   :  { %v5978_v25 = vpop.eup %5977  ;;  %v5168_v9 = vrot.slane %v4958_v6, 4  ;;  %v5235_v63 = vrot.slane %v5227_v48, %v6385_v50 }
 0x407   :  { %v5121_v12 = vrot.slane %v4972_v20, 2  ;;  %v4986_v19 = vmul.f32 %v5978_v25, %v6306_v41  ;;  %v5228_v60 = vcombine.low %v5197_v53, %v5198_v22  ;;  %v5152_v28 = vadd.f32 %v5120_v27, %v4958_v6 }
 0x408   :  { %v5980_v57 = vpop.eup %5979  ;;  %v5199_v2 = vadd.f32 %v5167_v61, %v5151_v16  ;;  %v5169_v23 = vrot.slane %v4972_v20, 4 }
 0x409   :  { %v5153_v62 = vadd.f32 %v5121_v12, %v4972_v20  ;;  %v5122_v54 = vrot.slane %v4986_v19, 2  ;;  %v5000_v7 = vmul.f32 %v5980_v57, %v6314_v44  ;;  %v5242_v33 = vrot.slane %v5228_v60, %v6385_v50 }
 0x40a   :  { %v5200_v5 = vadd.f32 %v5168_v9, %v5152_v28  ;;  %v5982_v34 = vpop.eup %5981  ;;  %v5170_v11 = vrot.slane %v4986_v19, 4 }
 0x40b   :  { %v5154_v14 = vadd.f32 %v5122_v54, %v4986_v19  ;;  %v5123_v41 = vrot.slane %v5000_v7, 2  ;;  %v5243_v39 = vcombine.low %v5235_v63, %v5242_v33  ;;  %v5014_v15 = vmul.f32 %v5982_v34, %v6322_v13 }
 0x40c   :  { %v5244_v21 = vcombine.low %v5199_v2, %v5200_v5  ;;  %v5201_v4 = vadd.f32 %v5169_v23, %v5153_v62  ;;  %v5171_v35 = vrot.slane %v5000_v7, 4 }
 0x40d   :  { %v5984_v18 = vpop.eup %5983  ;;  %v5202_v51 = vadd.f32 %v5170_v11, %v5154_v14  ;;  %5299 = vst [vmem:[%s6419_s2] sm:$0xff] %v5243_v39  ;;  %v5124_v44 = vrot.slane %v5014_v15, 2  ;;  %v5155_v37 = vadd.f32 %v5123_v41, %v5000_v7  ;;  %v5172_v52 = vrot.slane %v5014_v15, 4 }
 0x40e   :  { %v5028_v24 = vmul.f32 %v5984_v18, %v6329_v49  ;;  %v5252_v13 = vrot.slane %v5244_v21, %v6385_v50 }
 0x40f   :  { %v5986_v10 = vpop.eup %5985  ;;  %v5245_v1 = vcombine.low %v5201_v4, %v5202_v51  ;;  %v5156_v29 = vadd.f32 %v5124_v44, %v5014_v15  ;;  %v5203_v40 = vadd.f32 %v5171_v35, %v5155_v37 }
 0x410   :  { %v5125_v55 = vrot.slane %v5028_v24, 2  ;;  %v5042_v59 = vmul.f32 %v5986_v10, %v6336_v58  ;;  %v5173_v45 = vrot.slane %v5028_v24, 4 }
 0x411   :  { %v5259_v56 = vrot.slane %v5245_v1, %v6385_v50  ;;  %v5204_v47 = vadd.f32 %v5172_v52, %v5156_v29 }
 0x412   :  { %v5157_v36 = vadd.f32 %v5125_v55, %v5028_v24  ;;  %v5126_v32 = vrot.slane %v5042_v59, 2  ;;  %v5174_v31 = vrot.slane %v5042_v59, 4 }
 0x413   :  { %v5260_v38 = vcombine.low %v5252_v13, %v5259_v56  ;;  %v5261_v42 = vcombine.low %v5203_v40, %v5204_v47 }
 0x414   :  { %v5158_v49 = vadd.f32 %v5126_v32, %v5042_v59  ;;  %v5205_v43 = vadd.f32 %v5173_v45, %v5157_v36 }
 0x415   :  { %5300 = vst [vmem:[%s6419_s2 + $0x8] sm:$0xff] %v5260_v38  ;;  %v5269_v46 = vrot.slane %v5261_v42, %v6385_v50 }
 0x416   :  { %v5206_v58 = vadd.f32 %v5174_v31, %v5158_v49 }
 0x418   :  { %v5262_v17 = vcombine.low %v5205_v43, %v5206_v58 }
 0x41a   :  { %v5276_v8 = vrot.slane %v5262_v17, %v6385_v50 }
 0x41c   :  { %v5277_v6 = vcombine.low %v5269_v46, %v5276_v8 }
 0x41e   :  { %5301 = vst [vmem:[%s6419_s2 + $0x10] sm:$0xff] %v5277_v6 }
 0x432   :  { %v5052_v20 = vpop.xlane.xlu0 %5051 }
 0x433   :  { %v5053_v53 = vmul.f32 0.01, %v5052_v20 }
 0x434   :  { %v5066_v48 = vpop.xlane.xlu1 %5065 }
 0x435   :  { %v5067_v25 = vmul.f32 0.01, %v5066_v48  ;;  %v5054_v16 = vadd.f32 1e-05, %v5053_v53 }
 0x437   :  { %v5068_v22 = vadd.f32 1e-05, %v5067_v25 }
 0x439   :  { %5987 = vrsqrt.f32 %v5068_v22 }
 0x43a   :  { %5989 = vrsqrt.f32 %v5054_v16 }
 0x446   :  { %v5988_v28 = vpop.eup %5987 }
 0x447   :  { %v5990_v9 = vpop.eup %5989  ;;  %v5070_v62 = vmul.f32 %v5988_v28, %v6356_v3 }
 0x448   :  { %v5056_v54 = vmul.f32 %v5990_v9, %v6350_v0 }
 0x449   :  { %v5128_v7 = vrot.slane %v5070_v62, 2  ;;  %v5176_v14 = vrot.slane %v5070_v62, 4 }
 0x44a   :  { %v5127_v63 = vrot.slane %v5056_v54, 2  ;;  %v5175_v39 = vrot.slane %v5056_v54, 4 }
 0x44b   :  { %v5160_v2 = vadd.f32 %v5128_v7, %v5070_v62 }
 0x44c   :  { %v5159_v23 = vadd.f32 %v5127_v63, %v5056_v54 }
 0x44d   :  { %v5208_v15 = vadd.f32 %v5176_v14, %v5160_v2 }
 0x44e   :  { %v5207_v4 = vadd.f32 %v5175_v39, %v5159_v23 }
 0x450   :  { %v5278_v44 = vcombine.low %v5207_v4, %v5208_v15 }
 0x474   :  { %v5080_v27 = vpop.xlane.xlu0 %5079 }
 0x475   :  { %v5081_v12 = vmul.f32 0.01, %v5080_v27 }
 0x476   :  { %v5094_v19 = vpop.xlane.xlu1 %5093 }
 0x477   :  { %v5082_v57 = vadd.f32 1e-05, %v5081_v12  ;;  %v5095_v60 = vmul.f32 0.01, %v5094_v19 }
 0x479   :  { %5991 = vrsqrt.f32 %v5082_v57  ;;  %v5096_v61 = vadd.f32 1e-05, %v5095_v60 }
 0x47b   :  { %5993 = vrsqrt.f32 %v5096_v61 }
 0x486   :  { %v5992_v33 = vpop.eup %5991 }
 0x487   :  { %v5084_v5 = vmul.f32 %v5992_v33, %v6366_v26  ;;  %v5286_v26 = vrot.slane %v5278_v44, %v6385_v50 }
 0x488   :  { %v5994_v34 = vpop.eup %5993 }
 0x489   :  { %v5129_v11 = vrot.slane %v5084_v5, 2  ;;  %v5098_v41 = vmul.f32 %v5994_v34, %v6372_v30  ;;  %v5177_v3 = vrot.slane %v5084_v5, 4 }
 0x48b   :  { %v5161_v18 = vadd.f32 %v5129_v11, %v5084_v5  ;;  %v5130_v21 = vrot.slane %v5098_v41, 2  ;;  %v5178_v0 = vrot.slane %v5098_v41, 4 }
 0x48d   :  { %v5162_v51 = vadd.f32 %v5130_v21, %v5098_v41  ;;  %v5209_v24 = vadd.f32 %v5177_v3, %v5161_v18 }
 0x48f   :  { %v5210_v10 = vadd.f32 %v5178_v0, %v5162_v51 }
 0x491   :  { %v5279_v1 = vcombine.low %v5209_v24, %v5210_v10 }
 0x493   :  { %v5293_v37 = vrot.slane %v5279_v1, %v6385_v50 }
 0x495   :  { %v5294_v29 = vcombine.low %v5286_v26, %v5293_v37 }
 0x497   :  { %5302 = vst [vmem:[%s6419_s2 + $0x18] sm:$0xff] %v5294_v29 }
 0x498   :  { %5307 = vsyncpa [#allocation3], 1 }

</bundles_post_ra>
